<compile_context>
chip_gen: v7x
topology: tpu7x:2x2x1
jax: 0.10.0
libtpu: 0.0.40
codegen_flags: <defaults>
</compile_context>

<pallas_src>
import functools

import jax
import jax.numpy as jnp
from jax.experimental import pallas as pl
from jax.experimental.pallas import tpu as pltpu

LANES = 128  # vreg lane width


def _fused_conv_kernel(x_ref, w1_ref, b1_ref, w2_ref, b2_ref, o_ref, *,
                       cin, cmid, cout, k, oh1, oh2, acc1_l, acc2_l):
    """One grid step: both 3x3 valid convs for all image slots packed along lanes.

    x_ref  : VMEM (1, cin, H, LANES)      f32   (lane = slot*W + w)
    w*_ref : SMEM (co*ci*k*k,)            f32   flattened OIHW weights
    b*_ref : SMEM (co,)                   f32
    o_ref  : VMEM (1, cout, oh2, acc2_l)  f32   (lane = slot*W + ow, ow < OW2 valid)
    """
    x = x_ref[0]  # (cin, H, LANES)

    # ---- conv1 ----------------------------------------------------------------
    acc1 = [jnp.full((oh1, acc1_l), b1_ref[co], dtype=jnp.float32)
            for co in range(cmid)]
    for ci in range(cin):
        xc = x[ci]                                    # (H, LANES)
        for j in range(k):                            # lane (width) tap
            xw = xc[:, j:j + acc1_l]                  # shifted once, reused below
            for i in range(k):                        # sublane (height) tap
                patch = xw[i:i + oh1, :]              # reused across all co
                for co in range(cmid):
                    widx = ((co * cin + ci) * k + i) * k + j
                    acc1[co] = acc1[co] + patch * w1_ref[widx]

    # ---- conv2 (consumes conv1 result directly from registers) -----------------
    acc2 = [jnp.full((oh2, acc2_l), b2_ref[co], dtype=jnp.float32)
            for co in range(cout)]
    for ci in range(cmid):
        mc = acc1[ci]                                 # (oh1, acc1_l)
        for j in range(k):
            mw = mc[:, j:j + acc2_l]
            for i in range(k):
                patch = mw[i:i + oh2, :]
                for co in range(cout):
                    widx = ((co * cmid + ci) * k + i) * k + j
                    acc2[co] = acc2[co] + patch * w2_ref[widx]

    for co in range(cout):
        o_ref[0, co] = acc2[co].astype(o_ref.dtype)   # (oh2, acc2_l) lane-dense store


def fused_double_conv(x, w1f, b1, w2f, b2, *, cin=3, cmid=3, cout=3, k=3):
    """x: (N, cin, H, W) f32; w*f: flattened OIHW f32; b*: (c,) f32.
    Returns (N, cout, H-2*(k-1), W-2*(k-1)) — conv1 -> conv2, stride 1, no padding."""
    N, cin_, H, W = x.shape
    assert cin_ == cin and LANES % W == 0 and W > 2 * (k - 1)
    oh1, ow1 = H - k + 1, W - k + 1
    oh2, ow2 = oh1 - k + 1, ow1 - k + 1
    slots = LANES // W                     # images packed per grid step
    nb = pl.cdiv(N, slots)
    n_pad = nb * slots

    # ---- pack batch along the lane axis: xp[b, c, h, s*W + w] = x[b*slots+s, c, h, w]
    xp = jnp.pad(x, ((0, n_pad - N), (0, 0), (0, 0), (0, 0)))
    xp = xp.reshape(nb, slots, cin, H, W)
    xp = jnp.transpose(xp, (0, 2, 3, 1, 4)).reshape(nb, cin, H, slots * W)

    acc1_l = slots * W - (k - 1)           # 126: widest shifted view of the input
    acc2_l = acc1_l - (k - 1)              # 124: widest shifted view of the mid act.

    kernel = functools.partial(
        _fused_conv_kernel, cin=cin, cmid=cmid, cout=cout, k=k,
        oh1=oh1, oh2=oh2, acc1_l=acc1_l, acc2_l=acc2_l)

    out_packed = pl.pallas_call(
        kernel,
        out_shape=jax.ShapeDtypeStruct((nb, cout, oh2, acc2_l), jnp.float32),
        grid=(nb,),
        in_specs=[
            pl.BlockSpec((1, cin, H, slots * W), lambda b: (b, 0, 0, 0)),
            pl.BlockSpec(memory_space=pltpu.MemorySpace.SMEM),
            pl.BlockSpec(memory_space=pltpu.MemorySpace.SMEM),
            pl.BlockSpec(memory_space=pltpu.MemorySpace.SMEM),
            pl.BlockSpec(memory_space=pltpu.MemorySpace.SMEM),
        ],
        out_specs=pl.BlockSpec((1, cout, oh2, acc2_l), lambda b: (b, 0, 0, 0)),
        compiler_params=pltpu.CompilerParams(
            dimension_semantics=("parallel",)),
    )(xp, w1f, b1, w2f, b2)

    # ---- unpack lanes -> (N, cout, oh2, ow2)
    pad_l = slots * W - acc2_l
    outp = jnp.pad(out_packed, ((0, 0), (0, 0), (0, 0), (0, pad_l)))
    outp = outp.reshape(nb, cout, oh2, slots, W)[..., :ow2]
    outp = jnp.transpose(outp, (0, 3, 1, 2, 4)).reshape(n_pad, cout, oh2, ow2)
    return outp[:N]


def init_params():
    """Deterministic synthetic parameters matching nn.Conv2d(3, 3, 3) shapes (OIHW)."""
    key = jax.random.PRNGKey(42)
    k1, k2, k3, k4 = jax.random.split(key, 4)
    w1 = jax.random.normal(k1, (3, 3, 3, 3), jnp.float32) * 0.1
    b1 = jax.random.normal(k2, (3,), jnp.float32) * 0.1
    w2 = jax.random.normal(k3, (3, 3, 3, 3), jnp.float32) * 0.1
    b2 = jax.random.normal(k4, (3,), jnp.float32) * 0.1
    return w1, b1, w2, b2


def prepare_params(params):
    """One-time flatten + cast (hoisted out of the per-call path)."""
    w1, b1, w2, b2 = params
    return (w1.reshape(-1).astype(jnp.float32), b1.astype(jnp.float32),
            w2.reshape(-1).astype(jnp.float32), b2.astype(jnp.float32))


def model_forward(x, prepared_params):
    w1f, b1, w2f, b2 = prepared_params
    return fused_double_conv(x, w1f, b1, w2f, b2)


def _ref_conv(x, w, b):
    y = jax.lax.conv_general_dilated(
        x, w, window_strides=(1, 1), padding="VALID",
        dimension_numbers=("NCHW", "OIHW", "NCHW"))
    return y + b[None, :, None, None]


if __name__ == "__main__":
    params = init_params()
    prepared = prepare_params(params)
    x = jax.random.normal(jax.random.PRNGKey(0), (2, 3, 16, 16), jnp.float32)

    fwd = jax.jit(model_forward)
    out = jax.block_until_ready(fwd(x, prepared))

    # Cross-check against XLA's convolution chain.
    w1, b1, w2, b2 = params
    ref = _ref_conv(_ref_conv(x, w1, b1), w2, b2)
    assert out.shape == (2, 3, 12, 12), out.shape
    assert jnp.allclose(out, ref, atol=1e-4, rtol=1e-4), float(jnp.max(jnp.abs(out - ref)))

    print("KERNEL_OK")
</pallas_src>

<mosaic_0001>
module attributes {stable_mosaic.version = 11 : i64} {
  func.func @_fused_conv_kernel(%arg0: i32, %arg1: memref<1x3x16x128xf32, #tpu.memory_space<vmem>>, %arg2: memref<81xf32, #tpu.memory_space<smem>>, %arg3: memref<3xf32, #tpu.memory_space<smem>>, %arg4: memref<81xf32, #tpu.memory_space<smem>>, %arg5: memref<3xf32, #tpu.memory_space<smem>>, %arg6: memref<1x3x12x124xf32, #tpu.memory_space<vmem>>) attributes {dimension_semantics = [#tpu.dimension_semantics<parallel>], iteration_bounds = array<i64: 1>, scalar_prefetch = 0 : i64, scratch_operands = 0 : i64, tpu.core_type = #tpu.core_type<tc>, window_params = [{transform_indices = @transform_0, window_bounds = array<i64: 1, 3, 16, 128>}, {transform_indices = @transform_1, window_bounds = array<i64: 81>}, {transform_indices = @transform_2, window_bounds = array<i64: 3>}, {transform_indices = @transform_3, window_bounds = array<i64: 81>}, {transform_indices = @transform_4, window_bounds = array<i64: 3>}, {transform_indices = @transform_5, window_bounds = array<i64: 1, 3, 12, 124>}]} {
    %c0 = arith.constant 0 : index
    %c0_0 = arith.constant 0 : index
    %c0_1 = arith.constant 0 : index
    %c0_2 = arith.constant 0 : index
    %0 = vector.load %arg1[%c0, %c0_0, %c0_1, %c0_2] : memref<1x3x16x128xf32, #tpu.memory_space<vmem>>, vector<1x3x16x128xf32>
    %1 = vector.shape_cast %0 : vector<1x3x16x128xf32> to vector<3x16x128xf32>
    %c0_3 = arith.constant 0 : index
    %2 = memref.load %arg3[%c0_3] : memref<3xf32, #tpu.memory_space<smem>>
    %3 = vector.broadcast %2 : f32 to vector<14x126xf32>
    %c1 = arith.constant 1 : index
    %4 = memref.load %arg3[%c1] : memref<3xf32, #tpu.memory_space<smem>>
    %5 = vector.broadcast %4 : f32 to vector<14x126xf32>
    %c2 = arith.constant 2 : index
    %6 = memref.load %arg3[%c2] : memref<3xf32, #tpu.memory_space<smem>>
    %7 = vector.broadcast %6 : f32 to vector<14x126xf32>
    %8 = vector.extract_strided_slice %1 {offsets = [0, 0, 0], sizes = [1, 16, 128], strides = [1, 1, 1]} : vector<3x16x128xf32> to vector<1x16x128xf32>
    %9 = vector.shape_cast %8 : vector<1x16x128xf32> to vector<16x128xf32>
    %10 = vector.extract_strided_slice %9 {offsets = [0, 0], sizes = [16, 126], strides = [1, 1]} : vector<16x128xf32> to vector<16x126xf32>
    %11 = vector.extract_strided_slice %10 {offsets = [0, 0], sizes = [14, 126], strides = [1, 1]} : vector<16x126xf32> to vector<14x126xf32>
    %c0_4 = arith.constant 0 : index
    %12 = memref.load %arg2[%c0_4] : memref<81xf32, #tpu.memory_space<smem>>
    %13 = vector.broadcast %12 : f32 to vector<14x126xf32>
    %14 = arith.mulf %11, %13 : vector<14x126xf32>
    %15 = arith.addf %3, %14 : vector<14x126xf32>
    %c27 = arith.constant 27 : index
    %16 = memref.load %arg2[%c27] : memref<81xf32, #tpu.memory_space<smem>>
    %17 = vector.broadcast %16 : f32 to vector<14x126xf32>
    %18 = arith.mulf %11, %17 : vector<14x126xf32>
    %19 = arith.addf %5, %18 : vector<14x126xf32>
    %c54 = arith.constant 54 : index
    %20 = memref.load %arg2[%c54] : memref<81xf32, #tpu.memory_space<smem>>
    %21 = vector.broadcast %20 : f32 to vector<14x126xf32>
    %22 = arith.mulf %11, %21 : vector<14x126xf32>
    %23 = arith.addf %7, %22 : vector<14x126xf32>
    %24 = vector.extract_strided_slice %10 {offsets = [1, 0], sizes = [14, 126], strides = [1, 1]} : vector<16x126xf32> to vector<14x126xf32>
    %c3 = arith.constant 3 : index
    %25 = memref.load %arg2[%c3] : memref<81xf32, #tpu.memory_space<smem>>
    %26 = vector.broadcast %25 : f32 to vector<14x126xf32>
    %27 = arith.mulf %24, %26 : vector<14x126xf32>
    %28 = arith.addf %15, %27 : vector<14x126xf32>
    %c30 = arith.constant 30 : index
    %29 = memref.load %arg2[%c30] : memref<81xf32, #tpu.memory_space<smem>>
    %30 = vector.broadcast %29 : f32 to vector<14x126xf32>
    %31 = arith.mulf %24, %30 : vector<14x126xf32>
    %32 = arith.addf %19, %31 : vector<14x126xf32>
    %c57 = arith.constant 57 : index
    %33 = memref.load %arg2[%c57] : memref<81xf32, #tpu.memory_space<smem>>
    %34 = vector.broadcast %33 : f32 to vector<14x126xf32>
    %35 = arith.mulf %24, %34 : vector<14x126xf32>
    %36 = arith.addf %23, %35 : vector<14x126xf32>
    %37 = vector.extract_strided_slice %10 {offsets = [2, 0], sizes = [14, 126], strides = [1, 1]} : vector<16x126xf32> to vector<14x126xf32>
    %c6 = arith.constant 6 : index
    %38 = memref.load %arg2[%c6] : memref<81xf32, #tpu.memory_space<smem>>
    %39 = vector.broadcast %38 : f32 to vector<14x126xf32>
    %40 = arith.mulf %37, %39 : vector<14x126xf32>
    %41 = arith.addf %28, %40 : vector<14x126xf32>
    %c33 = arith.constant 33 : index
    %42 = memref.load %arg2[%c33] : memref<81xf32, #tpu.memory_space<smem>>
    %43 = vector.broadcast %42 : f32 to vector<14x126xf32>
    %44 = arith.mulf %37, %43 : vector<14x126xf32>
    %45 = arith.addf %32, %44 : vector<14x126xf32>
    %c60 = arith.constant 60 : index
    %46 = memref.load %arg2[%c60] : memref<81xf32, #tpu.memory_space<smem>>
    %47 = vector.broadcast %46 : f32 to vector<14x126xf32>
    %48 = arith.mulf %37, %47 : vector<14x126xf32>
    %49 = arith.addf %36, %48 : vector<14x126xf32>
    %50 = vector.extract_strided_slice %9 {offsets = [0, 1], sizes = [16, 126], strides = [1, 1]} : vector<16x128xf32> to vector<16x126xf32>
    %51 = vector.extract_strided_slice %50 {offsets = [0, 0], sizes = [14, 126], strides = [1, 1]} : vector<16x126xf32> to vector<14x126xf32>
    %c1_5 = arith.constant 1 : index
    %52 = memref.load %arg2[%c1_5] : memref<81xf32, #tpu.memory_space<smem>>
    %53 = vector.broadcast %52 : f32 to vector<14x126xf32>
    %54 = arith.mulf %51, %53 : vector<14x126xf32>
    %55 = arith.addf %41, %54 : vector<14x126xf32>
    %c28 = arith.constant 28 : index
    %56 = memref.load %arg2[%c28] : memref<81xf32, #tpu.memory_space<smem>>
    %57 = vector.broadcast %56 : f32 to vector<14x126xf32>
    %58 = arith.mulf %51, %57 : vector<14x126xf32>
    %59 = arith.addf %45, %58 : vector<14x126xf32>
    %c55 = arith.constant 55 : index
    %60 = memref.load %arg2[%c55] : memref<81xf32, #tpu.memory_space<smem>>
    %61 = vector.broadcast %60 : f32 to vector<14x126xf32>
    %62 = arith.mulf %51, %61 : vector<14x126xf32>
    %63 = arith.addf %49, %62 : vector<14x126xf32>
    %64 = vector.extract_strided_slice %50 {offsets = [1, 0], sizes = [14, 126], strides = [1, 1]} : vector<16x126xf32> to vector<14x126xf32>
    %c4 = arith.constant 4 : index
    %65 = memref.load %arg2[%c4] : memref<81xf32, #tpu.memory_space<smem>>
    %66 = vector.broadcast %65 : f32 to vector<14x126xf32>
    %67 = arith.mulf %64, %66 : vector<14x126xf32>
    %68 = arith.addf %55, %67 : vector<14x126xf32>
    %c31 = arith.constant 31 : index
    %69 = memref.load %arg2[%c31] : memref<81xf32, #tpu.memory_space<smem>>
    %70 = vector.broadcast %69 : f32 to vector<14x126xf32>
    %71 = arith.mulf %64, %70 : vector<14x126xf32>
    %72 = arith.addf %59, %71 : vector<14x126xf32>
    %c58 = arith.constant 58 : index
    %73 = memref.load %arg2[%c58] : memref<81xf32, #tpu.memory_space<smem>>
    %74 = vector.broadcast %73 : f32 to vector<14x126xf32>
    %75 = arith.mulf %64, %74 : vector<14x126xf32>
    %76 = arith.addf %63, %75 : vector<14x126xf32>
    %77 = vector.extract_strided_slice %50 {offsets = [2, 0], sizes = [14, 126], strides = [1, 1]} : vector<16x126xf32> to vector<14x126xf32>
    %c7 = arith.constant 7 : index
    %78 = memref.load %arg2[%c7] : memref<81xf32, #tpu.memory_space<smem>>
    %79 = vector.broadcast %78 : f32 to vector<14x126xf32>
    %80 = arith.mulf %77, %79 : vector<14x126xf32>
    %81 = arith.addf %68, %80 : vector<14x126xf32>
    %c34 = arith.constant 34 : index
    %82 = memref.load %arg2[%c34] : memref<81xf32, #tpu.memory_space<smem>>
    %83 = vector.broadcast %82 : f32 to vector<14x126xf32>
    %84 = arith.mulf %77, %83 : vector<14x126xf32>
    %85 = arith.addf %72, %84 : vector<14x126xf32>
    %c61 = arith.constant 61 : index
    %86 = memref.load %arg2[%c61] : memref<81xf32, #tpu.memory_space<smem>>
    %87 = vector.broadcast %86 : f32 to vector<14x126xf32>
    %88 = arith.mulf %77, %87 : vector<14x126xf32>
    %89 = arith.addf %76, %88 : vector<14x126xf32>
    %90 = vector.extract_strided_slice %9 {offsets = [0, 2], sizes = [16, 126], strides = [1, 1]} : vector<16x128xf32> to vector<16x126xf32>
    %91 = vector.extract_strided_slice %90 {offsets = [0, 0], sizes = [14, 126], strides = [1, 1]} : vector<16x126xf32> to vector<14x126xf32>
    %c2_6 = arith.constant 2 : index
    %92 = memref.load %arg2[%c2_6] : memref<81xf32, #tpu.memory_space<smem>>
    %93 = vector.broadcast %92 : f32 to vector<14x126xf32>
    %94 = arith.mulf %91, %93 : vector<14x126xf32>
    %95 = arith.addf %81, %94 : vector<14x126xf32>
    %c29 = arith.constant 29 : index
    %96 = memref.load %arg2[%c29] : memref<81xf32, #tpu.memory_space<smem>>
    %97 = vector.broadcast %96 : f32 to vector<14x126xf32>
    %98 = arith.mulf %91, %97 : vector<14x126xf32>
    %99 = arith.addf %85, %98 : vector<14x126xf32>
    %c56 = arith.constant 56 : index
    %100 = memref.load %arg2[%c56] : memref<81xf32, #tpu.memory_space<smem>>
    %101 = vector.broadcast %100 : f32 to vector<14x126xf32>
    %102 = arith.mulf %91, %101 : vector<14x126xf32>
    %103 = arith.addf %89, %102 : vector<14x126xf32>
    %104 = vector.extract_strided_slice %90 {offsets = [1, 0], sizes = [14, 126], strides = [1, 1]} : vector<16x126xf32> to vector<14x126xf32>
    %c5 = arith.constant 5 : index
    %105 = memref.load %arg2[%c5] : memref<81xf32, #tpu.memory_space<smem>>
    %106 = vector.broadcast %105 : f32 to vector<14x126xf32>
    %107 = arith.mulf %104, %106 : vector<14x126xf32>
    %108 = arith.addf %95, %107 : vector<14x126xf32>
    %c32 = arith.constant 32 : index
    %109 = memref.load %arg2[%c32] : memref<81xf32, #tpu.memory_space<smem>>
    %110 = vector.broadcast %109 : f32 to vector<14x126xf32>
    %111 = arith.mulf %104, %110 : vector<14x126xf32>
    %112 = arith.addf %99, %111 : vector<14x126xf32>
    %c59 = arith.constant 59 : index
    %113 = memref.load %arg2[%c59] : memref<81xf32, #tpu.memory_space<smem>>
    %114 = vector.broadcast %113 : f32 to vector<14x126xf32>
    %115 = arith.mulf %104, %114 : vector<14x126xf32>
    %116 = arith.addf %103, %115 : vector<14x126xf32>
    %117 = vector.extract_strided_slice %90 {offsets = [2, 0], sizes = [14, 126], strides = [1, 1]} : vector<16x126xf32> to vector<14x126xf32>
    %c8 = arith.constant 8 : index
    %118 = memref.load %arg2[%c8] : memref<81xf32, #tpu.memory_space<smem>>
    %119 = vector.broadcast %118 : f32 to vector<14x126xf32>
    %120 = arith.mulf %117, %119 : vector<14x126xf32>
    %121 = arith.addf %108, %120 : vector<14x126xf32>
    %c35 = arith.constant 35 : index
    %122 = memref.load %arg2[%c35] : memref<81xf32, #tpu.memory_space<smem>>
    %123 = vector.broadcast %122 : f32 to vector<14x126xf32>
    %124 = arith.mulf %117, %123 : vector<14x126xf32>
    %125 = arith.addf %112, %124 : vector<14x126xf32>
    %c62 = arith.constant 62 : index
    %126 = memref.load %arg2[%c62] : memref<81xf32, #tpu.memory_space<smem>>
    %127 = vector.broadcast %126 : f32 to vector<14x126xf32>
    %128 = arith.mulf %117, %127 : vector<14x126xf32>
    %129 = arith.addf %116, %128 : vector<14x126xf32>
    %130 = vector.extract_strided_slice %1 {offsets = [1, 0, 0], sizes = [1, 16, 128], strides = [1, 1, 1]} : vector<3x16x128xf32> to vector<1x16x128xf32>
    %131 = vector.shape_cast %130 : vector<1x16x128xf32> to vector<16x128xf32>
    %132 = vector.extract_strided_slice %131 {offsets = [0, 0], sizes = [16, 126], strides = [1, 1]} : vector<16x128xf32> to vector<16x126xf32>
    %133 = vector.extract_strided_slice %132 {offsets = [0, 0], sizes = [14, 126], strides = [1, 1]} : vector<16x126xf32> to vector<14x126xf32>
    %c9 = arith.constant 9 : index
    %134 = memref.load %arg2[%c9] : memref<81xf32, #tpu.memory_space<smem>>
    %135 = vector.broadcast %134 : f32 to vector<14x126xf32>
    %136 = arith.mulf %133, %135 : vector<14x126xf32>
    %137 = arith.addf %121, %136 : vector<14x126xf32>
    %c36 = arith.constant 36 : index
    %138 = memref.load %arg2[%c36] : memref<81xf32, #tpu.memory_space<smem>>
    %139 = vector.broadcast %138 : f32 to vector<14x126xf32>
    %140 = arith.mulf %133, %139 : vector<14x126xf32>
    %141 = arith.addf %125, %140 : vector<14x126xf32>
    %c63 = arith.constant 63 : index
    %142 = memref.load %arg2[%c63] : memref<81xf32, #tpu.memory_space<smem>>
    %143 = vector.broadcast %142 : f32 to vector<14x126xf32>
    %144 = arith.mulf %133, %143 : vector<14x126xf32>
    %145 = arith.addf %129, %144 : vector<14x126xf32>
    %146 = vector.extract_strided_slice %132 {offsets = [1, 0], sizes = [14, 126], strides = [1, 1]} : vector<16x126xf32> to vector<14x126xf32>
    %c12 = arith.constant 12 : index
    %147 = memref.load %arg2[%c12] : memref<81xf32, #tpu.memory_space<smem>>
    %148 = vector.broadcast %147 : f32 to vector<14x126xf32>
    %149 = arith.mulf %146, %148 : vector<14x126xf32>
    %150 = arith.addf %137, %149 : vector<14x126xf32>
    %c39 = arith.constant 39 : index
    %151 = memref.load %arg2[%c39] : memref<81xf32, #tpu.memory_space<smem>>
    %152 = vector.broadcast %151 : f32 to vector<14x126xf32>
    %153 = arith.mulf %146, %152 : vector<14x126xf32>
    %154 = arith.addf %141, %153 : vector<14x126xf32>
    %c66 = arith.constant 66 : index
    %155 = memref.load %arg2[%c66] : memref<81xf32, #tpu.memory_space<smem>>
    %156 = vector.broadcast %155 : f32 to vector<14x126xf32>
    %157 = arith.mulf %146, %156 : vector<14x126xf32>
    %158 = arith.addf %145, %157 : vector<14x126xf32>
    %159 = vector.extract_strided_slice %132 {offsets = [2, 0], sizes = [14, 126], strides = [1, 1]} : vector<16x126xf32> to vector<14x126xf32>
    %c15 = arith.constant 15 : index
    %160 = memref.load %arg2[%c15] : memref<81xf32, #tpu.memory_space<smem>>
    %161 = vector.broadcast %160 : f32 to vector<14x126xf32>
    %162 = arith.mulf %159, %161 : vector<14x126xf32>
    %163 = arith.addf %150, %162 : vector<14x126xf32>
    %c42 = arith.constant 42 : index
    %164 = memref.load %arg2[%c42] : memref<81xf32, #tpu.memory_space<smem>>
    %165 = vector.broadcast %164 : f32 to vector<14x126xf32>
    %166 = arith.mulf %159, %165 : vector<14x126xf32>
    %167 = arith.addf %154, %166 : vector<14x126xf32>
    %c69 = arith.constant 69 : index
    %168 = memref.load %arg2[%c69] : memref<81xf32, #tpu.memory_space<smem>>
    %169 = vector.broadcast %168 : f32 to vector<14x126xf32>
    %170 = arith.mulf %159, %169 : vector<14x126xf32>
    %171 = arith.addf %158, %170 : vector<14x126xf32>
    %172 = vector.extract_strided_slice %131 {offsets = [0, 1], sizes = [16, 126], strides = [1, 1]} : vector<16x128xf32> to vector<16x126xf32>
    %173 = vector.extract_strided_slice %172 {offsets = [0, 0], sizes = [14, 126], strides = [1, 1]} : vector<16x126xf32> to vector<14x126xf32>
    %c10 = arith.constant 10 : index
    %174 = memref.load %arg2[%c10] : memref<81xf32, #tpu.memory_space<smem>>
    %175 = vector.broadcast %174 : f32 to vector<14x126xf32>
    %176 = arith.mulf %173, %175 : vector<14x126xf32>
    %177 = arith.addf %163, %176 : vector<14x126xf32>
    %c37 = arith.constant 37 : index
    %178 = memref.load %arg2[%c37] : memref<81xf32, #tpu.memory_space<smem>>
    %179 = vector.broadcast %178 : f32 to vector<14x126xf32>
    %180 = arith.mulf %173, %179 : vector<14x126xf32>
    %181 = arith.addf %167, %180 : vector<14x126xf32>
    %c64 = arith.constant 64 : index
    %182 = memref.load %arg2[%c64] : memref<81xf32, #tpu.memory_space<smem>>
    %183 = vector.broadcast %182 : f32 to vector<14x126xf32>
    %184 = arith.mulf %173, %183 : vector<14x126xf32>
    %185 = arith.addf %171, %184 : vector<14x126xf32>
    %186 = vector.extract_strided_slice %172 {offsets = [1, 0], sizes = [14, 126], strides = [1, 1]} : vector<16x126xf32> to vector<14x126xf32>
    %c13 = arith.constant 13 : index
    %187 = memref.load %arg2[%c13] : memref<81xf32, #tpu.memory_space<smem>>
    %188 = vector.broadcast %187 : f32 to vector<14x126xf32>
    %189 = arith.mulf %186, %188 : vector<14x126xf32>
    %190 = arith.addf %177, %189 : vector<14x126xf32>
    %c40 = arith.constant 40 : index
    %191 = memref.load %arg2[%c40] : memref<81xf32, #tpu.memory_space<smem>>
    %192 = vector.broadcast %191 : f32 to vector<14x126xf32>
    %193 = arith.mulf %186, %192 : vector<14x126xf32>
    %194 = arith.addf %181, %193 : vector<14x126xf32>
    %c67 = arith.constant 67 : index
    %195 = memref.load %arg2[%c67] : memref<81xf32, #tpu.memory_space<smem>>
    %196 = vector.broadcast %195 : f32 to vector<14x126xf32>
    %197 = arith.mulf %186, %196 : vector<14x126xf32>
    %198 = arith.addf %185, %197 : vector<14x126xf32>
    %199 = vector.extract_strided_slice %172 {offsets = [2, 0], sizes = [14, 126], strides = [1, 1]} : vector<16x126xf32> to vector<14x126xf32>
    %c16 = arith.constant 16 : index
    %200 = memref.load %arg2[%c16] : memref<81xf32, #tpu.memory_space<smem>>
    %201 = vector.broadcast %200 : f32 to vector<14x126xf32>
    %202 = arith.mulf %199, %201 : vector<14x126xf32>
    %203 = arith.addf %190, %202 : vector<14x126xf32>
    %c43 = arith.constant 43 : index
    %204 = memref.load %arg2[%c43] : memref<81xf32, #tpu.memory_space<smem>>
    %205 = vector.broadcast %204 : f32 to vector<14x126xf32>
    %206 = arith.mulf %199, %205 : vector<14x126xf32>
    %207 = arith.addf %194, %206 : vector<14x126xf32>
    %c70 = arith.constant 70 : index
    %208 = memref.load %arg2[%c70] : memref<81xf32, #tpu.memory_space<smem>>
    %209 = vector.broadcast %208 : f32 to vector<14x126xf32>
    %210 = arith.mulf %199, %209 : vector<14x126xf32>
    %211 = arith.addf %198, %210 : vector<14x126xf32>
    %212 = vector.extract_strided_slice %131 {offsets = [0, 2], sizes = [16, 126], strides = [1, 1]} : vector<16x128xf32> to vector<16x126xf32>
    %213 = vector.extract_strided_slice %212 {offsets = [0, 0], sizes = [14, 126], strides = [1, 1]} : vector<16x126xf32> to vector<14x126xf32>
    %c11 = arith.constant 11 : index
    %214 = memref.load %arg2[%c11] : memref<81xf32, #tpu.memory_space<smem>>
    %215 = vector.broadcast %214 : f32 to vector<14x126xf32>
    %216 = arith.mulf %213, %215 : vector<14x126xf32>
    %217 = arith.addf %203, %216 : vector<14x126xf32>
    %c38 = arith.constant 38 : index
    %218 = memref.load %arg2[%c38] : memref<81xf32, #tpu.memory_space<smem>>
    %219 = vector.broadcast %218 : f32 to vector<14x126xf32>
    %220 = arith.mulf %213, %219 : vector<14x126xf32>
    %221 = arith.addf %207, %220 : vector<14x126xf32>
    %c65 = arith.constant 65 : index
    %222 = memref.load %arg2[%c65] : memref<81xf32, #tpu.memory_space<smem>>
    %223 = vector.broadcast %222 : f32 to vector<14x126xf32>
    %224 = arith.mulf %213, %223 : vector<14x126xf32>
    %225 = arith.addf %211, %224 : vector<14x126xf32>
    %226 = vector.extract_strided_slice %212 {offsets = [1, 0], sizes = [14, 126], strides = [1, 1]} : vector<16x126xf32> to vector<14x126xf32>
    %c14 = arith.constant 14 : index
    %227 = memref.load %arg2[%c14] : memref<81xf32, #tpu.memory_space<smem>>
    %228 = vector.broadcast %227 : f32 to vector<14x126xf32>
    %229 = arith.mulf %226, %228 : vector<14x126xf32>
    %230 = arith.addf %217, %229 : vector<14x126xf32>
    %c41 = arith.constant 41 : index
    %231 = memref.load %arg2[%c41] : memref<81xf32, #tpu.memory_space<smem>>
    %232 = vector.broadcast %231 : f32 to vector<14x126xf32>
    %233 = arith.mulf %226, %232 : vector<14x126xf32>
    %234 = arith.addf %221, %233 : vector<14x126xf32>
    %c68 = arith.constant 68 : index
    %235 = memref.load %arg2[%c68] : memref<81xf32, #tpu.memory_space<smem>>
    %236 = vector.broadcast %235 : f32 to vector<14x126xf32>
    %237 = arith.mulf %226, %236 : vector<14x126xf32>
    %238 = arith.addf %225, %237 : vector<14x126xf32>
    %239 = vector.extract_strided_slice %212 {offsets = [2, 0], sizes = [14, 126], strides = [1, 1]} : vector<16x126xf32> to vector<14x126xf32>
    %c17 = arith.constant 17 : index
    %240 = memref.load %arg2[%c17] : memref<81xf32, #tpu.memory_space<smem>>
    %241 = vector.broadcast %240 : f32 to vector<14x126xf32>
    %242 = arith.mulf %239, %241 : vector<14x126xf32>
    %243 = arith.addf %230, %242 : vector<14x126xf32>
    %c44 = arith.constant 44 : index
    %244 = memref.load %arg2[%c44] : memref<81xf32, #tpu.memory_space<smem>>
    %245 = vector.broadcast %244 : f32 to vector<14x126xf32>
    %246 = arith.mulf %239, %245 : vector<14x126xf32>
    %247 = arith.addf %234, %246 : vector<14x126xf32>
    %c71 = arith.constant 71 : index
    %248 = memref.load %arg2[%c71] : memref<81xf32, #tpu.memory_space<smem>>
    %249 = vector.broadcast %248 : f32 to vector<14x126xf32>
    %250 = arith.mulf %239, %249 : vector<14x126xf32>
    %251 = arith.addf %238, %250 : vector<14x126xf32>
    %252 = vector.extract_strided_slice %1 {offsets = [2, 0, 0], sizes = [1, 16, 128], strides = [1, 1, 1]} : vector<3x16x128xf32> to vector<1x16x128xf32>
    %253 = vector.shape_cast %252 : vector<1x16x128xf32> to vector<16x128xf32>
    %254 = vector.extract_strided_slice %253 {offsets = [0, 0], sizes = [16, 126], strides = [1, 1]} : vector<16x128xf32> to vector<16x126xf32>
    %255 = vector.extract_strided_slice %254 {offsets = [0, 0], sizes = [14, 126], strides = [1, 1]} : vector<16x126xf32> to vector<14x126xf32>
    %c18 = arith.constant 18 : index
    %256 = memref.load %arg2[%c18] : memref<81xf32, #tpu.memory_space<smem>>
    %257 = vector.broadcast %256 : f32 to vector<14x126xf32>
    %258 = arith.mulf %255, %257 : vector<14x126xf32>
    %259 = arith.addf %243, %258 : vector<14x126xf32>
    %c45 = arith.constant 45 : index
    %260 = memref.load %arg2[%c45] : memref<81xf32, #tpu.memory_space<smem>>
    %261 = vector.broadcast %260 : f32 to vector<14x126xf32>
    %262 = arith.mulf %255, %261 : vector<14x126xf32>
    %263 = arith.addf %247, %262 : vector<14x126xf32>
    %c72 = arith.constant 72 : index
    %264 = memref.load %arg2[%c72] : memref<81xf32, #tpu.memory_space<smem>>
    %265 = vector.broadcast %264 : f32 to vector<14x126xf32>
    %266 = arith.mulf %255, %265 : vector<14x126xf32>
    %267 = arith.addf %251, %266 : vector<14x126xf32>
    %268 = vector.extract_strided_slice %254 {offsets = [1, 0], sizes = [14, 126], strides = [1, 1]} : vector<16x126xf32> to vector<14x126xf32>
    %c21 = arith.constant 21 : index
    %269 = memref.load %arg2[%c21] : memref<81xf32, #tpu.memory_space<smem>>
    %270 = vector.broadcast %269 : f32 to vector<14x126xf32>
    %271 = arith.mulf %268, %270 : vector<14x126xf32>
    %272 = arith.addf %259, %271 : vector<14x126xf32>
    %c48 = arith.constant 48 : index
    %273 = memref.load %arg2[%c48] : memref<81xf32, #tpu.memory_space<smem>>
    %274 = vector.broadcast %273 : f32 to vector<14x126xf32>
    %275 = arith.mulf %268, %274 : vector<14x126xf32>
    %276 = arith.addf %263, %275 : vector<14x126xf32>
    %c75 = arith.constant 75 : index
    %277 = memref.load %arg2[%c75] : memref<81xf32, #tpu.memory_space<smem>>
    %278 = vector.broadcast %277 : f32 to vector<14x126xf32>
    %279 = arith.mulf %268, %278 : vector<14x126xf32>
    %280 = arith.addf %267, %279 : vector<14x126xf32>
    %281 = vector.extract_strided_slice %254 {offsets = [2, 0], sizes = [14, 126], strides = [1, 1]} : vector<16x126xf32> to vector<14x126xf32>
    %c24 = arith.constant 24 : index
    %282 = memref.load %arg2[%c24] : memref<81xf32, #tpu.memory_space<smem>>
    %283 = vector.broadcast %282 : f32 to vector<14x126xf32>
    %284 = arith.mulf %281, %283 : vector<14x126xf32>
    %285 = arith.addf %272, %284 : vector<14x126xf32>
    %c51 = arith.constant 51 : index
    %286 = memref.load %arg2[%c51] : memref<81xf32, #tpu.memory_space<smem>>
    %287 = vector.broadcast %286 : f32 to vector<14x126xf32>
    %288 = arith.mulf %281, %287 : vector<14x126xf32>
    %289 = arith.addf %276, %288 : vector<14x126xf32>
    %c78 = arith.constant 78 : index
    %290 = memref.load %arg2[%c78] : memref<81xf32, #tpu.memory_space<smem>>
    %291 = vector.broadcast %290 : f32 to vector<14x126xf32>
    %292 = arith.mulf %281, %291 : vector<14x126xf32>
    %293 = arith.addf %280, %292 : vector<14x126xf32>
    %294 = vector.extract_strided_slice %253 {offsets = [0, 1], sizes = [16, 126], strides = [1, 1]} : vector<16x128xf32> to vector<16x126xf32>
    %295 = vector.extract_strided_slice %294 {offsets = [0, 0], sizes = [14, 126], strides = [1, 1]} : vector<16x126xf32> to vector<14x126xf32>
    %c19 = arith.constant 19 : index
    %296 = memref.load %arg2[%c19] : memref<81xf32, #tpu.memory_space<smem>>
    %297 = vector.broadcast %296 : f32 to vector<14x126xf32>
    %298 = arith.mulf %295, %297 : vector<14x126xf32>
    %299 = arith.addf %285, %298 : vector<14x126xf32>
    %c46 = arith.constant 46 : index
    %300 = memref.load %arg2[%c46] : memref<81xf32, #tpu.memory_space<smem>>
    %301 = vector.broadcast %300 : f32 to vector<14x126xf32>
    %302 = arith.mulf %295, %301 : vector<14x126xf32>
    %303 = arith.addf %289, %302 : vector<14x126xf32>
    %c73 = arith.constant 73 : index
    %304 = memref.load %arg2[%c73] : memref<81xf32, #tpu.memory_space<smem>>
    %305 = vector.broadcast %304 : f32 to vector<14x126xf32>
    %306 = arith.mulf %295, %305 : vector<14x126xf32>
    %307 = arith.addf %293, %306 : vector<14x126xf32>
    %308 = vector.extract_strided_slice %294 {offsets = [1, 0], sizes = [14, 126], strides = [1, 1]} : vector<16x126xf32> to vector<14x126xf32>
    %c22 = arith.constant 22 : index
    %309 = memref.load %arg2[%c22] : memref<81xf32, #tpu.memory_space<smem>>
    %310 = vector.broadcast %309 : f32 to vector<14x126xf32>
    %311 = arith.mulf %308, %310 : vector<14x126xf32>
    %312 = arith.addf %299, %311 : vector<14x126xf32>
    %c49 = arith.constant 49 : index
    %313 = memref.load %arg2[%c49] : memref<81xf32, #tpu.memory_space<smem>>
    %314 = vector.broadcast %313 : f32 to vector<14x126xf32>
    %315 = arith.mulf %308, %314 : vector<14x126xf32>
    %316 = arith.addf %303, %315 : vector<14x126xf32>
    %c76 = arith.constant 76 : index
    %317 = memref.load %arg2[%c76] : memref<81xf32, #tpu.memory_space<smem>>
    %318 = vector.broadcast %317 : f32 to vector<14x126xf32>
    %319 = arith.mulf %308, %318 : vector<14x126xf32>
    %320 = arith.addf %307, %319 : vector<14x126xf32>
    %321 = vector.extract_strided_slice %294 {offsets = [2, 0], sizes = [14, 126], strides = [1, 1]} : vector<16x126xf32> to vector<14x126xf32>
    %c25 = arith.constant 25 : index
    %322 = memref.load %arg2[%c25] : memref<81xf32, #tpu.memory_space<smem>>
    %323 = vector.broadcast %322 : f32 to vector<14x126xf32>
    %324 = arith.mulf %321, %323 : vector<14x126xf32>
    %325 = arith.addf %312, %324 : vector<14x126xf32>
    %c52 = arith.constant 52 : index
    %326 = memref.load %arg2[%c52] : memref<81xf32, #tpu.memory_space<smem>>
    %327 = vector.broadcast %326 : f32 to vector<14x126xf32>
    %328 = arith.mulf %321, %327 : vector<14x126xf32>
    %329 = arith.addf %316, %328 : vector<14x126xf32>
    %c79 = arith.constant 79 : index
    %330 = memref.load %arg2[%c79] : memref<81xf32, #tpu.memory_space<smem>>
    %331 = vector.broadcast %330 : f32 to vector<14x126xf32>
    %332 = arith.mulf %321, %331 : vector<14x126xf32>
    %333 = arith.addf %320, %332 : vector<14x126xf32>
    %334 = vector.extract_strided_slice %253 {offsets = [0, 2], sizes = [16, 126], strides = [1, 1]} : vector<16x128xf32> to vector<16x126xf32>
    %335 = vector.extract_strided_slice %334 {offsets = [0, 0], sizes = [14, 126], strides = [1, 1]} : vector<16x126xf32> to vector<14x126xf32>
    %c20 = arith.constant 20 : index
    %336 = memref.load %arg2[%c20] : memref<81xf32, #tpu.memory_space<smem>>
    %337 = vector.broadcast %336 : f32 to vector<14x126xf32>
    %338 = arith.mulf %335, %337 : vector<14x126xf32>
    %339 = arith.addf %325, %338 : vector<14x126xf32>
    %c47 = arith.constant 47 : index
    %340 = memref.load %arg2[%c47] : memref<81xf32, #tpu.memory_space<smem>>
    %341 = vector.broadcast %340 : f32 to vector<14x126xf32>
    %342 = arith.mulf %335, %341 : vector<14x126xf32>
    %343 = arith.addf %329, %342 : vector<14x126xf32>
    %c74 = arith.constant 74 : index
    %344 = memref.load %arg2[%c74] : memref<81xf32, #tpu.memory_space<smem>>
    %345 = vector.broadcast %344 : f32 to vector<14x126xf32>
    %346 = arith.mulf %335, %345 : vector<14x126xf32>
    %347 = arith.addf %333, %346 : vector<14x126xf32>
    %348 = vector.extract_strided_slice %334 {offsets = [1, 0], sizes = [14, 126], strides = [1, 1]} : vector<16x126xf32> to vector<14x126xf32>
    %c23 = arith.constant 23 : index
    %349 = memref.load %arg2[%c23] : memref<81xf32, #tpu.memory_space<smem>>
    %350 = vector.broadcast %349 : f32 to vector<14x126xf32>
    %351 = arith.mulf %348, %350 : vector<14x126xf32>
    %352 = arith.addf %339, %351 : vector<14x126xf32>
    %c50 = arith.constant 50 : index
    %353 = memref.load %arg2[%c50] : memref<81xf32, #tpu.memory_space<smem>>
    %354 = vector.broadcast %353 : f32 to vector<14x126xf32>
    %355 = arith.mulf %348, %354 : vector<14x126xf32>
    %356 = arith.addf %343, %355 : vector<14x126xf32>
    %c77 = arith.constant 77 : index
    %357 = memref.load %arg2[%c77] : memref<81xf32, #tpu.memory_space<smem>>
    %358 = vector.broadcast %357 : f32 to vector<14x126xf32>
    %359 = arith.mulf %348, %358 : vector<14x126xf32>
    %360 = arith.addf %347, %359 : vector<14x126xf32>
    %361 = vector.extract_strided_slice %334 {offsets = [2, 0], sizes = [14, 126], strides = [1, 1]} : vector<16x126xf32> to vector<14x126xf32>
    %c26 = arith.constant 26 : index
    %362 = memref.load %arg2[%c26] : memref<81xf32, #tpu.memory_space<smem>>
    %363 = vector.broadcast %362 : f32 to vector<14x126xf32>
    %364 = arith.mulf %361, %363 : vector<14x126xf32>
    %365 = arith.addf %352, %364 : vector<14x126xf32>
    %c53 = arith.constant 53 : index
    %366 = memref.load %arg2[%c53] : memref<81xf32, #tpu.memory_space<smem>>
    %367 = vector.broadcast %366 : f32 to vector<14x126xf32>
    %368 = arith.mulf %361, %367 : vector<14x126xf32>
    %369 = arith.addf %356, %368 : vector<14x126xf32>
    %c80 = arith.constant 80 : index
    %370 = memref.load %arg2[%c80] : memref<81xf32, #tpu.memory_space<smem>>
    %371 = vector.broadcast %370 : f32 to vector<14x126xf32>
    %372 = arith.mulf %361, %371 : vector<14x126xf32>
    %373 = arith.addf %360, %372 : vector<14x126xf32>
    %c0_7 = arith.constant 0 : index
    %374 = memref.load %arg5[%c0_7] : memref<3xf32, #tpu.memory_space<smem>>
    %375 = vector.broadcast %374 : f32 to vector<12x124xf32>
    %c1_8 = arith.constant 1 : index
    %376 = memref.load %arg5[%c1_8] : memref<3xf32, #tpu.memory_space<smem>>
    %377 = vector.broadcast %376 : f32 to vector<12x124xf32>
    %c2_9 = arith.constant 2 : index
    %378 = memref.load %arg5[%c2_9] : memref<3xf32, #tpu.memory_space<smem>>
    %379 = vector.broadcast %378 : f32 to vector<12x124xf32>
    %380 = vector.extract_strided_slice %365 {offsets = [0, 0], sizes = [14, 124], strides = [1, 1]} : vector<14x126xf32> to vector<14x124xf32>
    %381 = vector.extract_strided_slice %380 {offsets = [0, 0], sizes = [12, 124], strides = [1, 1]} : vector<14x124xf32> to vector<12x124xf32>
    %c0_10 = arith.constant 0 : index
    %382 = memref.load %arg4[%c0_10] : memref<81xf32, #tpu.memory_space<smem>>
    %383 = vector.broadcast %382 : f32 to vector<12x124xf32>
    %384 = arith.mulf %381, %383 : vector<12x124xf32>
    %385 = arith.addf %375, %384 : vector<12x124xf32>
    %c27_11 = arith.constant 27 : index
    %386 = memref.load %arg4[%c27_11] : memref<81xf32, #tpu.memory_space<smem>>
    %387 = vector.broadcast %386 : f32 to vector<12x124xf32>
    %388 = arith.mulf %381, %387 : vector<12x124xf32>
    %389 = arith.addf %377, %388 : vector<12x124xf32>
    %c54_12 = arith.constant 54 : index
    %390 = memref.load %arg4[%c54_12] : memref<81xf32, #tpu.memory_space<smem>>
    %391 = vector.broadcast %390 : f32 to vector<12x124xf32>
    %392 = arith.mulf %381, %391 : vector<12x124xf32>
    %393 = arith.addf %379, %392 : vector<12x124xf32>
    %394 = vector.extract_strided_slice %380 {offsets = [1, 0], sizes = [12, 124], strides = [1, 1]} : vector<14x124xf32> to vector<12x124xf32>
    %c3_13 = arith.constant 3 : index
    %395 = memref.load %arg4[%c3_13] : memref<81xf32, #tpu.memory_space<smem>>
    %396 = vector.broadcast %395 : f32 to vector<12x124xf32>
    %397 = arith.mulf %394, %396 : vector<12x124xf32>
    %398 = arith.addf %385, %397 : vector<12x124xf32>
    %c30_14 = arith.constant 30 : index
    %399 = memref.load %arg4[%c30_14] : memref<81xf32, #tpu.memory_space<smem>>
    %400 = vector.broadcast %399 : f32 to vector<12x124xf32>
    %401 = arith.mulf %394, %400 : vector<12x124xf32>
    %402 = arith.addf %389, %401 : vector<12x124xf32>
    %c57_15 = arith.constant 57 : index
    %403 = memref.load %arg4[%c57_15] : memref<81xf32, #tpu.memory_space<smem>>
    %404 = vector.broadcast %403 : f32 to vector<12x124xf32>
    %405 = arith.mulf %394, %404 : vector<12x124xf32>
    %406 = arith.addf %393, %405 : vector<12x124xf32>
    %407 = vector.extract_strided_slice %380 {offsets = [2, 0], sizes = [12, 124], strides = [1, 1]} : vector<14x124xf32> to vector<12x124xf32>
    %c6_16 = arith.constant 6 : index
    %408 = memref.load %arg4[%c6_16] : memref<81xf32, #tpu.memory_space<smem>>
    %409 = vector.broadcast %408 : f32 to vector<12x124xf32>
    %410 = arith.mulf %407, %409 : vector<12x124xf32>
    %411 = arith.addf %398, %410 : vector<12x124xf32>
    %c33_17 = arith.constant 33 : index
    %412 = memref.load %arg4[%c33_17] : memref<81xf32, #tpu.memory_space<smem>>
    %413 = vector.broadcast %412 : f32 to vector<12x124xf32>
    %414 = arith.mulf %407, %413 : vector<12x124xf32>
    %415 = arith.addf %402, %414 : vector<12x124xf32>
    %c60_18 = arith.constant 60 : index
    %416 = memref.load %arg4[%c60_18] : memref<81xf32, #tpu.memory_space<smem>>
    %417 = vector.broadcast %416 : f32 to vector<12x124xf32>
    %418 = arith.mulf %407, %417 : vector<12x124xf32>
    %419 = arith.addf %406, %418 : vector<12x124xf32>
    %420 = vector.extract_strided_slice %365 {offsets = [0, 1], sizes = [14, 124], strides = [1, 1]} : vector<14x126xf32> to vector<14x124xf32>
    %421 = vector.extract_strided_slice %420 {offsets = [0, 0], sizes = [12, 124], strides = [1, 1]} : vector<14x124xf32> to vector<12x124xf32>
    %c1_19 = arith.constant 1 : index
    %422 = memref.load %arg4[%c1_19] : memref<81xf32, #tpu.memory_space<smem>>
    %423 = vector.broadcast %422 : f32 to vector<12x124xf32>
    %424 = arith.mulf %421, %423 : vector<12x124xf32>
    %425 = arith.addf %411, %424 : vector<12x124xf32>
    %c28_20 = arith.constant 28 : index
    %426 = memref.load %arg4[%c28_20] : memref<81xf32, #tpu.memory_space<smem>>
    %427 = vector.broadcast %426 : f32 to vector<12x124xf32>
    %428 = arith.mulf %421, %427 : vector<12x124xf32>
    %429 = arith.addf %415, %428 : vector<12x124xf32>
    %c55_21 = arith.constant 55 : index
    %430 = memref.load %arg4[%c55_21] : memref<81xf32, #tpu.memory_space<smem>>
    %431 = vector.broadcast %430 : f32 to vector<12x124xf32>
    %432 = arith.mulf %421, %431 : vector<12x124xf32>
    %433 = arith.addf %419, %432 : vector<12x124xf32>
    %434 = vector.extract_strided_slice %420 {offsets = [1, 0], sizes = [12, 124], strides = [1, 1]} : vector<14x124xf32> to vector<12x124xf32>
    %c4_22 = arith.constant 4 : index
    %435 = memref.load %arg4[%c4_22] : memref<81xf32, #tpu.memory_space<smem>>
    %436 = vector.broadcast %435 : f32 to vector<12x124xf32>
    %437 = arith.mulf %434, %436 : vector<12x124xf32>
    %438 = arith.addf %425, %437 : vector<12x124xf32>
    %c31_23 = arith.constant 31 : index
    %439 = memref.load %arg4[%c31_23] : memref<81xf32, #tpu.memory_space<smem>>
    %440 = vector.broadcast %439 : f32 to vector<12x124xf32>
    %441 = arith.mulf %434, %440 : vector<12x124xf32>
    %442 = arith.addf %429, %441 : vector<12x124xf32>
    %c58_24 = arith.constant 58 : index
    %443 = memref.load %arg4[%c58_24] : memref<81xf32, #tpu.memory_space<smem>>
    %444 = vector.broadcast %443 : f32 to vector<12x124xf32>
    %445 = arith.mulf %434, %444 : vector<12x124xf32>
    %446 = arith.addf %433, %445 : vector<12x124xf32>
    %447 = vector.extract_strided_slice %420 {offsets = [2, 0], sizes = [12, 124], strides = [1, 1]} : vector<14x124xf32> to vector<12x124xf32>
    %c7_25 = arith.constant 7 : index
    %448 = memref.load %arg4[%c7_25] : memref<81xf32, #tpu.memory_space<smem>>
    %449 = vector.broadcast %448 : f32 to vector<12x124xf32>
    %450 = arith.mulf %447, %449 : vector<12x124xf32>
    %451 = arith.addf %438, %450 : vector<12x124xf32>
    %c34_26 = arith.constant 34 : index
    %452 = memref.load %arg4[%c34_26] : memref<81xf32, #tpu.memory_space<smem>>
    %453 = vector.broadcast %452 : f32 to vector<12x124xf32>
    %454 = arith.mulf %447, %453 : vector<12x124xf32>
    %455 = arith.addf %442, %454 : vector<12x124xf32>
    %c61_27 = arith.constant 61 : index
    %456 = memref.load %arg4[%c61_27] : memref<81xf32, #tpu.memory_space<smem>>
    %457 = vector.broadcast %456 : f32 to vector<12x124xf32>
    %458 = arith.mulf %447, %457 : vector<12x124xf32>
    %459 = arith.addf %446, %458 : vector<12x124xf32>
    %460 = vector.extract_strided_slice %365 {offsets = [0, 2], sizes = [14, 124], strides = [1, 1]} : vector<14x126xf32> to vector<14x124xf32>
    %461 = vector.extract_strided_slice %460 {offsets = [0, 0], sizes = [12, 124], strides = [1, 1]} : vector<14x124xf32> to vector<12x124xf32>
    %c2_28 = arith.constant 2 : index
    %462 = memref.load %arg4[%c2_28] : memref<81xf32, #tpu.memory_space<smem>>
    %463 = vector.broadcast %462 : f32 to vector<12x124xf32>
    %464 = arith.mulf %461, %463 : vector<12x124xf32>
    %465 = arith.addf %451, %464 : vector<12x124xf32>
    %c29_29 = arith.constant 29 : index
    %466 = memref.load %arg4[%c29_29] : memref<81xf32, #tpu.memory_space<smem>>
    %467 = vector.broadcast %466 : f32 to vector<12x124xf32>
    %468 = arith.mulf %461, %467 : vector<12x124xf32>
    %469 = arith.addf %455, %468 : vector<12x124xf32>
    %c56_30 = arith.constant 56 : index
    %470 = memref.load %arg4[%c56_30] : memref<81xf32, #tpu.memory_space<smem>>
    %471 = vector.broadcast %470 : f32 to vector<12x124xf32>
    %472 = arith.mulf %461, %471 : vector<12x124xf32>
    %473 = arith.addf %459, %472 : vector<12x124xf32>
    %474 = vector.extract_strided_slice %460 {offsets = [1, 0], sizes = [12, 124], strides = [1, 1]} : vector<14x124xf32> to vector<12x124xf32>
    %c5_31 = arith.constant 5 : index
    %475 = memref.load %arg4[%c5_31] : memref<81xf32, #tpu.memory_space<smem>>
    %476 = vector.broadcast %475 : f32 to vector<12x124xf32>
    %477 = arith.mulf %474, %476 : vector<12x124xf32>
    %478 = arith.addf %465, %477 : vector<12x124xf32>
    %c32_32 = arith.constant 32 : index
    %479 = memref.load %arg4[%c32_32] : memref<81xf32, #tpu.memory_space<smem>>
    %480 = vector.broadcast %479 : f32 to vector<12x124xf32>
    %481 = arith.mulf %474, %480 : vector<12x124xf32>
    %482 = arith.addf %469, %481 : vector<12x124xf32>
    %c59_33 = arith.constant 59 : index
    %483 = memref.load %arg4[%c59_33] : memref<81xf32, #tpu.memory_space<smem>>
    %484 = vector.broadcast %483 : f32 to vector<12x124xf32>
    %485 = arith.mulf %474, %484 : vector<12x124xf32>
    %486 = arith.addf %473, %485 : vector<12x124xf32>
    %487 = vector.extract_strided_slice %460 {offsets = [2, 0], sizes = [12, 124], strides = [1, 1]} : vector<14x124xf32> to vector<12x124xf32>
    %c8_34 = arith.constant 8 : index
    %488 = memref.load %arg4[%c8_34] : memref<81xf32, #tpu.memory_space<smem>>
    %489 = vector.broadcast %488 : f32 to vector<12x124xf32>
    %490 = arith.mulf %487, %489 : vector<12x124xf32>
    %491 = arith.addf %478, %490 : vector<12x124xf32>
    %c35_35 = arith.constant 35 : index
    %492 = memref.load %arg4[%c35_35] : memref<81xf32, #tpu.memory_space<smem>>
    %493 = vector.broadcast %492 : f32 to vector<12x124xf32>
    %494 = arith.mulf %487, %493 : vector<12x124xf32>
    %495 = arith.addf %482, %494 : vector<12x124xf32>
    %c62_36 = arith.constant 62 : index
    %496 = memref.load %arg4[%c62_36] : memref<81xf32, #tpu.memory_space<smem>>
    %497 = vector.broadcast %496 : f32 to vector<12x124xf32>
    %498 = arith.mulf %487, %497 : vector<12x124xf32>
    %499 = arith.addf %486, %498 : vector<12x124xf32>
    %500 = vector.extract_strided_slice %369 {offsets = [0, 0], sizes = [14, 124], strides = [1, 1]} : vector<14x126xf32> to vector<14x124xf32>
    %501 = vector.extract_strided_slice %500 {offsets = [0, 0], sizes = [12, 124], strides = [1, 1]} : vector<14x124xf32> to vector<12x124xf32>
    %c9_37 = arith.constant 9 : index
    %502 = memref.load %arg4[%c9_37] : memref<81xf32, #tpu.memory_space<smem>>
    %503 = vector.broadcast %502 : f32 to vector<12x124xf32>
    %504 = arith.mulf %501, %503 : vector<12x124xf32>
    %505 = arith.addf %491, %504 : vector<12x124xf32>
    %c36_38 = arith.constant 36 : index
    %506 = memref.load %arg4[%c36_38] : memref<81xf32, #tpu.memory_space<smem>>
    %507 = vector.broadcast %506 : f32 to vector<12x124xf32>
    %508 = arith.mulf %501, %507 : vector<12x124xf32>
    %509 = arith.addf %495, %508 : vector<12x124xf32>
    %c63_39 = arith.constant 63 : index
    %510 = memref.load %arg4[%c63_39] : memref<81xf32, #tpu.memory_space<smem>>
    %511 = vector.broadcast %510 : f32 to vector<12x124xf32>
    %512 = arith.mulf %501, %511 : vector<12x124xf32>
    %513 = arith.addf %499, %512 : vector<12x124xf32>
    %514 = vector.extract_strided_slice %500 {offsets = [1, 0], sizes = [12, 124], strides = [1, 1]} : vector<14x124xf32> to vector<12x124xf32>
    %c12_40 = arith.constant 12 : index
    %515 = memref.load %arg4[%c12_40] : memref<81xf32, #tpu.memory_space<smem>>
    %516 = vector.broadcast %515 : f32 to vector<12x124xf32>
    %517 = arith.mulf %514, %516 : vector<12x124xf32>
    %518 = arith.addf %505, %517 : vector<12x124xf32>
    %c39_41 = arith.constant 39 : index
    %519 = memref.load %arg4[%c39_41] : memref<81xf32, #tpu.memory_space<smem>>
    %520 = vector.broadcast %519 : f32 to vector<12x124xf32>
    %521 = arith.mulf %514, %520 : vector<12x124xf32>
    %522 = arith.addf %509, %521 : vector<12x124xf32>
    %c66_42 = arith.constant 66 : index
    %523 = memref.load %arg4[%c66_42] : memref<81xf32, #tpu.memory_space<smem>>
    %524 = vector.broadcast %523 : f32 to vector<12x124xf32>
    %525 = arith.mulf %514, %524 : vector<12x124xf32>
    %526 = arith.addf %513, %525 : vector<12x124xf32>
    %527 = vector.extract_strided_slice %500 {offsets = [2, 0], sizes = [12, 124], strides = [1, 1]} : vector<14x124xf32> to vector<12x124xf32>
    %c15_43 = arith.constant 15 : index
    %528 = memref.load %arg4[%c15_43] : memref<81xf32, #tpu.memory_space<smem>>
    %529 = vector.broadcast %528 : f32 to vector<12x124xf32>
    %530 = arith.mulf %527, %529 : vector<12x124xf32>
    %531 = arith.addf %518, %530 : vector<12x124xf32>
    %c42_44 = arith.constant 42 : index
    %532 = memref.load %arg4[%c42_44] : memref<81xf32, #tpu.memory_space<smem>>
    %533 = vector.broadcast %532 : f32 to vector<12x124xf32>
    %534 = arith.mulf %527, %533 : vector<12x124xf32>
    %535 = arith.addf %522, %534 : vector<12x124xf32>
    %c69_45 = arith.constant 69 : index
    %536 = memref.load %arg4[%c69_45] : memref<81xf32, #tpu.memory_space<smem>>
    %537 = vector.broadcast %536 : f32 to vector<12x124xf32>
    %538 = arith.mulf %527, %537 : vector<12x124xf32>
    %539 = arith.addf %526, %538 : vector<12x124xf32>
    %540 = vector.extract_strided_slice %369 {offsets = [0, 1], sizes = [14, 124], strides = [1, 1]} : vector<14x126xf32> to vector<14x124xf32>
    %541 = vector.extract_strided_slice %540 {offsets = [0, 0], sizes = [12, 124], strides = [1, 1]} : vector<14x124xf32> to vector<12x124xf32>
    %c10_46 = arith.constant 10 : index
    %542 = memref.load %arg4[%c10_46] : memref<81xf32, #tpu.memory_space<smem>>
    %543 = vector.broadcast %542 : f32 to vector<12x124xf32>
    %544 = arith.mulf %541, %543 : vector<12x124xf32>
    %545 = arith.addf %531, %544 : vector<12x124xf32>
    %c37_47 = arith.constant 37 : index
    %546 = memref.load %arg4[%c37_47] : memref<81xf32, #tpu.memory_space<smem>>
    %547 = vector.broadcast %546 : f32 to vector<12x124xf32>
    %548 = arith.mulf %541, %547 : vector<12x124xf32>
    %549 = arith.addf %535, %548 : vector<12x124xf32>
    %c64_48 = arith.constant 64 : index
    %550 = memref.load %arg4[%c64_48] : memref<81xf32, #tpu.memory_space<smem>>
    %551 = vector.broadcast %550 : f32 to vector<12x124xf32>
    %552 = arith.mulf %541, %551 : vector<12x124xf32>
    %553 = arith.addf %539, %552 : vector<12x124xf32>
    %554 = vector.extract_strided_slice %540 {offsets = [1, 0], sizes = [12, 124], strides = [1, 1]} : vector<14x124xf32> to vector<12x124xf32>
    %c13_49 = arith.constant 13 : index
    %555 = memref.load %arg4[%c13_49] : memref<81xf32, #tpu.memory_space<smem>>
    %556 = vector.broadcast %555 : f32 to vector<12x124xf32>
    %557 = arith.mulf %554, %556 : vector<12x124xf32>
    %558 = arith.addf %545, %557 : vector<12x124xf32>
    %c40_50 = arith.constant 40 : index
    %559 = memref.load %arg4[%c40_50] : memref<81xf32, #tpu.memory_space<smem>>
    %560 = vector.broadcast %559 : f32 to vector<12x124xf32>
    %561 = arith.mulf %554, %560 : vector<12x124xf32>
    %562 = arith.addf %549, %561 : vector<12x124xf32>
    %c67_51 = arith.constant 67 : index
    %563 = memref.load %arg4[%c67_51] : memref<81xf32, #tpu.memory_space<smem>>
    %564 = vector.broadcast %563 : f32 to vector<12x124xf32>
    %565 = arith.mulf %554, %564 : vector<12x124xf32>
    %566 = arith.addf %553, %565 : vector<12x124xf32>
    %567 = vector.extract_strided_slice %540 {offsets = [2, 0], sizes = [12, 124], strides = [1, 1]} : vector<14x124xf32> to vector<12x124xf32>
    %c16_52 = arith.constant 16 : index
    %568 = memref.load %arg4[%c16_52] : memref<81xf32, #tpu.memory_space<smem>>
    %569 = vector.broadcast %568 : f32 to vector<12x124xf32>
    %570 = arith.mulf %567, %569 : vector<12x124xf32>
    %571 = arith.addf %558, %570 : vector<12x124xf32>
    %c43_53 = arith.constant 43 : index
    %572 = memref.load %arg4[%c43_53] : memref<81xf32, #tpu.memory_space<smem>>
    %573 = vector.broadcast %572 : f32 to vector<12x124xf32>
    %574 = arith.mulf %567, %573 : vector<12x124xf32>
    %575 = arith.addf %562, %574 : vector<12x124xf32>
    %c70_54 = arith.constant 70 : index
    %576 = memref.load %arg4[%c70_54] : memref<81xf32, #tpu.memory_space<smem>>
    %577 = vector.broadcast %576 : f32 to vector<12x124xf32>
    %578 = arith.mulf %567, %577 : vector<12x124xf32>
    %579 = arith.addf %566, %578 : vector<12x124xf32>
    %580 = vector.extract_strided_slice %369 {offsets = [0, 2], sizes = [14, 124], strides = [1, 1]} : vector<14x126xf32> to vector<14x124xf32>
    %581 = vector.extract_strided_slice %580 {offsets = [0, 0], sizes = [12, 124], strides = [1, 1]} : vector<14x124xf32> to vector<12x124xf32>
    %c11_55 = arith.constant 11 : index
    %582 = memref.load %arg4[%c11_55] : memref<81xf32, #tpu.memory_space<smem>>
    %583 = vector.broadcast %582 : f32 to vector<12x124xf32>
    %584 = arith.mulf %581, %583 : vector<12x124xf32>
    %585 = arith.addf %571, %584 : vector<12x124xf32>
    %c38_56 = arith.constant 38 : index
    %586 = memref.load %arg4[%c38_56] : memref<81xf32, #tpu.memory_space<smem>>
    %587 = vector.broadcast %586 : f32 to vector<12x124xf32>
    %588 = arith.mulf %581, %587 : vector<12x124xf32>
    %589 = arith.addf %575, %588 : vector<12x124xf32>
    %c65_57 = arith.constant 65 : index
    %590 = memref.load %arg4[%c65_57] : memref<81xf32, #tpu.memory_space<smem>>
    %591 = vector.broadcast %590 : f32 to vector<12x124xf32>
    %592 = arith.mulf %581, %591 : vector<12x124xf32>
    %593 = arith.addf %579, %592 : vector<12x124xf32>
    %594 = vector.extract_strided_slice %580 {offsets = [1, 0], sizes = [12, 124], strides = [1, 1]} : vector<14x124xf32> to vector<12x124xf32>
    %c14_58 = arith.constant 14 : index
    %595 = memref.load %arg4[%c14_58] : memref<81xf32, #tpu.memory_space<smem>>
    %596 = vector.broadcast %595 : f32 to vector<12x124xf32>
    %597 = arith.mulf %594, %596 : vector<12x124xf32>
    %598 = arith.addf %585, %597 : vector<12x124xf32>
    %c41_59 = arith.constant 41 : index
    %599 = memref.load %arg4[%c41_59] : memref<81xf32, #tpu.memory_space<smem>>
    %600 = vector.broadcast %599 : f32 to vector<12x124xf32>
    %601 = arith.mulf %594, %600 : vector<12x124xf32>
    %602 = arith.addf %589, %601 : vector<12x124xf32>
    %c68_60 = arith.constant 68 : index
    %603 = memref.load %arg4[%c68_60] : memref<81xf32, #tpu.memory_space<smem>>
    %604 = vector.broadcast %603 : f32 to vector<12x124xf32>
    %605 = arith.mulf %594, %604 : vector<12x124xf32>
    %606 = arith.addf %593, %605 : vector<12x124xf32>
    %607 = vector.extract_strided_slice %580 {offsets = [2, 0], sizes = [12, 124], strides = [1, 1]} : vector<14x124xf32> to vector<12x124xf32>
    %c17_61 = arith.constant 17 : index
    %608 = memref.load %arg4[%c17_61] : memref<81xf32, #tpu.memory_space<smem>>
    %609 = vector.broadcast %608 : f32 to vector<12x124xf32>
    %610 = arith.mulf %607, %609 : vector<12x124xf32>
    %611 = arith.addf %598, %610 : vector<12x124xf32>
    %c44_62 = arith.constant 44 : index
    %612 = memref.load %arg4[%c44_62] : memref<81xf32, #tpu.memory_space<smem>>
    %613 = vector.broadcast %612 : f32 to vector<12x124xf32>
    %614 = arith.mulf %607, %613 : vector<12x124xf32>
    %615 = arith.addf %602, %614 : vector<12x124xf32>
    %c71_63 = arith.constant 71 : index
    %616 = memref.load %arg4[%c71_63] : memref<81xf32, #tpu.memory_space<smem>>
    %617 = vector.broadcast %616 : f32 to vector<12x124xf32>
    %618 = arith.mulf %607, %617 : vector<12x124xf32>
    %619 = arith.addf %606, %618 : vector<12x124xf32>
    %620 = vector.extract_strided_slice %373 {offsets = [0, 0], sizes = [14, 124], strides = [1, 1]} : vector<14x126xf32> to vector<14x124xf32>
    %621 = vector.extract_strided_slice %620 {offsets = [0, 0], sizes = [12, 124], strides = [1, 1]} : vector<14x124xf32> to vector<12x124xf32>
    %c18_64 = arith.constant 18 : index
    %622 = memref.load %arg4[%c18_64] : memref<81xf32, #tpu.memory_space<smem>>
    %623 = vector.broadcast %622 : f32 to vector<12x124xf32>
    %624 = arith.mulf %621, %623 : vector<12x124xf32>
    %625 = arith.addf %611, %624 : vector<12x124xf32>
    %c45_65 = arith.constant 45 : index
    %626 = memref.load %arg4[%c45_65] : memref<81xf32, #tpu.memory_space<smem>>
    %627 = vector.broadcast %626 : f32 to vector<12x124xf32>
    %628 = arith.mulf %621, %627 : vector<12x124xf32>
    %629 = arith.addf %615, %628 : vector<12x124xf32>
    %c72_66 = arith.constant 72 : index
    %630 = memref.load %arg4[%c72_66] : memref<81xf32, #tpu.memory_space<smem>>
    %631 = vector.broadcast %630 : f32 to vector<12x124xf32>
    %632 = arith.mulf %621, %631 : vector<12x124xf32>
    %633 = arith.addf %619, %632 : vector<12x124xf32>
    %634 = vector.extract_strided_slice %620 {offsets = [1, 0], sizes = [12, 124], strides = [1, 1]} : vector<14x124xf32> to vector<12x124xf32>
    %c21_67 = arith.constant 21 : index
    %635 = memref.load %arg4[%c21_67] : memref<81xf32, #tpu.memory_space<smem>>
    %636 = vector.broadcast %635 : f32 to vector<12x124xf32>
    %637 = arith.mulf %634, %636 : vector<12x124xf32>
    %638 = arith.addf %625, %637 : vector<12x124xf32>
    %c48_68 = arith.constant 48 : index
    %639 = memref.load %arg4[%c48_68] : memref<81xf32, #tpu.memory_space<smem>>
    %640 = vector.broadcast %639 : f32 to vector<12x124xf32>
    %641 = arith.mulf %634, %640 : vector<12x124xf32>
    %642 = arith.addf %629, %641 : vector<12x124xf32>
    %c75_69 = arith.constant 75 : index
    %643 = memref.load %arg4[%c75_69] : memref<81xf32, #tpu.memory_space<smem>>
    %644 = vector.broadcast %643 : f32 to vector<12x124xf32>
    %645 = arith.mulf %634, %644 : vector<12x124xf32>
    %646 = arith.addf %633, %645 : vector<12x124xf32>
    %647 = vector.extract_strided_slice %620 {offsets = [2, 0], sizes = [12, 124], strides = [1, 1]} : vector<14x124xf32> to vector<12x124xf32>
    %c24_70 = arith.constant 24 : index
    %648 = memref.load %arg4[%c24_70] : memref<81xf32, #tpu.memory_space<smem>>
    %649 = vector.broadcast %648 : f32 to vector<12x124xf32>
    %650 = arith.mulf %647, %649 : vector<12x124xf32>
    %651 = arith.addf %638, %650 : vector<12x124xf32>
    %c51_71 = arith.constant 51 : index
    %652 = memref.load %arg4[%c51_71] : memref<81xf32, #tpu.memory_space<smem>>
    %653 = vector.broadcast %652 : f32 to vector<12x124xf32>
    %654 = arith.mulf %647, %653 : vector<12x124xf32>
    %655 = arith.addf %642, %654 : vector<12x124xf32>
    %c78_72 = arith.constant 78 : index
    %656 = memref.load %arg4[%c78_72] : memref<81xf32, #tpu.memory_space<smem>>
    %657 = vector.broadcast %656 : f32 to vector<12x124xf32>
    %658 = arith.mulf %647, %657 : vector<12x124xf32>
    %659 = arith.addf %646, %658 : vector<12x124xf32>
    %660 = vector.extract_strided_slice %373 {offsets = [0, 1], sizes = [14, 124], strides = [1, 1]} : vector<14x126xf32> to vector<14x124xf32>
    %661 = vector.extract_strided_slice %660 {offsets = [0, 0], sizes = [12, 124], strides = [1, 1]} : vector<14x124xf32> to vector<12x124xf32>
    %c19_73 = arith.constant 19 : index
    %662 = memref.load %arg4[%c19_73] : memref<81xf32, #tpu.memory_space<smem>>
    %663 = vector.broadcast %662 : f32 to vector<12x124xf32>
    %664 = arith.mulf %661, %663 : vector<12x124xf32>
    %665 = arith.addf %651, %664 : vector<12x124xf32>
    %c46_74 = arith.constant 46 : index
    %666 = memref.load %arg4[%c46_74] : memref<81xf32, #tpu.memory_space<smem>>
    %667 = vector.broadcast %666 : f32 to vector<12x124xf32>
    %668 = arith.mulf %661, %667 : vector<12x124xf32>
    %669 = arith.addf %655, %668 : vector<12x124xf32>
    %c73_75 = arith.constant 73 : index
    %670 = memref.load %arg4[%c73_75] : memref<81xf32, #tpu.memory_space<smem>>
    %671 = vector.broadcast %670 : f32 to vector<12x124xf32>
    %672 = arith.mulf %661, %671 : vector<12x124xf32>
    %673 = arith.addf %659, %672 : vector<12x124xf32>
    %674 = vector.extract_strided_slice %660 {offsets = [1, 0], sizes = [12, 124], strides = [1, 1]} : vector<14x124xf32> to vector<12x124xf32>
    %c22_76 = arith.constant 22 : index
    %675 = memref.load %arg4[%c22_76] : memref<81xf32, #tpu.memory_space<smem>>
    %676 = vector.broadcast %675 : f32 to vector<12x124xf32>
    %677 = arith.mulf %674, %676 : vector<12x124xf32>
    %678 = arith.addf %665, %677 : vector<12x124xf32>
    %c49_77 = arith.constant 49 : index
    %679 = memref.load %arg4[%c49_77] : memref<81xf32, #tpu.memory_space<smem>>
    %680 = vector.broadcast %679 : f32 to vector<12x124xf32>
    %681 = arith.mulf %674, %680 : vector<12x124xf32>
    %682 = arith.addf %669, %681 : vector<12x124xf32>
    %c76_78 = arith.constant 76 : index
    %683 = memref.load %arg4[%c76_78] : memref<81xf32, #tpu.memory_space<smem>>
    %684 = vector.broadcast %683 : f32 to vector<12x124xf32>
    %685 = arith.mulf %674, %684 : vector<12x124xf32>
    %686 = arith.addf %673, %685 : vector<12x124xf32>
    %687 = vector.extract_strided_slice %660 {offsets = [2, 0], sizes = [12, 124], strides = [1, 1]} : vector<14x124xf32> to vector<12x124xf32>
    %c25_79 = arith.constant 25 : index
    %688 = memref.load %arg4[%c25_79] : memref<81xf32, #tpu.memory_space<smem>>
    %689 = vector.broadcast %688 : f32 to vector<12x124xf32>
    %690 = arith.mulf %687, %689 : vector<12x124xf32>
    %691 = arith.addf %678, %690 : vector<12x124xf32>
    %c52_80 = arith.constant 52 : index
    %692 = memref.load %arg4[%c52_80] : memref<81xf32, #tpu.memory_space<smem>>
    %693 = vector.broadcast %692 : f32 to vector<12x124xf32>
    %694 = arith.mulf %687, %693 : vector<12x124xf32>
    %695 = arith.addf %682, %694 : vector<12x124xf32>
    %c79_81 = arith.constant 79 : index
    %696 = memref.load %arg4[%c79_81] : memref<81xf32, #tpu.memory_space<smem>>
    %697 = vector.broadcast %696 : f32 to vector<12x124xf32>
    %698 = arith.mulf %687, %697 : vector<12x124xf32>
    %699 = arith.addf %686, %698 : vector<12x124xf32>
    %700 = vector.extract_strided_slice %373 {offsets = [0, 2], sizes = [14, 124], strides = [1, 1]} : vector<14x126xf32> to vector<14x124xf32>
    %701 = vector.extract_strided_slice %700 {offsets = [0, 0], sizes = [12, 124], strides = [1, 1]} : vector<14x124xf32> to vector<12x124xf32>
    %c20_82 = arith.constant 20 : index
    %702 = memref.load %arg4[%c20_82] : memref<81xf32, #tpu.memory_space<smem>>
    %703 = vector.broadcast %702 : f32 to vector<12x124xf32>
    %704 = arith.mulf %701, %703 : vector<12x124xf32>
    %705 = arith.addf %691, %704 : vector<12x124xf32>
    %c47_83 = arith.constant 47 : index
    %706 = memref.load %arg4[%c47_83] : memref<81xf32, #tpu.memory_space<smem>>
    %707 = vector.broadcast %706 : f32 to vector<12x124xf32>
    %708 = arith.mulf %701, %707 : vector<12x124xf32>
    %709 = arith.addf %695, %708 : vector<12x124xf32>
    %c74_84 = arith.constant 74 : index
    %710 = memref.load %arg4[%c74_84] : memref<81xf32, #tpu.memory_space<smem>>
    %711 = vector.broadcast %710 : f32 to vector<12x124xf32>
    %712 = arith.mulf %701, %711 : vector<12x124xf32>
    %713 = arith.addf %699, %712 : vector<12x124xf32>
    %714 = vector.extract_strided_slice %700 {offsets = [1, 0], sizes = [12, 124], strides = [1, 1]} : vector<14x124xf32> to vector<12x124xf32>
    %c23_85 = arith.constant 23 : index
    %715 = memref.load %arg4[%c23_85] : memref<81xf32, #tpu.memory_space<smem>>
    %716 = vector.broadcast %715 : f32 to vector<12x124xf32>
    %717 = arith.mulf %714, %716 : vector<12x124xf32>
    %718 = arith.addf %705, %717 : vector<12x124xf32>
    %c50_86 = arith.constant 50 : index
    %719 = memref.load %arg4[%c50_86] : memref<81xf32, #tpu.memory_space<smem>>
    %720 = vector.broadcast %719 : f32 to vector<12x124xf32>
    %721 = arith.mulf %714, %720 : vector<12x124xf32>
    %722 = arith.addf %709, %721 : vector<12x124xf32>
    %c77_87 = arith.constant 77 : index
    %723 = memref.load %arg4[%c77_87] : memref<81xf32, #tpu.memory_space<smem>>
    %724 = vector.broadcast %723 : f32 to vector<12x124xf32>
    %725 = arith.mulf %714, %724 : vector<12x124xf32>
    %726 = arith.addf %713, %725 : vector<12x124xf32>
    %727 = vector.extract_strided_slice %700 {offsets = [2, 0], sizes = [12, 124], strides = [1, 1]} : vector<14x124xf32> to vector<12x124xf32>
    %c26_88 = arith.constant 26 : index
    %728 = memref.load %arg4[%c26_88] : memref<81xf32, #tpu.memory_space<smem>>
    %729 = vector.broadcast %728 : f32 to vector<12x124xf32>
    %730 = arith.mulf %727, %729 : vector<12x124xf32>
    %731 = arith.addf %718, %730 : vector<12x124xf32>
    %c53_89 = arith.constant 53 : index
    %732 = memref.load %arg4[%c53_89] : memref<81xf32, #tpu.memory_space<smem>>
    %733 = vector.broadcast %732 : f32 to vector<12x124xf32>
    %734 = arith.mulf %727, %733 : vector<12x124xf32>
    %735 = arith.addf %722, %734 : vector<12x124xf32>
    %c80_90 = arith.constant 80 : index
    %736 = memref.load %arg4[%c80_90] : memref<81xf32, #tpu.memory_space<smem>>
    %737 = vector.broadcast %736 : f32 to vector<12x124xf32>
    %738 = arith.mulf %727, %737 : vector<12x124xf32>
    %739 = arith.addf %726, %738 : vector<12x124xf32>
    %c0_91 = arith.constant 0 : index
    %c0_92 = arith.constant 0 : index
    %c0_93 = arith.constant 0 : index
    %c0_94 = arith.constant 0 : index
    %740 = vector.load %arg6[%c0_91, %c0_92, %c0_93, %c0_94] : memref<1x3x12x124xf32, #tpu.memory_space<vmem>>, vector<1x1x12x124xf32>
    %741 = vector.shape_cast %740 : vector<1x1x12x124xf32> to vector<12x124xf32>
    %742 = vector.shape_cast %731 : vector<12x124xf32> to vector<1x1x12x124xf32>
    tpu.vector_store %arg6[%c0_91, %c0_92, %c0_93, %c0_94], %742 {strides = array<i32>} : memref<1x3x12x124xf32, #tpu.memory_space<vmem>>, vector<1x1x12x124xf32>,
    %c0_95 = arith.constant 0 : index
    %c1_96 = arith.constant 1 : index
    %c0_97 = arith.constant 0 : index
    %c0_98 = arith.constant 0 : index
    %743 = vector.load %arg6[%c0_95, %c1_96, %c0_97, %c0_98] : memref<1x3x12x124xf32, #tpu.memory_space<vmem>>, vector<1x1x12x124xf32>
    %744 = vector.shape_cast %743 : vector<1x1x12x124xf32> to vector<12x124xf32>
    %745 = vector.shape_cast %735 : vector<12x124xf32> to vector<1x1x12x124xf32>
    tpu.vector_store %arg6[%c0_95, %c1_96, %c0_97, %c0_98], %745 {strides = array<i32>} : memref<1x3x12x124xf32, #tpu.memory_space<vmem>>, vector<1x1x12x124xf32>,
    %c0_99 = arith.constant 0 : index
    %c2_100 = arith.constant 2 : index
    %c0_101 = arith.constant 0 : index
    %c0_102 = arith.constant 0 : index
    %746 = vector.load %arg6[%c0_99, %c2_100, %c0_101, %c0_102] : memref<1x3x12x124xf32, #tpu.memory_space<vmem>>, vector<1x1x12x124xf32>
    %747 = vector.shape_cast %746 : vector<1x1x12x124xf32> to vector<12x124xf32>
    %748 = vector.shape_cast %739 : vector<12x124xf32> to vector<1x1x12x124xf32>
    tpu.vector_store %arg6[%c0_99, %c2_100, %c0_101, %c0_102], %748 {strides = array<i32>} : memref<1x3x12x124xf32, #tpu.memory_space<vmem>>, vector<1x1x12x124xf32>,
    return
  }
  func.func @transform_0(%arg0: i32) -> (i32, i32, i32, i32) {
    %c0_i32 = arith.constant 0 : i32
    %c0_i32_0 = arith.constant 0 : i32
    %c0_i32_1 = arith.constant 0 : i32
    %c0_i32_2 = arith.constant 0 : i32
    return %arg0, %c0_i32, %c0_i32_0, %c0_i32_1 : i32, i32, i32, i32
  }
  func.func @transform_1(%arg0: i32) -> i32 {
    %c0_i32 = arith.constant 0 : i32
    %c0_i32_0 = arith.constant 0 : i32
    return %c0_i32 : i32
  }
  func.func @transform_2(%arg0: i32) -> i32 {
    %c0_i32 = arith.constant 0 : i32
    %c0_i32_0 = arith.constant 0 : i32
    return %c0_i32 : i32
  }
  func.func @transform_3(%arg0: i32) -> i32 {
    %c0_i32 = arith.constant 0 : i32
    %c0_i32_0 = arith.constant 0 : i32
    return %c0_i32 : i32
  }
  func.func @transform_4(%arg0: i32) -> i32 {
    %c0_i32 = arith.constant 0 : i32
    %c0_i32_0 = arith.constant 0 : i32
    return %c0_i32 : i32
  }
  func.func @transform_5(%arg0: i32) -> (i32, i32, i32, i32) {
    %c0_i32 = arith.constant 0 : i32
    %c0_i32_0 = arith.constant 0 : i32
    %c0_i32_1 = arith.constant 0 : i32
    %c0_i32_2 = arith.constant 0 : i32
    return %arg0, %c0_i32, %c0_i32_0, %c0_i32_1 : i32, i32, i32, i32
  }
}

</mosaic_0001>

<bundles_post_ra>
// kernel: model_forward.1
= control target key start
LH: loop header
LB: loop body
LE: loop exit
PB: predicated region body
PF: predicated region fallthrough
CT: control target
= control target key end

     0   :  { %s5118_s0 = inlined_call_operand.vmem [shape: f32[1,3,16,128], index: 0, kind: input, shape index: {}]   ;;  %s5119_s1 = inlined_call_operand.vmem [shape: f32[81], index: 1, kind: input, shape index: {}]   ;;  %s5120_s2 = inlined_call_operand.vmem [shape: f32[3], index: 2, kind: input, shape index: {}]   ;;  %s5121_s3 = inlined_call_operand.vmem [shape: f32[81], index: 3, kind: input, shape index: {}]   ;;  %s5122_s4 = inlined_call_operand.vmem [shape: f32[3], index: 4, kind: input, shape index: {}]   ;;  %s5123_s5 = inlined_call_operand.vmem [shape: f32[1,3,12,124], index: 5, kind: output, shape index: {}]  }
   0x1   :  { %5229 = sst [smem:[#allocation62_spill]] %s5123_s5 }
   0x2   :  { %10 = vsyncpa [#allocation3], 0 }
   0x3   :  { %11 = vsyncpa [#allocation5], 0  ;;  %s31_s20 = sshll.u32 %s5120_s2, 4  ;;  %s32_s20 = int_to_ptr.vmem [resolvable:$true] %s31_s20 }
   0x4   :  { %12 = vsyncpa [#allocation8], 0  ;;  %s21_s23 = sshll.u32 %s5119_s1, 4  ;;  %s2583_s24 = scalar_lea.vmem %s32_s20, 16  ;;  %s22_s23 = int_to_ptr.vmem [resolvable:$true] %s21_s23 }
   0x5   :  { %p2584_p0 = scmp.ne.s32.totalorder %s32_s20, %s2583_s24  ;;  %p2588_p1 = scmp.lt.s32.totalorder %s32_s20, %s32_s20 }
   0x6   :  { %p2589_p2 = scmp.lt.s32.totalorder %s2583_s24, %s2583_s24 }
   0x8   :  { %p2590_p3 = por %p2589_p2, %p2588_p1 }
   0xa   :  { %p2591_p4 = pnand %p2590_p3, %p2584_p0 }
   0xc   :  { %2594 = shalt.err (!%p2591_p4)
}
   0xd   :  { %s2637_s25 = smov [#allocation4]   ;;  %s2595_s26 = scalar_lea.vmem %s22_s23, 16 }
   0xe   :  { %34 = dma.vmem_to_smem %s32_s20, 16, %s2637_s25, [#allocation5]  }
   0xf   :  { %p2596_p5 = scmp.ne.s32.totalorder %s22_s23, %s2595_s26  ;;  %p2600_p6 = scmp.lt.s32.totalorder %s22_s23, %s22_s23 }
  0x10   :  { %p2601_p7 = scmp.lt.s32.totalorder %s2595_s26, %s2595_s26 }
  0x12   :  { %p2602_p8 = por %p2601_p7, %p2600_p6 }
  0x14   :  { %p2603_p9 = pnand %p2602_p8, %p2596_p5 }
  0x16   :  { %2606 = shalt.err (!%p2603_p9)
}
  0x17   :  { %s2638_s2 = smov [#allocation2]   ;;  %s41_s28 = sshll.u32 %s5121_s3, 4  ;;  %s42_s28 = int_to_ptr.vmem [resolvable:$true] %s41_s28 }
  0x18   :  { %24 = dma.vmem_to_smem %s22_s23, 16, %s2638_s2, [#allocation3]  }
  0x19   :  { %s51_s6 = sshll.u32 %s5122_s4, 4  ;;  %s2607_s7 = scalar_lea.vmem %s42_s28, 16  ;;  %s52_s6 = int_to_ptr.vmem [resolvable:$true] %s51_s6 }
  0x1a   :  { %p2608_p10 = scmp.ne.s32.totalorder %s42_s28, %s2607_s7  ;;  %p2612_p11 = scmp.lt.s32.totalorder %s42_s28, %s42_s28 }
  0x1b   :  { %p2613_p12 = scmp.lt.s32.totalorder %s2607_s7, %s2607_s7 }
  0x1d   :  { %p2614_p13 = por %p2613_p12, %p2612_p11 }
  0x1f   :  { %p2615_p0 = pnand %p2614_p13, %p2608_p10 }
  0x21   :  { %2618 = shalt.err (!%p2615_p0)
}
  0x22   :  { %s2639_s8 = smov [#allocation6]   ;;  %s2619_s9 = scalar_lea.vmem %s52_s6, 16 }
  0x23   :  { %44 = dma.vmem_to_smem %s42_s28, 16, %s2639_s8, [#allocation5]  }
  0x24   :  { %p2620_p1 = scmp.ne.s32.totalorder %s52_s6, %s2619_s9  ;;  %p2624_p2 = scmp.lt.s32.totalorder %s52_s6, %s52_s6 }
  0x25   :  { %p2625_p3 = scmp.lt.s32.totalorder %s2619_s9, %s2619_s9 }
  0x27   :  { %p2626_p4 = por %p2625_p3, %p2624_p2 }
  0x29   :  { %p2627_p5 = pnand %p2626_p4, %p2620_p1 }
  0x2b   :  { %2630 = shalt.err (!%p2627_p5)
}
  0x2c   :  { %s2640_s3 = smov [#allocation7]  }
  0x2d   :  { %54 = dma.vmem_to_smem %s52_s6, 16, %s2640_s3, [#allocation8]  }
  0x2e   :  { %2631 = dma.done.wait [#allocation3], 16  }
  0x2f   :  { %2632 = vsyncadd [#allocation3], 4294967280 }
  0x30   :  { %2633 = dma.done.wait [#allocation5], 32  }
  0x31   :  { %2634 = vsyncadd [#allocation5], 4294967264 }
  0x32   :  { %2635 = dma.done.wait [#allocation8], 16  }
  0x33   :  { %2636 = vsyncadd [#allocation8], 4294967280 }
  0x34   :  { %67 = sfence }
  0x35   :  { %s2420_s4 = sld [smem:[#allocation2 + $0x1c]]  ;;  %s2419_s10 = sld [smem:[#allocation2 + $0x1]]  ;;  %v2688_v0 = vld [vmem:[%s5118_s0] sm:$0xff]  ;;  %v2693_v1 = vld [vmem:[%s5118_s0 + $0x8] sm:$0xff]  ;;  %vm104_vm0 = vcmask 1046528   ;;  %vm144_vm1 = vcmask 1045504  }
  0x36   :  { %s2421_s11 = sld [smem:[#allocation2 + $0x37]]  ;;  %s2422_s12 = sld [smem:[#allocation2 + $0x4]]  ;;  %vm2394_vm2 = vcmask 1010688   ;;  %vm2392_vm3 = vcmask 1014784  }
  0x37   :  { %s2423_s15 = sld [smem:[#allocation2 + $0x1f]]  ;;  %s2695_s18 = sld [smem:[#allocation2 + $0x3a]] }
  0x38   :  { %s5143_s19 = smov 127   ;;  %s2425_s20 = sld [smem:[#allocation2 + $0x7]] }
  0x39   :  { %s2426_s21 = sld [smem:[#allocation2 + $0x22]]  ;;  %s2427_s22 = sld [smem:[#allocation2 + $0x3d]] }
  0x3a   :  { %s2728_s23 = sld [smem:[#allocation2 + $0x2]]  ;;  %s2731_s24 = sld [smem:[#allocation2 + $0x1d]] }
  0x3b   :  { %v193_v2 = vstv %s2420_s4  ;;  %v179_v4 = vstv %s2419_s10  ;;  %s2733_s25 = sld [smem:[#allocation2 + $0x38]]  ;;  %s2738_s26 = sld [smem:[#allocation2 + $0x5]] }
  0x3c   :  { %v194_v3 = vmul.f32 %v193_v2, %v2688_v0  ;;  %v180_v5 = vmul.f32 %v179_v4, %v2688_v0  ;;  %v195_v6 = vmul.f32 %v193_v2, %v2693_v1  ;;  %v221_v7 = vstv %s2422_s12  ;;  %s2741_s2 = sld [smem:[#allocation2 + $0x20]]  ;;  %s2743_s1 = sld [smem:[#allocation4 + $0x1]] }
  0x3d   :  { %v181_v8 = vmul.f32 %v179_v4, %v2693_v1  ;;  %v207_v9 = vstv %s2421_s11  ;;  %v222_v10 = vmul.f32 %v221_v7, %v2688_v0  ;;  %v223_v11 = vmul.f32 %v221_v7, %v2693_v1  ;;  %s2746_s27 = sld [smem:[#allocation2 + $0x1b]]  ;;  %s2748_s28 = sld [smem:[#allocation2 + $0x1e]] }
  0x3e   :  { %198 = vrot.lane.b32.xlu1 %v194_v3, %s5143_s19  ;;  %184 = vrot.lane.b32.xlu0 %v180_v5, %s5143_s19  ;;  %v238_v12 = vstv %s2423_s15  ;;  %v209_v13 = vmul.f32 %v207_v9, %v2693_v1  ;;  %v208_v14 = vmul.f32 %v207_v9, %v2688_v0  ;;  %v255_v15 = vstv %s2695_s18  ;;  %s2751_s29 = sld [smem:[#allocation2 + $0x21]]  ;;  %s2753_s30 = sld [smem:[#allocation4]] }
  0x3f   :  { %v227_v16 = vrot.slane %v223_v11, 1  ;;  %v226_v17 = vrot.slane %v222_v10, 1  ;;  %v239_v18 = vmul.f32 %v238_v12, %v2688_v0  ;;  %v240_v19 = vmul.f32 %v238_v12, %v2693_v1  ;;  %s2757_s6 = sld [smem:[#allocation2]]  ;;  %s2759_s7 = sld [smem:[#allocation2 + $0x3]] }
  0x40   :  { %v257_v20 = vmul.f32 %v255_v15, %v2693_v1  ;;  %v256_v24 = vmul.f32 %v255_v15, %v2688_v0  ;;  %v272_v25 = vstv %s2425_s20  ;;  %v289_v27 = vstv %s2426_s21  ;;  %s2766_s8 = sld [smem:[#allocation2 + $0x6]]  ;;  %s2792_s9 = sld [smem:[#allocation2 + $0x3b]] }
  0x41   :  { %v228_v21 = vsel %vm104_vm0, %v226_v17, %v227_v16  ;;  %v244_v22 = vrot.slane %v240_v19, 1  ;;  %v243_v23 = vrot.slane %v239_v18, 1  ;;  %v273_v30 = vmul.f32 %v272_v25, %v2688_v0  ;;  %s5141_s3 = smov 126   ;;  %s2801_s4 = sld [smem:[#allocation2 + $0x8]] }
  0x42   :  { %200 = vrot.lane.b32.xlu1 %v195_v6, %s5143_s19  ;;  %186 = vrot.lane.b32.xlu0 %v181_v8, %s5143_s19  ;;  %v261_v26 = vrot.slane %v257_v20, 1  ;;  %v260_v29 = vrot.slane %v256_v24, 1  ;;  %v274_v31 = vmul.f32 %v272_v25, %v2693_v1  ;;  %v291_v32 = vmul.f32 %v289_v27, %v2693_v1  ;;  %s2808_s10 = sld [smem:[#allocation2 + $0x36]]  ;;  %s2815_s11 = sld [smem:[#allocation2 + $0x39]] }
  0x43   :  { %v245_v28 = vsel %vm104_vm0, %v243_v23, %v244_v22  ;;  %v277_v35 = vrot.slane %v273_v30, 2  ;;  %v290_v36 = vmul.f32 %v289_v27, %v2688_v0  ;;  %v306_v37 = vstv %s2427_s22  ;;  %s2833_s12 = sld [smem:[#allocation4 + $0x2]]  ;;  %s2835_s13 = sld [smem:[#allocation2 + $0x3c]] }
  0x44   :  { %v262_v33 = vsel %vm104_vm0, %v260_v29, %v261_v26  ;;  %v278_v34 = vrot.slane %v274_v31, 2  ;;  %v295_v38 = vrot.slane %v291_v32, 2  ;;  %v307_v41 = vmul.f32 %v306_v37, %v2688_v0  ;;  %s2838_s14 = sld [smem:[#allocation2 + $0x23]]  ;;  %s2868_s15 = sld [smem:[#allocation2 + $0x3e]] }
  0x45   :  { %v294_v40 = vrot.slane %v290_v36, 2  ;;  %v308_v42 = vmul.f32 %v306_v37, %v2693_v1  ;;  %v323_v46 = vstv %s2728_s23  ;;  %v337_v47 = vstv %s2731_s24  ;;  %s2878_s16 = sld [smem:[#allocation2 + $0x47]]  ;;  %s2922_s22 = sld [smem:[#allocation2 + $0xa]] }
  0x46   :  { %214 = vrot.lane.b32.xlu1 %v209_v13, %s5143_s19  ;;  %212 = vrot.lane.b32.xlu0 %v208_v14, %s5143_s19  ;;  %v279_v39 = vsel %vm144_vm1, %v277_v35, %v278_v34  ;;  %v311_v45 = vrot.slane %v307_v41, 2  ;;  %v351_v48 = vstv %s2733_s25  ;;  %v365_v50 = vstv %s2738_s26  ;;  %s2933_s23 = sld [smem:[#allocation2 + $0xd]]  ;;  %s2448_s25 = sld [smem:[#allocation2 + $0x40]] }
  0x47   :  { %v296_v43 = vsel %vm144_vm1, %v294_v40, %v295_v38  ;;  %v312_v44 = vrot.slane %v308_v42, 2  ;;  %v325_v51 = vmul.f32 %v323_v46, %v2693_v1  ;;  %v324_v52 = vmul.f32 %v323_v46, %v2688_v0  ;;  %s2936_s24 = sld [smem:[#allocation2 + $0x25]]  ;;  %s2450_s26 = sld [smem:[#allocation2 + $0x28]] }
  0x48   :  { %v339_v53 = vmul.f32 %v337_v47, %v2693_v1  ;;  %v338_v54 = vmul.f32 %v337_v47, %v2688_v0  ;;  %v353_v55 = vmul.f32 %v351_v48, %v2693_v1  ;;  %v382_v56 = vstv %s2741_s2  ;;  %s2944_s2 = sld [smem:[#allocation2 + $0x43]]  ;;  %s2458_s17 = sld [smem:[#allocation2 + $0xe]] }
  0x49   :  { %v313_v49 = vsel %vm144_vm1, %v311_v45, %v312_v44  ;;  %v2777_v57 = vmul.f32 %v365_v50, %v2688_v0  ;;  %v5137_v58 = vstv %s2743_s1  ;;  %v87_v59 = vstv %s2746_s27  ;;  %s2457_s18 = sld [smem:[#allocation2 + $0x41]]  ;;  %s2460_s21 = sld [smem:[#allocation2 + $0x44]] }
  0x4a   :  { %231 = vrot.lane.b32.xlu1 %v227_v16, %s5143_s19  ;;  %229 = vrot.lane.b32.xlu0 %v228_v21, %s5143_s19  ;;  %v113_v60 = vstv %s2748_s28  ;;  %v2783_v61 = vmul.f32 %v365_v50, %v2693_v1  ;;  %v153_v63 = vstv %s2751_s29  ;;  %v88_v2 = vmul.f32 %v87_v59, %v2688_v0  ;;  %s2440_s28 = sld [smem:[#allocation2 + $0xc]]  ;;  %s2950_s29 = sld [smem:[#allocation2 + $0xf]] }
  0x4b   :  { %v2786_v62 = vmul.f32 %v113_v60, %v2693_v1  ;;  %v2795_v3 = vmul.f32 %v153_v63, %v2693_v1  ;;  %v114_v4 = vmul.f32 %v113_v60, %v2688_v0  ;;  %v154_v5 = vmul.f32 %v153_v63, %v2688_v0  ;;  %s2459_s20 = sld [smem:[#allocation2 + $0x29]]  ;;  %s3224_s27 = sld [smem:[#allocation2 + $0x4f]] }
  0x4c   :  { %v75_v6 = vstv %s2753_s30  ;;  %v90_v8 = vadd.f32 %v88_v2, %v5137_v58  ;;  %v81_v9 = vstv %s2757_s6  ;;  %v99_v10 = vstv %s2759_s7  ;;  %s2958_s7 = sld [smem:[#allocation2 + $0x27]]  ;;  %s3229_s30 = sld [smem:[#allocation2 + $0x9]] }
  0x4d   :  { %v5134_v7 = vrot.slane %v2786_v62, 1  ;;  %v5131_v11 = vrot.slane %v2795_v3, 2  ;;  %v118_v12 = vrot.slane %v114_v4, 1  ;;  %v158_v13 = vrot.slane %v154_v5, 2  ;;  %s3236_s6 = sld [smem:[#allocation2 + $0x24]]  ;;  %s3740_s5 = sld [smem:[#allocation6 + $0x6]] }
  0x4e   :  { %248 = vrot.lane.b32.xlu1 %v244_v22, %s5143_s19  ;;  %246 = vrot.lane.b32.xlu0 %v245_v28, %s5143_s19  ;;  %v2813_v14 = vmul.f32 %v99_v10, %v2693_v1  ;;  %v384_v15 = vmul.f32 %v382_v56, %v2693_v1  ;;  %v139_v16 = vstv %s2766_s8  ;;  %v82_v17 = vmul.f32 %v81_v9, %v2688_v0  ;;  %s2960_s8 = sld [smem:[#allocation2 + $0x2a]] }
  0x4f   :  { %v100_v18 = vmul.f32 %v99_v10, %v2688_v0  ;;  %v120_v19 = vsel %vm104_vm0, %v118_v12, %v5134_v7  ;;  %v160_v20 = vsel %vm144_vm1, %v158_v13, %v5131_v11  ;;  %v2831_v22 = vmul.f32 %v139_v16, %v2693_v1 }
  0x50   :  { %v5136_v21 = vrot.slane %v2813_v14, 1  ;;  %v123_v23 = vadd.f32 %v120_v19, %v90_v8  ;;  %v84_v24 = vadd.f32 %v82_v17, %v75_v6  ;;  %v352_v27 = vmul.f32 %v351_v48, %v2688_v0 }
  0x51   :  { %v105_v25 = vrot.slane %v100_v18, 1  ;;  %v371_v28 = vrot.slane %v2783_v61, 1  ;;  %v383_v29 = vmul.f32 %v382_v56, %v2688_v0  ;;  %v5133_v30 = vrot.slane %v2831_v22, 2 }
  0x52   :  { %265 = vrot.lane.b32.xlu1 %v261_v26, %s5143_s19  ;;  %263 = vrot.lane.b32.xlu0 %v262_v33, %s5143_s19  ;;  %v140_v26 = vmul.f32 %v139_v16, %v2688_v0  ;;  %v370_v31 = vrot.slane %v2777_v57, 1  ;;  %v2849_v32 = vadd.f32 %v160_v20, %v123_v23  ;;  %v399_v35 = vstv %s2792_s9  ;;  %s2964_s9 = sld [smem:[#allocation2 + $0x10]] }
  0x53   :  { %v107_v33 = vsel %vm104_vm0, %v105_v25, %v5136_v21  ;;  %v388_v37 = vrot.slane %v384_v15, 1  ;;  %v387_v40 = vrot.slane %v383_v29, 1  ;;  %v5138_v42 = vstv %s2808_s10  ;;  %v2917_v25 = vld [vmem:[%s5118_s0 + $0x10] sm:$0xff]  ;;  %5290 = sst [smem:[#allocation44_spill]] %s3740_s5  ;;  %s3821_s5 = sld [smem:[#allocation6 + $0x16]] }
  0x54   :  { %v110_v36 = vadd.f32 %v107_v33, %v84_v24  ;;  %v400_v45 = vmul.f32 %v399_v35, %v2688_v0  ;;  %v401_v46 = vmul.f32 %v399_v35, %v2693_v1  ;;  %v5135_v47 = vstv %s2833_s12  ;;  %v2912_v24 = vld [vmem:[%s5118_s0 + $0x18] sm:$0xff] }
  0x55   :  { %v94_v50 = vmul.f32 %v5138_v42, %v2688_v0  ;;  %v450_v20 = vstv %s2868_s15  ;;  %v834_v23 = vstv %s2878_s16  ;;  %s2455_s15 = sld [smem:[#allocation2 + $0xb]]  ;;  %s2456_s16 = sld [smem:[#allocation2 + $0x26]] }
  0x56   :  { %282 = vrot.lane.b32.xlu1 %v278_v34, %s5143_s19  ;;  %280 = vrot.lane.b32.xlu0 %v279_v39, %s5143_s19  ;;  %v145_v34 = vrot.slane %v140_v26, 2  ;;  %v405_v61 = vrot.slane %v401_v46, 1  ;;  %v404_v63 = vrot.slane %v400_v45, 1  ;;  %v2926_v29 = vmul.f32 %v834_v23, %v2912_v24 }
  0x57   :  { %v96_v4 = vadd.f32 %v94_v50, %v5135_v47  ;;  %v452_v35 = vmul.f32 %v450_v20, %v2693_v1  ;;  %v605_v46 = vstv %s2933_s23  ;;  %v577_v50 = vstv %s2936_s24  ;;  %s2462_s23 = sld [smem:[#allocation2 + $0x2c]]  ;;  %s2473_s24 = sld [smem:[#allocation2 + $0x13]] }
  0x58   :  { %v147_v39 = vsel %vm144_vm1, %v145_v34, %v5133_v30  ;;  %v406_v16 = vsel %vm104_vm0, %v404_v63, %v405_v61  ;;  %v451_v34 = vmul.f32 %v450_v20, %v2688_v0 }
  0x59   :  { %v2861_v41 = vadd.f32 %v147_v39, %v110_v36  ;;  %v840_v36 = vrot.slane %v2926_v29, 2  ;;  %v456_v39 = vrot.slane %v452_v35, 2 }
  0x5a   :  { %299 = vrot.lane.b32.xlu1 %v295_v38, %s5143_s19  ;;  %297 = vrot.lane.b32.xlu0 %v296_v43, %s5143_s19  ;;  %v416_v38 = vstv %s2801_s4  ;;  %v126_v43 = vstv %s2815_s11  ;;  %s2973_s4 = sld [smem:[#allocation2 + $0x42]]  ;;  %s2980_s11 = sld [smem:[#allocation2 + $0x2b]] }
  0x5b   :  { %v2872_v48 = vmul.f32 %v126_v43, %v2693_v1  ;;  %v127_v57 = vmul.f32 %v126_v43, %v2688_v0  ;;  %v563_v43 = vstv %s2922_s22  ;;  %s3092_s22 = sld [smem:[#allocation2 + $0x11]] }
  0x5c   :  { %v565_v45 = vmul.f32 %v563_v43, %v2912_v24 }
  0x5d   :  { %v5132_v56 = vrot.slane %v2872_v48, 1  ;;  %v131_v5 = vrot.slane %v127_v57, 1  ;;  %v579_v57 = vmul.f32 %v577_v50, %v2912_v24 }
  0x5e   :  { %316 = vrot.lane.b32.xlu1 %v312_v44, %s5143_s19  ;;  %314 = vrot.lane.b32.xlu0 %v313_v49, %s5143_s19  ;;  %v372_v44 = vsel %vm104_vm0, %v370_v31, %v371_v28  ;;  %v166_v49 = vstv %s2835_s13  ;;  %s2987_s13 = sld [smem:[#allocation2 + $0x45]] }
  0x5f   :  { %v167_v60 = vmul.f32 %v166_v49, %v2688_v0  ;;  %v133_v13 = vsel %vm104_vm0, %v131_v5, %v5132_v56 }
  0x60   :  { %v136_v19 = vadd.f32 %v133_v13, %v96_v4 }
  0x61   :  { %v171_v8 = vrot.slane %v167_v60, 2  ;;  %v607_v60 = vmul.f32 %v605_v46, %v2912_v24 }
  0x62   :  { %330 = vrot.lane.b32.xlu1 %v325_v51, %s5141_s3  ;;  %328 = vrot.lane.b32.xlu0 %v324_v52, %s5141_s3  ;;  %v417_v51 = vmul.f32 %v416_v38, %v2688_v0  ;;  %v418_v52 = vmul.f32 %v416_v38, %v2693_v1 }
  0x64   :  { %v422_v17 = vrot.slane %v418_v52, 2  ;;  %v421_v18 = vrot.slane %v417_v51, 2  ;;  %v591_v51 = vstv %s2448_s25  ;;  %v606_v52 = vmul.f32 %v605_v46, %v2917_v25  ;;  %s2474_s25 = sld [smem:[#allocation2 + $0x2e]] }
  0x65   :  { %v593_v63 = vmul.f32 %v591_v51, %v2912_v24  ;;  %v592_v4 = vmul.f32 %v591_v51, %v2917_v25 }
  0x66   :  { %344 = vrot.lane.b32.xlu1 %v339_v53, %s5141_s3  ;;  %342 = vrot.lane.b32.xlu0 %v338_v54, %s5141_s3  ;;  %v433_v53 = vstv %s2838_s14  ;;  %v2885_v54 = vmul.f32 %v166_v49, %v2693_v1  ;;  %v423_v31 = vsel %vm144_vm1, %v421_v18, %v422_v17  ;;  %v564_v49 = vmul.f32 %v563_v43, %v2917_v25  ;;  %s3035_s14 = sld [smem:[#allocation2 + $0x46]] }
  0x67   :  { %v434_v10 = vmul.f32 %v433_v53, %v2688_v0  ;;  %v435_v12 = vmul.f32 %v433_v53, %v2693_v1  ;;  %v622_v53 = vstv %s2450_s26  ;;  %v610_v13 = vrot.slane %v606_v52, 1  ;;  %s2476_s26 = sld [smem:[#allocation2 + $0x16]] }
  0x68   :  { %v5130_v2 = vrot.slane %v2885_v54, 2  ;;  %v623_v5 = vmul.f32 %v622_v53, %v2917_v25  ;;  %v611_v18 = vrot.slane %v607_v60, 1 }
  0x69   :  { %v438_v33 = vrot.slane %v434_v10, 2 }
  0x6a   :  { %358 = vrot.lane.b32.xlu1 %v353_v55, %s5141_s3  ;;  %356 = vrot.lane.b32.xlu0 %v352_v27, %s5141_s3  ;;  %v389_v55 = vsel %vm104_vm0, %v387_v40, %v388_v37  ;;  %v173_v15 = vsel %vm144_vm1, %v171_v8, %v5130_v2  ;;  %v439_v27 = vrot.slane %v435_v12, 2  ;;  %v455_v40 = vrot.slane %v451_v34, 2 }
  0x6b   :  { %v2919_v26 = vadd.f32 %v173_v15, %v136_v19  ;;  %v624_v8 = vmul.f32 %v622_v53, %v2912_v24  ;;  %v485_v12 = vstv %s2440_s28  ;;  %v627_v51 = vrot.slane %v623_v5, 1  ;;  %s3516_s28 = sld [smem:[#allocation2 + $0x2d]] }
  0x6c   :  { %v440_v0 = vsel %vm144_vm1, %v438_v33, %v439_v27  ;;  %v486_v15 = vmul.f32 %v485_v12, %v2917_v25  ;;  %v537_v33 = vstv %s2960_s8  ;;  %v550_v5 = vstv %s2987_s13  ;;  %s3292_s13 = sld [smem:[#allocation2 + $0x17]]  ;;  %s3571_s8 = sld [smem:[#allocation6 + $0x1c]] }
  0x6d   :  { %v538_v43 = vmul.f32 %v537_v33, %v2917_v25 }
  0x6e   :  { %375 = vrot.lane.b32.xlu1 %v371_v28, %s5141_s3  ;;  %373 = vrot.lane.b32.xlu0 %v372_v44, %s5141_s3  ;;  %v835_v28 = vmul.f32 %v834_v23, %v2917_v25  ;;  %v457_v44 = vsel %vm144_vm1, %v455_v40, %v456_v39 }
  0x6f   :  { %v542_v52 = vrot.slane %v538_v43, 2 }
  0x72   :  { %392 = vrot.lane.b32.xlu1 %v388_v37, %s5141_s3  ;;  %390 = vrot.lane.b32.xlu0 %v389_v55, %s5141_s3  ;;  %v839_v37 = vrot.slane %v835_v28, 2  ;;  %v639_v55 = vstv %s2944_s2  ;;  %s3514_s2 = sld [smem:[#allocation2 + $0x4e]] }
  0x73   :  { %v2978_v10 = vmul.f32 %v639_v55, %v2917_v25  ;;  %v641_v19 = vmul.f32 %v639_v55, %v2912_v24  ;;  %v511_v55 = vstv %s2973_s4  ;;  %s3171_s4 = sld [smem:[#allocation2 + $0x4c]] }
  0x74   :  { %v2941_v38 = vsel %vm144_vm1, %v839_v37, %v840_v36 }
  0x76   :  { %409 = vrot.lane.b32.xlu1 %v405_v61, %s5141_s3  ;;  %407 = vrot.lane.b32.xlu0 %v406_v16, %s5141_s3  ;;  %v578_v61 = vmul.f32 %v577_v50, %v2917_v25  ;;  %v2984_v16 = vmul.f32 %v485_v12, %v2912_v24 }
  0x78   :  { %v5129_v28 = vrot.slane %v2984_v16, 1 }
  0x79   :  { %v1023_v56 = vstv %s3171_s4  ;;  %s3582_s4 = sld [smem:[#allocation6 + $0x4]] }
  0x7a   :  { %426 = vrot.lane.b32.xlu1 %v422_v17, %s5141_s3  ;;  %424 = vrot.lane.b32.xlu0 %v423_v31, %s5141_s3  ;;  %v524_v17 = vstv %s2950_s29  ;;  %v498_v31 = vstv %s2958_s7  ;;  %s2475_s29 = sld [smem:[#allocation2 + $0x49]] }
  0x7b   :  { %v525_v20 = vmul.f32 %v524_v17, %v2917_v25  ;;  %v2993_v23 = vmul.f32 %v524_v17, %v2912_v24  ;;  %v499_v37 = vmul.f32 %v498_v31, %v2917_v25  ;;  %v3047_v17 = vmul.f32 %v550_v5, %v2912_v24  ;;  %s3569_s7 = sld [smem:[#allocation6 + $0x1]] }
  0x7d   :  { %v529_v34 = vrot.slane %v525_v20, 2  ;;  %v5128_v35 = vrot.slane %v2993_v23, 2  ;;  %5232 = vst [vmem:[#allocation14_spill] sm:$0xff] %v3047_v17  ;;  %v645_v20 = vrot.slane %v641_v19, 1 }
  0x7e   :  { %443 = vrot.lane.b32.xlu1 %v439_v27, %s5141_s3  ;;  %441 = vrot.lane.b32.xlu0 %v440_v0, %s5141_s3  ;;  %v490_v27 = vrot.slane %v486_v15, 1  ;;  %v3002_v0 = vmul.f32 %v498_v31, %v2912_v24  ;;  %v551_v15 = vmul.f32 %v550_v5, %v2917_v25 }
  0x7f   :  { %v3018_v46 = vsel %vm144_vm1, %v529_v34, %v5128_v35 }
  0x80   :  { %v3008_v40 = vsel %vm104_vm0, %v490_v27, %v5129_v28  ;;  %v5127_v50 = vrot.slane %v3002_v0, 1  ;;  %v644_v27 = vrot.slane %v2978_v10, 1  ;;  %v555_v34 = vrot.slane %v551_v15, 2 }
  0x82   :  { %460 = vrot.lane.b32.xlu1 %v456_v39, %s5141_s3  ;;  %458 = vrot.lane.b32.xlu0 %v457_v44, %s5141_s3  ;;  %v656_v39 = vstv %s2964_s9  ;;  %v3012_v44 = vmul.f32 %v537_v33, %v2912_v24  ;;  %s3162_s9 = sld [smem:[#allocation2 + $0x31]] }
  0x83   :  { %v657_v31 = vmul.f32 %v656_v39, %v2917_v25  ;;  %v658_v33 = vmul.f32 %v656_v39, %v2912_v24  ;;  %v646_v39 = vsel %vm104_vm0, %v644_v27, %v645_v20  ;;  %v707_v27 = vstv %s2455_s15  ;;  %s3318_s15 = sld [smem:[#allocation2 + $0x32]] }
  0x84   :  { %v5126_v53 = vrot.slane %v3012_v44, 2 }
  0x86   :  { %570 = vrot.lane.b32.xlu1 %v565_v45, %s5143_s19  ;;  %568 = vrot.lane.b32.xlu0 %v564_v49, %s5143_s19  ;;  %v628_v45 = vrot.slane %v624_v8, 1  ;;  %v503_v49 = vrot.slane %v499_v37, 1  ;;  %v673_v8 = vstv %s2980_s11  ;;  %v5124_v37 = vrot.slane %v3047_v17, 2  ;;  %s3202_s11 = sld [smem:[#allocation2 + $0x34]] }
  0x87   :  { %v674_v19 = vmul.f32 %v673_v8, %v2917_v25  ;;  %v5235_v17 = vstv %s2808_s10  ;;  %s3256_s10 = sld [smem:[#allocation2 + $0x3f]] }
  0x88   :  { %v3028_v60 = vsel %vm104_vm0, %v503_v49, %v5127_v50  ;;  %v3064_v10 = vsel %vm144_vm1, %v555_v34, %v5124_v37  ;;  %v662_v49 = vrot.slane %v658_v33, 2  ;;  %v709_v33 = vmul.f32 %v707_v27, %v2912_v24 }
  0x89   :  { %5234 = vst [vmem:[#allocation16_spill] sm:$0xff] %v3064_v10  ;;  %v721_v34 = vstv %s2456_s16  ;;  %v817_v37 = vstv %s2462_s23  ;;  %v989_v50 = vstv %s2476_s26  ;;  %s3332_s16 = sld [smem:[#allocation2 + $0x4d]]  ;;  %s2470_s23 = sld [smem:[#allocation2 + $0x18]] }
  0x8a   :  { %584 = vrot.lane.b32.xlu1 %v579_v57, %s5143_s19  ;;  %582 = vrot.lane.b32.xlu0 %v578_v61, %s5143_s19  ;;  %v612_v57 = vsel %vm104_vm0, %v610_v13, %v611_v18  ;;  %v512_v61 = vmul.f32 %v511_v55, %v2917_v25  ;;  %s3510_s26 = sld [smem:[#allocation2 + $0x4b]] }
  0x8c   :  { %v516_v12 = vrot.slane %v512_v61, 1 }
  0x8e   :  { %598 = vrot.lane.b32.xlu1 %v593_v63, %s5143_s19  ;;  %596 = vrot.lane.b32.xlu0 %v592_v4, %s5143_s19  ;;  %v3032_v63 = vmul.f32 %v511_v55, %v2912_v24  ;;  %v3040_v4 = vsel %vm144_vm1, %v542_v52, %v5126_v53  ;;  %v675_v52 = vmul.f32 %v673_v8, %v2912_v24  ;;  %v690_v55 = vstv %s3035_s14  ;;  %s3301_s14 = sld [smem:[#allocation2 + $0x4a]] }
  0x8f   :  { %5231 = vst [vmem:[#allocation13_spill] sm:$0xff] %v3040_v4  ;;  %v691_v5 = vmul.f32 %v690_v55, %v2917_v25  ;;  %v818_v53 = vmul.f32 %v817_v37, %v2917_v25 }
  0x90   :  { %5230 = vst [vmem:[#allocation12_spill] sm:$0xff] %v3032_v63  ;;  %v5125_v13 = vrot.slane %v3032_v63, 1  ;;  %v679_v61 = vrot.slane %v675_v52, 2 }
  0x92   :  { %615 = vrot.lane.b32.xlu1 %v611_v18, %s5143_s19  ;;  %613 = vrot.lane.b32.xlu0 %v612_v57, %s5143_s19  ;;  %v629_v18 = vsel %vm104_vm0, %v627_v51, %v628_v45  ;;  %v3058_v43 = vsel %vm104_vm0, %v516_v12, %v5125_v13  ;;  %v661_v51 = vrot.slane %v657_v31, 2  ;;  %v692_v12 = vmul.f32 %v690_v55, %v2912_v24 }
  0x93   :  { %5233 = vst [vmem:[#allocation15_spill] sm:$0xff] %v3058_v43 }
  0x94   :  { %v663_v57 = vsel %vm144_vm1, %v661_v51, %v662_v49  ;;  %v696_v15 = vrot.slane %v692_v12, 2  ;;  %v735_v51 = vstv %s2457_s18  ;;  %s3379_s18 = sld [smem:[#allocation2 + $0x35]] }
  0x96   :  { %632 = vrot.lane.b32.xlu1 %v628_v45, %s5143_s19  ;;  %630 = vrot.lane.b32.xlu0 %v629_v18, %s5143_s19  ;;  %v678_v45 = vrot.slane %v674_v19, 2  ;;  %v708_v18 = vmul.f32 %v707_v27, %v2917_v25  ;;  %v749_v19 = vstv %s2458_s17  ;;  %s3353_s17 = sld [smem:[#allocation2 + $0x1a]] }
  0x97   :  { %v750_v52 = vmul.f32 %v749_v19, %v2917_v25  ;;  %v751_v55 = vmul.f32 %v749_v19, %v2912_v24 }
  0x98   :  { %v680_v8 = vsel %vm144_vm1, %v678_v45, %v679_v61  ;;  %v766_v45 = vstv %s2459_s20  ;;  %s3390_s20 = sld [smem:[#allocation2 + $0x50]] }
  0x99   :  { %v754_v12 = vrot.slane %v750_v52, 1 }
  0x9a   :  { %649 = vrot.lane.b32.xlu1 %v645_v20, %s5143_s19  ;;  %647 = vrot.lane.b32.xlu0 %v646_v39, %s5143_s19  ;;  %v695_v20 = vrot.slane %v691_v5, 2  ;;  %v723_v39 = vmul.f32 %v721_v34, %v2912_v24  ;;  %v755_v5 = vrot.slane %v751_v55, 1 }
  0x9c   :  { %v697_v31 = vsel %vm144_vm1, %v695_v20, %v696_v15  ;;  %v768_v20 = vmul.f32 %v766_v45, %v2912_v24 }
  0x9e   :  { %666 = vrot.lane.b32.xlu1 %v662_v49, %s5143_s19  ;;  %664 = vrot.lane.b32.xlu0 %v663_v57, %s5143_s19  ;;  %v722_v49 = vmul.f32 %v721_v34, %v2917_v25  ;;  %v737_v57 = vmul.f32 %v735_v51, %v2912_v24  ;;  %v772_v19 = vrot.slane %v768_v20, 1 }
  0xa2   :  { %683 = vrot.lane.b32.xlu1 %v679_v61, %s5143_s19  ;;  %681 = vrot.lane.b32.xlu0 %v680_v8, %s5143_s19  ;;  %v736_v61 = vmul.f32 %v735_v51, %v2917_v25 }
  0xa6   :  { %700 = vrot.lane.b32.xlu1 %v696_v15, %s5143_s19  ;;  %698 = vrot.lane.b32.xlu0 %v697_v31, %s5143_s19  ;;  %v767_v15 = vmul.f32 %v766_v45, %v2917_v25  ;;  %v783_v31 = vstv %s2460_s21  ;;  %s2467_s21 = sld [smem:[#allocation2 + $0x15]] }
  0xa7   :  { %v785_v51 = vmul.f32 %v783_v31, %v2912_v24 }
  0xaa   :  { %714 = vrot.lane.b32.xlu1 %v709_v33, %s5141_s3  ;;  %712 = vrot.lane.b32.xlu0 %v708_v18, %s5141_s3  ;;  %v756_v33 = vsel %vm104_vm0, %v754_v12, %v755_v5  ;;  %v800_v18 = vstv %s3092_s22  ;;  %s2464_s22 = sld [smem:[#allocation2 + $0x12]] }
  0xab   :  { %v801_v55 = vmul.f32 %v800_v18, %v2917_v25 }
  0xae   :  { %728 = vrot.lane.b32.xlu1 %v723_v39, %s5141_s3  ;;  %726 = vrot.lane.b32.xlu0 %v722_v49, %s5141_s3  ;;  %v771_v39 = vrot.slane %v767_v15, 1  ;;  %v784_v49 = vmul.f32 %v783_v31, %v2917_v25  ;;  %v802_v15 = vmul.f32 %v800_v18, %v2912_v24 }
  0xb0   :  { %v3098_v8 = vpop.permute.xlu1 %198  ;;  %v3102_v27 = vpop.permute.xlu0 %184  ;;  %v788_v12 = vrot.slane %v784_v49, 1  ;;  %v806_v13 = vrot.slane %v802_v15, 2 }
  0xb2   :  { %742 = vrot.lane.b32.xlu1 %v737_v57, %s5141_s3  ;;  %740 = vrot.lane.b32.xlu0 %v736_v61, %s5141_s3  ;;  %v773_v57 = vsel %vm104_vm0, %v771_v39, %v772_v19  ;;  %v789_v61 = vrot.slane %v785_v51, 1  ;;  %v819_v39 = vmul.f32 %v817_v37, %v2912_v24 }
  0xb4   :  { %v3108_v34 = vpop.permute.xlu1 %200  ;;  %v3112_v52 = vpop.permute.xlu0 %186  ;;  %v823_v51 = vrot.slane %v819_v39, 2 }
  0xb6   :  { %759 = vrot.lane.b32.xlu1 %v755_v5, %s5141_s3  ;;  %757 = vrot.lane.b32.xlu0 %v756_v33, %s5141_s3  ;;  %v805_v5 = vrot.slane %v801_v55, 2  ;;  %v790_v33 = vsel %vm104_vm0, %v788_v12, %v789_v61  ;;  %v822_v55 = vrot.slane %v818_v53, 2  ;;  %v3151_v53 = vld [vmem:[%s5118_s0 + $0x28] sm:$0xff] }
  0xb7   :  { %v991_v28 = vmul.f32 %v989_v50, %v3151_v53  ;;  %v1025_v10 = vmul.f32 %v1023_v56, %v3151_v53 }
  0xb8   :  { %v3117_v45 = vpop.permute.xlu1 %214  ;;  %v3121_v20 = vpop.permute.xlu0 %212 }
  0xba   :  { %776 = vrot.lane.b32.xlu1 %v772_v19, %s5141_s3  ;;  %774 = vrot.lane.b32.xlu0 %v773_v57, %s5141_s3  ;;  %v807_v19 = vsel %vm144_vm1, %v805_v5, %v806_v13  ;;  %v3158_v5 = vld [vmem:[%s5118_s0 + $0x20] sm:$0xff]  ;;  %s3181_s0 = sld [smem:[#allocation2 + $0x19]] }
  0xbb   :  { %v990_v35 = vmul.f32 %v989_v50, %v3158_v5  ;;  %v995_v50 = vrot.slane %v991_v28, 1  ;;  %v1024_v28 = vmul.f32 %v1023_v56, %v3158_v5 }
  0xbc   :  { %v3125_v31 = vpop.permute.xlu1 %231  ;;  %v3130_v49 = vpop.permute.xlu0 %229 }
  0xbd   :  { %v994_v7 = vrot.slane %v990_v35, 1 }
  0xbe   :  { %793 = vrot.lane.b32.xlu1 %v789_v61, %s5141_s3  ;;  %791 = vrot.lane.b32.xlu0 %v790_v33, %s5141_s3  ;;  %v824_v61 = vsel %vm144_vm1, %v822_v55, %v823_v51 }
  0xc0   :  { %v3134_v18 = vpop.permute.xlu1 %248  ;;  %v3137_v57 = vpop.permute.xlu0 %246  ;;  %v1040_v35 = vstv %s3181_s0  ;;  %s3590_s0 = sld [smem:[#allocation6 + $0x1f]] }
  0xc1   :  { %v1041_v56 = vmul.f32 %v1040_v35, %v3158_v5 }
  0xc2   :  { %810 = vrot.lane.b32.xlu1 %v806_v13, %s5141_s3  ;;  %808 = vrot.lane.b32.xlu0 %v807_v19, %s5141_s3  ;;  %v947_v13 = vstv %s2473_s24  ;;  %s2468_s24 = sld [smem:[#allocation2 + $0x30]] }
  0xc3   :  { %v949_v39 = vmul.f32 %v947_v13, %v3151_v53  ;;  %v948_v19 = vmul.f32 %v947_v13, %v3158_v5 }
  0xc4   :  { %v3141_v37 = vpop.permute.xlu1 %265  ;;  %v3144_v12 = vpop.permute.xlu0 %263 }
  0xc6   :  { %827 = vrot.lane.b32.xlu1 %v823_v51, %s5141_s3  ;;  %825 = vrot.lane.b32.xlu0 %v824_v61, %s5141_s3  ;;  %v961_v51 = vstv %s2474_s25  ;;  %s3506_s25 = sld [smem:[#allocation2 + $0x33]] }
  0xc7   :  { %v963_v29 = vmul.f32 %v961_v51, %v3151_v53 }
  0xc8   :  { %v3153_v15 = vpop.permute.xlu1 %282  ;;  %v3160_v33 = vpop.permute.xlu0 %280 }
  0xca   :  { %844 = vrot.lane.b32.xlu1 %v840_v36, %s5141_s3  ;;  %842 = vrot.lane.b32.xlu0 %v2941_v38, %s5141_s3  ;;  %v962_v36 = vmul.f32 %v961_v51, %v3158_v5  ;;  %v975_v38 = vstv %s2475_s29  ;;  %v83_v51 = vmul.f32 %v81_v9, %v2693_v1  ;;  %v89_v9 = vmul.f32 %v87_v59, %v2693_v1  ;;  %s3528_s29 = sld [smem:[#allocation2 + $0x48]] }
  0xcb   :  { %v976_v11 = vmul.f32 %v975_v38, %v3158_v5  ;;  %v95_v59 = vmul.f32 %v5235_v17, %v2693_v1  ;;  %v1042_v1 = vmul.f32 %v1040_v35, %v3151_v53  ;;  %v5240_v35 = vrot.slane %v2831_v22, 2 }
  0xcc   :  { %v3173_v55 = vpop.permute.xlu1 %299  ;;  %v3175_v61 = vpop.permute.xlu0 %297  ;;  %v1074_v22 = vstv %s3224_s27  ;;  %s3600_s27 = sld [smem:[#allocation6 + $0x7]] }
  0xce   :  { %954 = vrot.lane.b32.xlu1 %v949_v39, %s5143_s19  ;;  %952 = vrot.lane.b32.xlu0 %v948_v19, %s5143_s19  ;;  %v1006_v39 = vstv %s3162_s9  ;;  %v977_v19 = vmul.f32 %v975_v38, %v3151_v53  ;;  %s3580_s9 = sld [smem:[#allocation6 + $0x37]] }
  0xcf   :  { %v1007_v47 = vmul.f32 %v1006_v39, %v3158_v5 }
  0xd0   :  { %v3183_v13 = vpop.permute.xlu1 %316  ;;  %v3187_v2 = vpop.permute.xlu0 %314 }
  0xd1   :  { %v1011_v42 = vrot.slane %v1007_v47, 1 }
  0xd2   :  { %968 = vrot.lane.b32.xlu1 %v963_v29, %s5143_s19  ;;  %966 = vrot.lane.b32.xlu0 %v962_v36, %s5143_s19  ;;  %v1008_v29 = vmul.f32 %v1006_v39, %v3151_v53  ;;  %v85_v36 = vadd.f32 %v83_v51, %v75_v6  ;;  %v996_v39 = vsel %vm104_vm0, %v994_v7, %v995_v50  ;;  %v5236_v6 = vstv %s2743_s1  ;;  %s3249_s1 = sld [smem:[#allocation2 + $0x14]] }
  0xd3   :  { %v5237_v7 = vrot.slane %v2813_v14, 1 }
  0xd4   :  { %v3198_v30 = vpop.permute.xlu1 %330  ;;  %v3204_v21 = vpop.permute.xlu0 %328  ;;  %v1012_v58 = vrot.slane %v1008_v29, 1  ;;  %v1029_v29 = vrot.slane %v1025_v10, 1  ;;  %5272 = sst [smem:[#allocation29_spill]] %s3580_s9 }
  0xd5   :  { %v111_v47 = vadd.f32 %v5237_v7, %v85_v36  ;;  %v5239_v36 = vrot.slane %v2786_v62, 1 }
  0xd6   :  { %982 = vrot.lane.b32.xlu1 %v977_v19, %s5143_s19  ;;  %980 = vrot.lane.b32.xlu0 %v976_v11, %s5143_s19  ;;  %v91_v11 = vadd.f32 %v89_v9, %v5236_v6  ;;  %v1013_v51 = vsel %vm104_vm0, %v1011_v42, %v1012_v58  ;;  %v1028_v9 = vrot.slane %v1024_v28, 1  ;;  %v5238_v6 = vstv %s2833_s12  ;;  %s3269_s12 = sld [smem:[#allocation2 + $0x2f]] }
  0xd7   :  { %v97_v43 = vadd.f32 %v95_v59, %v5238_v6  ;;  %v151_v7 = vadd.f32 %v5240_v35, %v111_v47  ;;  %v1046_v59 = vrot.slane %v1042_v1, 2  ;;  %v5242_v47 = vrot.slane %v2795_v3, 2 }
  0xd8   :  { %v3215_v38 = vpop.permute.xlu1 %344  ;;  %v3222_v19 = vpop.permute.xlu0 %342  ;;  %v1030_v62 = vsel %vm104_vm0, %v1028_v9, %v1029_v29  ;;  %v467_v35 = vstv %s3229_s30  ;;  %v473_v1 = vstv %s3236_s6  ;;  %s3602_s30 = sld [smem:[#allocation6 + $0x22]]  ;;  %s3609_s6 = sld [smem:[#allocation6 + $0x3d]] }
  0xda   :  { %999 = vrot.lane.b32.xlu1 %v995_v50, %s5143_s19  ;;  %997 = vrot.lane.b32.xlu0 %v996_v39, %s5143_s19  ;;  %v1057_v50 = vstv %s3202_s11  ;;  %v124_v39 = vadd.f32 %v5239_v36, %v91_v11  ;;  %v5241_v11 = vrot.slane %v2872_v48, 1  ;;  %v190_v48 = vadd.f32 %v3102_v27, %v2861_v41  ;;  %s3592_s11 = sld [smem:[#allocation6 + $0x3a]] }
  0xdb   :  { %v1058_v42 = vmul.f32 %v1057_v50, %v3158_v5  ;;  %v1059_v10 = vmul.f32 %v1057_v50, %v3151_v53  ;;  %v191_v50 = vadd.f32 %v3112_v52, %v151_v7  ;;  %v5243_v52 = vrot.slane %v2885_v54, 2 }
  0xdc   :  { %v3238_v17 = vpop.permute.xlu1 %358  ;;  %v3244_v14 = vpop.permute.xlu0 %356  ;;  %v137_v6 = vadd.f32 %v5241_v11, %v97_v43  ;;  %v468_v41 = vmul.f32 %v467_v35, %v2917_v25  ;;  %v3284_v27 = vmul.f32 %v473_v1, %v2912_v24  ;;  %v479_v11 = vstv %s3256_s10  ;;  %s3620_s10 = sld [smem:[#allocation6 + $0x1d]] }
  0xdd   :  { %v1063_v63 = vrot.slane %v1059_v10, 2  ;;  %v1062_v4 = vrot.slane %v1058_v42, 2  ;;  %v469_v42 = vmul.f32 %v467_v35, %v2912_v24  ;;  %v235_v10 = vadd.f32 %v3130_v49, %v190_v48 }
  0xde   :  { %1016 = vrot.lane.b32.xlu1 %v1012_v58, %s5143_s19  ;;  %1014 = vrot.lane.b32.xlu0 %v1013_v51, %s5143_s19  ;;  %v1045_v58 = vrot.slane %v1041_v56, 2  ;;  %v164_v51 = vadd.f32 %v5242_v47, %v124_v39  ;;  %v1075_v56 = vmul.f32 %v1074_v22, %v3158_v5  ;;  %v177_v9 = vadd.f32 %v5243_v52, %v137_v6  ;;  %5273 = sst [smem:[#allocation30_spill]] %s3609_s6 }
  0xdf   :  { %v236_v39 = vadd.f32 %v3125_v31, %v191_v50  ;;  %v1064_v31 = vsel %vm144_vm1, %v1062_v4, %v1063_v63  ;;  %v204_v49 = vadd.f32 %v3098_v8, %v2849_v32  ;;  %v474_v35 = vmul.f32 %v473_v1, %v2917_v25 }
  0xe0   :  { %v376_v28 = vpop.permute.xlu1 %375  ;;  %v374_v36 = vpop.permute.xlu0 %373  ;;  %v1047_v3 = vsel %vm144_vm1, %v1045_v58, %v1046_v59  ;;  %v205_v58 = vadd.f32 %v3108_v34, %v164_v51  ;;  %v1079_v47 = vrot.slane %v1075_v56, 2  ;;  %v1105_v48 = vstv %s3269_s12  ;;  %s3622_s12 = sld [smem:[#allocation6 + $0x38]] }
  0xe1   :  { %v287_v54 = vadd.f32 %v3153_v15, %v236_v39  ;;  %v252_v50 = vadd.f32 %v3137_v57, %v204_v49  ;;  %v218_v57 = vadd.f32 %v3121_v20, %v2919_v26 }
  0xe2   :  { %1033 = vrot.lane.b32.xlu1 %v1029_v29, %s5143_s19  ;;  %1031 = vrot.lane.b32.xlu0 %v1030_v62, %s5143_s19  ;;  %v1076_v29 = vmul.f32 %v1074_v22, %v3151_v53  ;;  %v1091_v62 = vstv %s3249_s1  ;;  %v253_v34 = vadd.f32 %v3134_v18, %v205_v58  ;;  %s3611_s1 = sld [smem:[#allocation6 + $0x2]]  ;;  %5275 = sst [smem:[#allocation32_spill]] %s3620_s10 }
  0xe3   :  { %v335_v15 = vadd.f32 %v3198_v30, %v287_v54  ;;  %v1093_v4 = vmul.f32 %v1091_v62, %v3151_v53  ;;  %v1092_v8 = vmul.f32 %v1091_v62, %v3158_v5  ;;  %v219_v30 = vadd.f32 %v3117_v45, %v177_v9  ;;  %s3763_s10 = sld [smem:[#allocation6 + $0x36]] }
  0xe4   :  { %v393_v43 = vpop.permute.xlu1 %392  ;;  %v391_v7 = vpop.permute.xlu0 %390  ;;  %v1080_v22 = vrot.slane %v1076_v29, 2  ;;  %v304_v18 = vadd.f32 %v3173_v55, %v253_v34  ;;  %v480_v29 = vmul.f32 %v479_v11, %v2917_v25  ;;  %v269_v52 = vadd.f32 %v3144_v12, %v218_v57  ;;  %v5248_v57 = vld [vmem:[#allocation13_spill] sm:$0xff] }
  0xe5   :  { %v380_v1 = vadd.f32 %v376_v28, %v335_v15 }
  0xe6   :  { %1050 = vrot.lane.b32.xlu1 %v1046_v59, %s5143_s19  ;;  %1048 = vrot.lane.b32.xlu0 %v1047_v3, %s5143_s19  ;;  %v286_v59 = vadd.f32 %v3160_v33, %v235_v10  ;;  %v3308_v33 = vmul.f32 %v479_v11, %v2912_v24  ;;  %v1081_v56 = vsel %vm144_vm1, %v1079_v47, %v1080_v22  ;;  %5276 = sst [smem:[#allocation33_spill]] %s3622_s12  ;;  %s3761_s12 = sld [smem:[#allocation7 + $0x1]] }
  0xe7   :  { %v270_v24 = vadd.f32 %v3141_v37, %v219_v30  ;;  %v349_v45 = vadd.f32 %v3215_v38, %v304_v18  ;;  %v1133_v38 = vstv %s3292_s13  ;;  %v320_v39 = vadd.f32 %v3187_v2, %v269_v52  ;;  %s3630_s13 = sld [smem:[#allocation6 + $0x5]] }
  0xe8   :  { %v410_v6 = vpop.permute.xlu1 %409  ;;  %v408_v51 = vpop.permute.xlu0 %407  ;;  %v334_v32 = vadd.f32 %v3204_v21, %v286_v59  ;;  %v303_v21 = vadd.f32 %v3175_v61, %v252_v50  ;;  %v1107_v61 = vmul.f32 %v1105_v48, %v3151_v53  ;;  %v1135_v59 = vmul.f32 %v1133_v38, %v3151_v53  ;;  %5274 = sst [smem:[#allocation31_spill]] %s3611_s1  ;;  %s3752_s1 = sld [smem:[#allocation6 + $0x21]] }
  0xe9   :  { %v397_v9 = vadd.f32 %v393_v43, %v349_v45 }
  0xea   :  { %1067 = vrot.lane.b32.xlu1 %v1063_v63, %s5143_s19  ;;  %1065 = vrot.lane.b32.xlu0 %v1064_v31, %s5143_s19  ;;  %v379_v3 = vadd.f32 %v374_v36, %v334_v32  ;;  %v348_v26 = vadd.f32 %v3222_v19, %v303_v21  ;;  %v321_v36 = vadd.f32 %v3183_v13, %v270_v24  ;;  %v5244_v13 = vrot.slane %v2984_v16, 1  ;;  %v5251_v24 = vld [vmem:[#allocation15_spill] sm:$0xff] }
  0xeb   :  { %v1106_v19 = vmul.f32 %v1105_v48, %v3158_v5  ;;  %v362_v31 = vadd.f32 %v3244_v14, %v320_v39  ;;  %v1139_v18 = vrot.slane %v1135_v59, 1  ;;  %v1184_v39 = vstv %s3353_s17  ;;  %s3660_s17 = sld [smem:[#allocation6 + $0x23]] }
  0xec   :  { %v427_v63 = vpop.permute.xlu1 %426  ;;  %v425_v28 = vpop.permute.xlu0 %424  ;;  %v396_v25 = vadd.f32 %v391_v7, %v348_v26  ;;  %v363_v62 = vadd.f32 %v3238_v17, %v321_v36  ;;  %v1134_v7 = vmul.f32 %v1133_v38, %v3158_v5  ;;  %v5245_v17 = vrot.slane %v2993_v23, 2  ;;  %v5254_v36 = vld [vmem:[#allocation16_spill] sm:$0xff] }
  0xed   :  { %v431_v55 = vadd.f32 %v427_v63, %v380_v1  ;;  %v430_v20 = vadd.f32 %v425_v28, %v379_v3  ;;  %v1167_v3 = vstv %s3332_s16  ;;  %v5249_v63 = vld [vmem:[#allocation12_spill] sm:$0xff]  ;;  %v5252_v28 = vld [vmem:[#allocation14_spill] sm:$0xff]  ;;  %s3650_s16 = sld [smem:[#allocation6 + $0x8]] }
  0xee   :  { %1084 = vrot.lane.b32.xlu1 %v1080_v22, %s5143_s19  ;;  %1082 = vrot.lane.b32.xlu0 %v1081_v56, %s5143_s19  ;;  %v413_v22 = vadd.f32 %v408_v51, %v362_v31  ;;  %v5250_v56 = vrot.slane %v5249_v63, 1  ;;  %v1168_v38 = vmul.f32 %v1167_v3, %v3158_v5  ;;  %v1218_v31 = vstv %s3390_s20  ;;  %s3682_s20 = sld [smem:[#allocation6 + $0xa]]  ;;  %s3734_s19 = sld [smem:[#allocation6 + $0x3]] }
  0xef   :  { %v471_v37 = vadd.f32 %v469_v42, %v431_v55  ;;  %v470_v10 = vadd.f32 %v468_v41, %v430_v20  ;;  %v1119_v42 = vstv %s3301_s14  ;;  %v414_v41 = vadd.f32 %v410_v6, %v363_v62  ;;  %s3632_s14 = sld [smem:[#allocation6 + $0x20]] }
  0xf0   :  { %v444_v12 = vpop.permute.xlu1 %443  ;;  %v442_v54 = vpop.permute.xlu0 %441  ;;  %v1120_v51 = vmul.f32 %v1119_v42, %v3158_v5  ;;  %v1169_v20 = vmul.f32 %v1167_v3, %v3151_v53  ;;  %v1220_v59 = vmul.f32 %v1218_v31, %v3151_v53 }
  0xf1   :  { %v448_v58 = vadd.f32 %v444_v12, %v397_v9  ;;  %v496_v43 = vadd.f32 %v5244_v13, %v471_v37  ;;  %v447_v11 = vadd.f32 %v442_v54, %v396_v25  ;;  %v495_v2 = vadd.f32 %v3008_v40, %v470_v10  ;;  %5281 = sst [smem:[#allocation36_spill]] %s3660_s17 }
  0xf2   :  { %1098 = vrot.lane.b32.xlu1 %v1093_v4, %s5141_s3  ;;  %1096 = vrot.lane.b32.xlu0 %v1092_v8, %s5141_s3  ;;  %v1150_v40 = vstv %s3318_s15  ;;  %v5246_v4 = vrot.slane %v3002_v0, 1  ;;  %v5247_v8 = vrot.slane %v3012_v44, 2  ;;  %v1186_v10 = vmul.f32 %v1184_v39, %v3151_v53  ;;  %s3648_s15 = sld [smem:[#allocation6 + $0x3b]] }
  0xf3   :  { %v477_v49 = vadd.f32 %v3284_v27, %v448_v58  ;;  %v3346_v16 = vadd.f32 %v5245_v17, %v496_v43  ;;  %v476_v14 = vadd.f32 %v474_v35, %v447_v11  ;;  %v3350_v34 = vadd.f32 %v3018_v46, %v495_v2 }
  0xf4   :  { %v461_v47 = vpop.permute.xlu1 %460  ;;  %v459_v15 = vpop.permute.xlu0 %458  ;;  %v1121_v27 = vmul.f32 %v1119_v42, %v3151_v53  ;;  %v1138_v46 = vrot.slane %v1134_v7, 1  ;;  %v1152_v0 = vmul.f32 %v1150_v40, %v3151_v53  ;;  %v1173_v62 = vrot.slane %v1169_v20, 1  ;;  %5284 = sst [smem:[#allocation38_spill]] %s3682_s20 }
  0xf5   :  { %v465_v6 = vadd.f32 %v461_v47, %v414_v41  ;;  %v509_v23 = vadd.f32 %v5246_v4, %v477_v49  ;;  %v464_v50 = vadd.f32 %v459_v15, %v413_v22  ;;  %v508_v35 = vadd.f32 %v3028_v60, %v476_v14  ;;  %5277 = sst [smem:[#allocation34_spill]] %s3632_s14  ;;  %s3802_s20 = sld [smem:[#allocation6 + $0x11]] }
  0xf6   :  { %1112 = vrot.lane.b32.xlu1 %v1107_v61, %s5141_s3  ;;  %1110 = vrot.lane.b32.xlu0 %v1106_v19, %s5141_s3  ;;  %v1151_v60 = vmul.f32 %v1150_v40, %v3158_v5  ;;  %v1140_v55 = vsel %vm104_vm0, %v1138_v46, %v1139_v18  ;;  %v1156_v26 = vrot.slane %v1152_v0, 1  ;;  %v1172_v58 = vrot.slane %v1168_v38, 1  ;;  %5289 = sst [smem:[#allocation43_spill]] %s3734_s19 }
  0xf7   :  { %v483_v32 = vadd.f32 %v3308_v33, %v465_v6  ;;  %v3365_v30 = vadd.f32 %v5247_v8, %v509_v23  ;;  %v482_v1 = vadd.f32 %v480_v29, %v464_v50  ;;  %v3371_v21 = vadd.f32 %v5248_v57, %v508_v35 }
  0xf8   :  { %v3368_v48 = vpop.permute.xlu1 %570  ;;  %v3375_v33 = vpop.permute.xlu0 %568  ;;  %v5253_v29 = vrot.slane %v5252_v28, 2  ;;  %v1155_v37 = vrot.slane %v1151_v60, 1  ;;  %v1185_v54 = vmul.f32 %v1184_v39, %v3158_v5  ;;  %v1201_v43 = vstv %s3379_s18  ;;  %5280 = sst [smem:[#allocation35_spill]] %s3648_s15 }
  0xf9   :  { %v522_v44 = vadd.f32 %v5250_v56, %v483_v32  ;;  %v521_v45 = vadd.f32 %v5251_v24, %v482_v1  ;;  %v1190_v42 = vrot.slane %v1186_v10, 2  ;;  %v1174_v2 = vsel %vm104_vm0, %v1172_v58, %v1173_v62  ;;  %s3662_s18 = sld [smem:[#allocation6 + $0x3e]] }
  0xfa   :  { %1126 = vrot.lane.b32.xlu1 %v1121_v27, %s5141_s3  ;;  %1124 = vrot.lane.b32.xlu0 %v1120_v51, %s5141_s3  ;;  %v1157_v19 = vsel %vm104_vm0, %v1155_v37, %v1156_v26  ;;  %v1189_v7 = vrot.slane %v1185_v54, 2  ;;  %v1203_v41 = vmul.f32 %v1201_v43, %v3151_v53  ;;  %v1202_v49 = vmul.f32 %v1201_v43, %v3158_v5 }
  0xfb   :  { %v3387_v52 = vadd.f32 %v5253_v29, %v522_v44  ;;  %v3395_v9 = vadd.f32 %v5254_v36, %v521_v45  ;;  %v1219_v6 = vmul.f32 %v1218_v31, %v3158_v5  ;;  %v1224_v23 = vrot.slane %v1220_v59, 2 }
  0xfc   :  { %v3392_v61 = vpop.permute.xlu1 %584  ;;  %v3399_v25 = vpop.permute.xlu0 %582  ;;  %v1191_v14 = vsel %vm144_vm1, %v1189_v7, %v1190_v42  ;;  %v1207_v47 = vrot.slane %v1203_v41, 2  ;;  %v1206_v40 = vrot.slane %v1202_v49, 2  ;;  %v869_v49 = vstv %s2467_s21  ;;  %s3684_s21 = sld [smem:[#allocation6 + $0x25]] }
  0xfd   :  { %v1223_v50 = vrot.slane %v1219_v6, 2  ;;  %v908_v6 = vstv %s2470_s23  ;;  %s3696_s23 = sld [smem:[#allocation6 + $0xd]] }
  0xfe   :  { %1143 = vrot.lane.b32.xlu1 %v1139_v18, %s5141_s3  ;;  %1141 = vrot.lane.b32.xlu0 %v1140_v55, %s5141_s3  ;;  %v1208_v4 = vsel %vm144_vm1, %v1206_v40, %v1207_v47  ;;  %v3523_v40 = vmul.f32 %v869_v49, %v3158_v5 }
  0xff   :  { %v1225_v46 = vsel %vm144_vm1, %v1223_v50, %v1224_v23  ;;  %v921_v50 = vstv %s3506_s25  ;;  %5282 = sst [smem:[#allocation37_spill]] %s3662_s18  ;;  %s3704_s25 = sld [smem:[#allocation6 + $0x43]] }
 0x100   :  { %v3404_v12 = vpop.permute.xlu1 %598  ;;  %v3408_v13 = vpop.permute.xlu0 %596 }
 0x102   :  { %1160 = vrot.lane.b32.xlu1 %v1156_v26, %s5141_s3  ;;  %1158 = vrot.lane.b32.xlu0 %v1157_v19, %s5141_s3  ;;  %5285 = sst [smem:[#allocation39_spill]] %s3684_s21  ;;  %s3796_s21 = sld [smem:[#allocation6 + $0x44]] }
 0x104   :  { %v3414_v11 = vpop.permute.xlu1 %615  ;;  %v3419_v17 = vpop.permute.xlu0 %613 }
 0x106   :  { %1177 = vrot.lane.b32.xlu1 %v1173_v62, %s5141_s3  ;;  %1175 = vrot.lane.b32.xlu0 %v1174_v2, %s5141_s3 }
 0x108   :  { %v3424_v22 = vpop.permute.xlu1 %632  ;;  %v3428_v15 = vpop.permute.xlu0 %630 }
 0x10a   :  { %1194 = vrot.lane.b32.xlu1 %v1190_v42, %s5141_s3  ;;  %1192 = vrot.lane.b32.xlu0 %v1191_v14, %s5141_s3 }
 0x10c   :  { %v3432_v27 = vpop.permute.xlu1 %649  ;;  %v3435_v51 = vpop.permute.xlu0 %647 }
 0x10e   :  { %1211 = vrot.lane.b32.xlu1 %v1207_v47, %s5141_s3  ;;  %1209 = vrot.lane.b32.xlu0 %v1208_v4, %s5141_s3  ;;  %v851_v47 = vstv %s2464_s22  ;;  %v3526_v4 = vmul.f32 %v869_v49, %v3151_v53  ;;  %v874_v49 = vrot.slane %v3523_v40, 1  ;;  %v574_v40 = vadd.f32 %v3375_v33, %v3350_v34  ;;  %s3694_s22 = sld [smem:[#allocation6 + $0x40]] }
 0x110   :  { %v3439_v35 = vpop.permute.xlu1 %666  ;;  %v3442_v32 = vpop.permute.xlu0 %664 }
 0x112   :  { %1228 = vrot.lane.b32.xlu1 %v1224_v23, %s5141_s3  ;;  %1226 = vrot.lane.b32.xlu0 %v1225_v46, %s5141_s3  ;;  %v882_v23 = vstv %s2468_s24  ;;  %s3702_s24 = sld [smem:[#allocation6 + $0x28]] }
 0x113   :  { %s3732_s3 = sld [smem:[#allocation7]] }
 0x114   :  { %v3446_v8 = vpop.permute.xlu1 %683  ;;  %v3448_v18 = vpop.permute.xlu0 %681  ;;  %5286 = sst [smem:[#allocation40_spill]] %s3694_s22  ;;  %s3790_s22 = sld [smem:[#allocation6 + $0x29]] }
 0x118   :  { %v3450_v0 = vpop.permute.xlu1 %700  ;;  %v3452_v1 = vpop.permute.xlu0 %698 }
 0x119   :  { %5288 = sst [smem:[#allocation42_spill]] %s3732_s3  ;;  %s3811_s3 = sld [smem:[#allocation6 + $0x2c]] }
 0x11c   :  { %v3454_v57 = vpop.permute.xlu1 %714  ;;  %v3456_v60 = vpop.permute.xlu0 %712 }
 0x120   :  { %v3458_v3 = vpop.permute.xlu1 %728  ;;  %v3460_v63 = vpop.permute.xlu0 %726 }
 0x124   :  { %v3462_v56 = vpop.permute.xlu1 %742  ;;  %v3464_v44 = vpop.permute.xlu0 %740 }
 0x125   :  { %5255 = vst [vmem:[#allocation13_spill] sm:$0xff] %v3464_v44 }
 0x128   :  { %v3466_v24 = vpop.permute.xlu1 %759  ;;  %v3468_v45 = vpop.permute.xlu0 %757 }
 0x12c   :  { %v3470_v55 = vpop.permute.xlu1 %776  ;;  %v3472_v28 = vpop.permute.xlu0 %774 }
 0x130   :  { %v3474_v29 = vpop.permute.xlu1 %793  ;;  %v3476_v26 = vpop.permute.xlu0 %791 }
 0x131   :  { %5256 = vst [vmem:[#allocation12_spill] sm:$0xff] %v3474_v29  ;;  %5257 = vst [vmem:[#allocation15_spill] sm:$0xff] %v3476_v26  ;;  %v3558_v26 = vmul.f32 %v921_v50, %v3158_v5  ;;  %v3564_v29 = vmul.f32 %v921_v50, %v3151_v53  ;;  %v619_v50 = vadd.f32 %v3419_v17, %v574_v40 }
 0x133   :  { %v926_v17 = vrot.slane %v3558_v26, 2  ;;  %v927_v40 = vrot.slane %v3564_v29, 2 }
 0x134   :  { %v3478_v20 = vpop.permute.xlu1 %810  ;;  %v3480_v36 = vpop.permute.xlu0 %808 }
 0x138   :  { %v3482_v37 = vpop.permute.xlu1 %827  ;;  %v3484_v38 = vpop.permute.xlu0 %825 }
 0x13c   :  { %v3486_v39 = vpop.permute.xlu1 %844  ;;  %v3488_v10 = vpop.permute.xlu0 %842 }
 0x13d   :  { %5258 = vst [vmem:[#allocation14_spill] sm:$0xff] %v3486_v39  ;;  %5259 = vst [vmem:[#allocation16_spill] sm:$0xff] %v3488_v10  ;;  %v3548_v10 = vmul.f32 %v882_v23, %v3158_v5  ;;  %v934_v39 = vstv %s3514_s2  ;;  %s3715_s2 = sld [smem:[#allocation6 + $0x2b]] }
 0x13e   :  { %v935_v34 = vmul.f32 %v934_v39, %v3158_v5 }
 0x140   :  { %v3490_v19 = vpop.permute.xlu1 %954  ;;  %v3492_v62 = vpop.permute.xlu0 %952 }
 0x144   :  { %v3494_v58 = vpop.permute.xlu1 %968  ;;  %v3496_v54 = vpop.permute.xlu0 %966 }
 0x145   :  { %5260 = vst [vmem:[#allocation17_spill] sm:$0xff] %v3494_v58  ;;  %5261 = vst [vmem:[#allocation18_spill] sm:$0xff] %v3496_v54  ;;  %v575_v54 = vadd.f32 %v3368_v48, %v3346_v16  ;;  %v3555_v58 = vmul.f32 %v882_v23, %v3151_v53 }
 0x147   :  { %v620_v16 = vadd.f32 %v3414_v11, %v575_v54  ;;  %v3588_v11 = vmul.f32 %v934_v39, %v3151_v53  ;;  %v670_v39 = vadd.f32 %v3442_v32, %v619_v50  ;;  %v589_v32 = vadd.f32 %v3392_v61, %v3365_v30 }
 0x148   :  { %v3498_v43 = vpop.permute.xlu1 %982  ;;  %v3500_v42 = vpop.permute.xlu0 %980 }
 0x149   :  { %5262 = vst [vmem:[#allocation19_spill] sm:$0xff] %v3498_v43  ;;  %5263 = vst [vmem:[#allocation20_spill] sm:$0xff] %v3500_v42  ;;  %v909_v42 = vmul.f32 %v908_v6, %v3158_v5  ;;  %v895_v43 = vstv %s3510_s26  ;;  %v671_v54 = vadd.f32 %v3439_v35, %v620_v16  ;;  %s3713_s26 = sld [smem:[#allocation6 + $0x10]] }
 0x14a   :  { %v3575_v23 = vmul.f32 %v895_v43, %v3151_v53 }
 0x14b   :  { %v913_v48 = vrot.slane %v909_v42, 2  ;;  %v719_v35 = vadd.f32 %v3454_v57, %v671_v54  ;;  %v939_v42 = vrot.slane %v935_v34, 2  ;;  %v718_v57 = vadd.f32 %v3456_v60, %v670_v39 }
 0x14c   :  { %v3502_v31 = vpop.permute.xlu1 %999  ;;  %v3504_v2 = vpop.permute.xlu0 %997  ;;  %v901_v16 = vrot.slane %v3575_v23, 1  ;;  %v5278_v54 = vrot.slane %v3526_v4, 1  ;;  %v5301_v29 = vld [vmem:[#allocation17_spill] sm:$0xff] }
 0x14d   :  { %v764_v34 = vadd.f32 %v3466_v24, %v719_v35  ;;  %v1351_v35 = vstv %s3571_s8  ;;  %s5333_s8 = sld [smem:[#allocation31_spill]] }
 0x14e   :  { %v3641_v30 = vsel %vm104_vm0, %v874_v49, %v5278_v54 }
 0x150   :  { %v3508_v7 = vpop.permute.xlu1 %1016  ;;  %v3512_v41 = vpop.permute.xlu0 %1014 }
 0x151   :  { %5264 = vst [vmem:[#allocation21_spill] sm:$0xff] %v3508_v7  ;;  %5265 = vst [vmem:[#allocation22_spill] sm:$0xff] %v3512_v41  ;;  %v3545_v7 = vmul.f32 %v908_v6, %v3151_v53  ;;  %v857_v6 = vstv %s3516_s28  ;;  %s3724_s28 = sld [smem:[#allocation6 + $0x46]] }
 0x152   :  { %v3615_v26 = vmul.f32 %v857_v6, %v3158_v5 }
 0x154   :  { %v3518_v59 = vpop.permute.xlu1 %1033  ;;  %v3520_v14 = vpop.permute.xlu0 %1031 }
 0x155   :  { %5266 = vst [vmem:[#allocation23_spill] sm:$0xff] %v3518_v59  ;;  %5267 = vst [vmem:[#allocation24_spill] sm:$0xff] %v3520_v14  ;;  %v3534_v59 = vmul.f32 %v851_v47, %v3151_v53  ;;  %v3537_v14 = vmul.f32 %v851_v47, %v3158_v5 }
 0x158   :  { %v3531_v46 = vpop.permute.xlu1 %1050  ;;  %v3541_v41 = vpop.permute.xlu0 %1048 }
 0x159   :  { %5268 = vst [vmem:[#allocation25_spill] sm:$0xff] %v3531_v46  ;;  %5269 = vst [vmem:[#allocation26_spill] sm:$0xff] %v3541_v41  ;;  %v896_v41 = vmul.f32 %v895_v43, %v3158_v5  ;;  %v3596_v43 = vmul.f32 %v857_v6, %v3151_v53  ;;  %v940_v6 = vrot.slane %v3588_v11, 2 }
 0x15b   :  { %v900_v47 = vrot.slane %v896_v41, 1  ;;  %v588_v41 = vadd.f32 %v3399_v25, %v3371_v21  ;;  %v5279_v21 = vrot.slane %v3545_v7, 2  ;;  %v637_v25 = vadd.f32 %v3424_v22, %v589_v32 }
 0x15c   :  { %v3567_v46 = vpop.permute.xlu1 %1067  ;;  %v3578_v33 = vpop.permute.xlu0 %1065  ;;  %v5283_v22 = vrot.slane %v3555_v58, 1  ;;  %v1365_v32 = vstv %s3580_s9  ;;  %s3742_s9 = sld [smem:[#allocation6 + $0x1b]] }
 0x15d   :  { %5270 = vst [vmem:[#allocation27_spill] sm:$0xff] %v3567_v46  ;;  %5271 = vst [vmem:[#allocation28_spill] sm:$0xff] %v3578_v33  ;;  %v887_v46 = vrot.slane %v3548_v10, 1  ;;  %v863_v10 = vstv %s3528_s29  ;;  %v3646_v61 = vsel %vm144_vm1, %v913_v48, %v5279_v21  ;;  %v636_v60 = vadd.f32 %v3428_v15, %v588_v41  ;;  %s3726_s29 = sld [smem:[#allocation6]] }
 0x15e   :  { %v3636_v50 = vmul.f32 %v863_v10, %v3151_v53  ;;  %v763_v53 = vadd.f32 %v3468_v45, %v718_v57  ;;  %v3656_v24 = vmul.f32 %v863_v10, %v3158_v5  ;;  %v815_v48 = vadd.f32 %v3478_v20, %v764_v34 }
 0x15f   :  { %v3668_v15 = vsel %vm104_vm0, %v887_v46, %v5283_v22  ;;  %v3673_v5 = vsel %vm144_vm1, %v926_v17, %v927_v40  ;;  %v3678_v45 = vsel %vm104_vm0, %v900_v47, %v901_v16  ;;  %v688_v20 = vadd.f32 %v3446_v8, %v637_v25 }
 0x160   :  { %v3607_v33 = vpop.permute.xlu1 %1084  ;;  %v3618_v44 = vpop.permute.xlu0 %1082  ;;  %v687_v46 = vadd.f32 %v3448_v18, %v636_v60  ;;  %v814_v10 = vadd.f32 %v3480_v36, %v763_v53  ;;  %v3692_v17 = vsel %vm144_vm1, %v939_v42, %v940_v6  ;;  %v1337_v47 = vstv %s3569_s7  ;;  %s4080_s7 = sld [smem:[#allocation6 + $0xc]] }
 0x161   :  { %v1379_v8 = vstv %s3582_s4  ;;  %v603_v18 = vadd.f32 %v3404_v12, %v3387_v52  ;;  %v733_v36 = vadd.f32 %v3458_v3, %v688_v20  ;;  %v1396_v57 = vstv %s3590_s0  ;;  %s5337_s4 = sld [smem:[#allocation32_spill]]  ;;  %s5340_s0 = sld [smem:[#allocation33_spill]] }
 0x162   :  { %v732_v42 = vadd.f32 %v3460_v63, %v687_v46  ;;  %v602_v34 = vadd.f32 %v3408_v13, %v3395_v9  ;;  %v855_v52 = vadd.f32 %v3534_v59, %v815_v48  ;;  %v1413_v3 = vstv %s3592_s11  ;;  %5291 = sst [smem:[#allocation45_spill]] %s3742_s9  ;;  %s3829_s9 = sld [smem:[#allocation6 + $0x4c]] }
 0x163   :  { %v1430_v63 = vstv %s3600_s27  ;;  %5287 = sst [smem:[#allocation41_spill]] %s3726_s29  ;;  %v781_v54 = vadd.f32 %v3470_v55, %v733_v36  ;;  %v854_v25 = vadd.f32 %v3537_v14, %v814_v10  ;;  %v1447_v9 = vstv %s3602_s30  ;;  %s3813_s29 = sld [smem:[#allocation6 + $0x47]] }
 0x164   :  { %v3658_v49 = vpop.permute.xlu1 %1098  ;;  %v3680_v39 = vpop.permute.xlu0 %1096  ;;  %v780_v21 = vadd.f32 %v3472_v28, %v732_v42  ;;  %v1464_v13 = vstv %s3609_s6  ;;  %v1523_v48 = vstv %s3630_s13  ;;  %v1540_v22 = vstv %s3632_s14  ;;  %s3750_s6 = sld [smem:[#allocation6 + $0x1e]]  ;;  %s3769_s14 = sld [smem:[#allocation6 + $0x39]] }
 0x165   :  { %v832_v55 = vadd.f32 %v3482_v37, %v781_v54  ;;  %v5292_v20 = vrot.slane %v3526_v4, 1  ;;  %v1557_v37 = vstv %s3648_s15  ;;  %v1591_v36 = vstv %s3660_s17  ;;  %s3771_s15 = sld [smem:[#allocation6 + $0x3c]]  ;;  %s3777_s17 = sld [smem:[#allocation7 + $0x2]] }
 0x166   :  { %v831_v28 = vadd.f32 %v3484_v38, %v780_v21  ;;  %v1574_v38 = vstv %s3650_s16  ;;  %v654_v42 = vadd.f32 %v3432_v27, %v603_v18  ;;  %v653_v54 = vadd.f32 %v3435_v51, %v602_v34  ;;  %s3972_s11 = sld [smem:[#allocation6 + $0x19]]  ;;  %s3993_s27 = sld [smem:[#allocation6 + $0x34]] }
 0x167   :  { %v880_v46 = vadd.f32 %v5292_v20, %v855_v52  ;;  %v879_v4 = vadd.f32 %v3641_v30, %v854_v25  ;;  %v1608_v21 = vstv %s3662_s18  ;;  %v861_v27 = vadd.f32 %v3596_v43, %v832_v55  ;;  %s3783_s18 = sld [smem:[#allocation6 + $0xe]]  ;;  %s4078_s16 = sld [smem:[#allocation6 + $0x4f]] }
 0x168   :  { %v3710_v41 = vpop.permute.xlu1 %1112  ;;  %v3720_v12 = vpop.permute.xlu0 %1110  ;;  %v860_v51 = vadd.f32 %v3615_v26, %v831_v28  ;;  %v1780_v18 = vstv %s3702_s24  ;;  %v1797_v34 = vstv %s3704_s25  ;;  %v5293_v25 = vrot.slane %v3545_v7, 2  ;;  %5295 = sst [smem:[#allocation46_spill]] %s3829_s9  ;;  %s5309_s9 = smov 127  }
 0x169   :  { %v1814_v52 = vstv %s3713_s26  ;;  %v1831_v59 = vstv %s3715_s2  ;;  %v705_v43 = vadd.f32 %v3450_v0, %v654_v42  ;;  %v918_v26 = vadd.f32 %v3646_v61, %v879_v4  ;;  %s4157_s24 = sld [smem:[#allocation6 + $0xf]]  ;;  %s5324_s26 = sld [smem:[#allocation41_spill]] }
 0x16a   :  { %v919_v20 = vadd.f32 %v5293_v25, %v880_v46  ;;  %v704_v7 = vadd.f32 %v3452_v1, %v653_v54  ;;  %v1259_v25 = vstv %s3734_s19  ;;  %v5294_v61 = vrot.slane %v3555_v58, 1  ;;  %s3823_s19 = sld [smem:[#allocation6 + $0x31]]  ;;  %s5323_s25 = sld [smem:[#allocation44_spill]] }
 0x16b   :  { %v958_v0 = vadd.f32 %v3492_v62, %v918_v26  ;;  %v892_v4 = vadd.f32 %v3668_v15, %v860_v51  ;;  %v5297_v62 = vld [vmem:[#allocation25_spill] sm:$0xff]  ;;  %v5299_v51 = vld [vmem:[#allocation12_spill] sm:$0xff]  ;;  %s5327_s2 = sld [smem:[#allocation42_spill]]  ;;  %s4441_s13 = sld [smem:[#allocation6 + $0x50]] }
 0x16c   :  { %v3746_v14 = vpop.permute.xlu1 %1126  ;;  %v3756_v10 = vpop.permute.xlu0 %1124  ;;  %v959_v46 = vadd.f32 %v3490_v19, %v919_v20  ;;  %v893_v42 = vadd.f32 %v5294_v61, %v861_v27  ;;  %s4439_s30 = sld [smem:[#allocation6 + $0x35]] }
 0x16d   :  { %v1003_v15 = vadd.f32 %v3504_v2, %v958_v0  ;;  %v931_v28 = vadd.f32 %v3673_v5, %v892_v4  ;;  %v5298_v2 = vld [vmem:[#allocation26_spill] sm:$0xff]  ;;  %v1907_v26 = vstv %s3783_s18  ;;  %s4349_s18 = sld [smem:[#allocation6 + $0x17]] }
 0x16e   :  { %v1004_v19 = vadd.f32 %v3502_v31, %v959_v46  ;;  %v747_v31 = vadd.f32 %v3462_v56, %v705_v43  ;;  %v5296_v46 = vld [vmem:[#allocation13_spill] sm:$0xff]  ;;  %v932_v20 = vadd.f32 %v927_v40, %v893_v42  ;;  %v5300_v56 = vld [vmem:[#allocation15_spill] sm:$0xff]  ;;  %v5302_v5 = vld [vmem:[#allocation18_spill] sm:$0xff] }
 0x16f   :  { %v746_v61 = vadd.f32 %v5296_v46, %v704_v7  ;;  %v1054_v0 = vadd.f32 %v5298_v2, %v1003_v15  ;;  %v972_v42 = vadd.f32 %v5302_v5, %v931_v28  ;;  %v1941_v15 = vstv %s3796_s21  ;;  %v5303_v46 = vld [vmem:[#allocation14_spill] sm:$0xff]  ;;  %s5357_s21 = sld [smem:[#allocation46_spill]] }
 0x170   :  { %v1144_v30 = vpop.permute.xlu1 %1143  ;;  %v1142_v53 = vpop.permute.xlu0 %1141  ;;  %v1055_v1 = vadd.f32 %v5297_v62, %v1004_v19  ;;  %v798_v60 = vadd.f32 %v5299_v51, %v747_v31  ;;  %v973_v40 = vadd.f32 %v5301_v29, %v932_v20  ;;  %v5304_v31 = vld [vmem:[#allocation16_spill] sm:$0xff]  ;;  %v5306_v62 = vld [vmem:[#allocation22_spill] sm:$0xff]  ;;  %v1975_v28 = vstv %s3811_s3  ;;  %s4406_s3 = sld [smem:[#allocation6 + $0x32]] }
 0x171   :  { %v797_v43 = vadd.f32 %v5300_v56, %v746_v61  ;;  %v1102_v4 = vadd.f32 %v3680_v39, %v1054_v0  ;;  %v1020_v58 = vadd.f32 %v5306_v62, %v972_v42 }
 0x172   :  { %v1103_v7 = vadd.f32 %v3658_v49, %v1055_v1  ;;  %v849_v51 = vadd.f32 %v5303_v46, %v798_v60  ;;  %v1958_v49 = vstv %s3802_s20  ;;  %v5305_v1 = vld [vmem:[#allocation21_spill] sm:$0xff]  ;;  %v1992_v60 = vstv %s3813_s29  ;;  %s4415_s20 = sld [smem:[#allocation6 + $0x4d]]  ;;  %s4423_s29 = sld [smem:[#allocation6 + $0x1a]] }
 0x173   :  { %v848_v61 = vadd.f32 %v5304_v31, %v797_v43  ;;  %v1021_v56 = vadd.f32 %v5305_v1, %v973_v40  ;;  %v1147_v20 = vadd.f32 %v1142_v53, %v1102_v4  ;;  %v5308_v40 = vld [vmem:[#allocation28_spill] sm:$0xff] }
 0x174   :  { %v3808_v55 = vpop.permute.xlu1 %1160  ;;  %v3816_v54 = vpop.permute.xlu0 %1158  ;;  %v1148_v2 = vadd.f32 %v1144_v30, %v1103_v7  ;;  %v5307_v30 = vld [vmem:[#allocation27_spill] sm:$0xff]  ;;  %v1071_v46 = vadd.f32 %v5308_v40, %v1020_v58  ;;  %v867_v42 = vadd.f32 %v3636_v50, %v849_v51 }
 0x175   :  { %v1072_v7 = vadd.f32 %v5307_v30, %v1021_v56  ;;  %v866_v4 = vadd.f32 %v3656_v24, %v848_v61 }
 0x176   :  { %v1116_v58 = vadd.f32 %v3720_v12, %v1071_v46 }
 0x177   :  { %v1117_v1 = vadd.f32 %v3710_v41, %v1072_v7 }
 0x178   :  { %v3839_v27 = vpop.permute.xlu1 %1177  ;;  %v3845_v19 = vpop.permute.xlu0 %1175 }
 0x179   :  { %v1165_v46 = vadd.f32 %v3808_v55, %v1117_v1 }
 0x17c   :  { %v1195_v29 = vpop.permute.xlu1 %1194  ;;  %v1193_v39 = vpop.permute.xlu0 %1192 }
 0x17d   :  { %v3858_v5 = vadd.f32 %v1195_v29, %v1148_v2  ;;  %v3865_v62 = vadd.f32 %v1193_v39, %v1147_v20 }
 0x17f   :  { %v1339_v31 = vmul.f32 %v1337_v47, %v3858_v5  ;;  %v3876_v2 = vmul.f32 %v1379_v8, %v3858_v5  ;;  %v1338_v50 = vmul.f32 %v1337_v47, %v3865_v62  ;;  %v1380_v24 = vmul.f32 %v1379_v8, %v3865_v62 }
 0x180   :  { %v1353_v51 = vmul.f32 %v1351_v35, %v3858_v5  ;;  %v3894_v41 = vmul.f32 %v1396_v57, %v3858_v5  ;;  %v1397_v12 = vmul.f32 %v1396_v57, %v3865_v62  ;;  %v1352_v47 = vmul.f32 %v1351_v35, %v3865_v62 }
 0x181   :  { %1344 = vrot.lane.b32.xlu1 %v1339_v31, %s5309_s9  ;;  %v1385_v61 = vrot.slane %v3876_v2, 1  ;;  %1342 = vrot.lane.b32.xlu0 %v1338_v50, %s5309_s9  ;;  %v1384_v8 = vrot.slane %v1380_v24, 1  ;;  %v3906_v56 = vmul.f32 %v1413_v3, %v3858_v5  ;;  %v1414_v20 = vmul.f32 %v1413_v3, %v3865_v62  ;;  %v1212_v24 = vpop.permute.xlu1 %1211 }
 0x182   :  { %v1402_v29 = vrot.slane %v3894_v41, 1  ;;  %v1401_v39 = vrot.slane %v1397_v12, 1  ;;  %v3915_v30 = vmul.f32 %v1430_v63, %v3858_v5  ;;  %v1431_v57 = vmul.f32 %v1430_v63, %v3865_v62  ;;  %v1210_v12 = vpop.permute.xlu0 %1209 }
 0x183   :  { %v1386_v35 = vsel %vm104_vm0, %v1384_v8, %v1385_v61  ;;  %v1419_v7 = vrot.slane %v3906_v56, 1  ;;  %v1418_v40 = vrot.slane %v1414_v20, 1  ;;  %v3925_v3 = vmul.f32 %v1447_v9, %v3858_v5 }
 0x184   :  { %v1403_v63 = vsel %vm104_vm0, %v1401_v39, %v1402_v29  ;;  %v1436_v31 = vrot.slane %v3915_v30, 2  ;;  %v1435_v2 = vrot.slane %v1431_v57, 2  ;;  %v1164_v50 = vadd.f32 %v3816_v54, %v1116_v58 }
 0x185   :  { %1358 = vrot.lane.b32.xlu1 %v1353_v51, %s5309_s9  ;;  %1356 = vrot.lane.b32.xlu0 %v1352_v47, %s5309_s9  ;;  %v3938_v55 = vsel %vm104_vm0, %v1418_v40, %v1419_v7  ;;  %v1453_v1 = vrot.slane %v3925_v3, 2  ;;  %v1448_v51 = vmul.f32 %v1447_v9, %v3865_v62  ;;  %v1367_v8 = vmul.f32 %v1365_v32, %v3858_v5 }
 0x186   :  { %v3950_v54 = vsel %vm144_vm1, %v1435_v2, %v1436_v31  ;;  %v3955_v58 = vmul.f32 %v1464_v13, %v3858_v5  ;;  %v1465_v47 = vmul.f32 %v1464_v13, %v3865_v62  ;;  %v906_v9 = vadd.f32 %v901_v16, %v867_v42 }
 0x187   :  { %v905_v20 = vadd.f32 %v3678_v45, %v866_v4  ;;  %v1366_v39 = vmul.f32 %v1365_v32, %v3865_v62  ;;  %v1452_v57 = vrot.slane %v1448_v51, 2  ;;  %v3966_v40 = vadd.f32 %v1212_v24, %v1165_v46 }
 0x188   :  { %v3968_v2 = vadd.f32 %v1210_v12, %v1164_v50  ;;  %v1470_v13 = vrot.slane %v3955_v58, 2  ;;  %v1469_v23 = vrot.slane %v1465_v47, 2  ;;  %v3983_v45 = vmul.f32 %v1523_v48, %v3858_v5 }
 0x189   :  { %1372 = vrot.lane.b32.xlu1 %v1367_v8, %s5309_s9  ;;  %1370 = vrot.lane.b32.xlu0 %v1366_v39, %s5309_s9  ;;  %v3978_v16 = vsel %vm144_vm1, %v1452_v57, %v1453_v1  ;;  %v1524_v32 = vmul.f32 %v1523_v48, %v3865_v62  ;;  %v3991_v42 = vmul.f32 %v1540_v22, %v3858_v5  ;;  %v5332_v3 = vstv %s5327_s2 }
 0x18a   :  { %v3998_v4 = vsel %vm144_vm1, %v1469_v23, %v1470_v13  ;;  %v1541_v46 = vmul.f32 %v1540_v22, %v3865_v62  ;;  %v4006_v50 = vmul.f32 %v1557_v37, %v3858_v5  ;;  %v1558_v48 = vmul.f32 %v1557_v37, %v3865_v62 }
 0x18b   :  { %v1529_v24 = vrot.slane %v3983_v45, 1  ;;  %v1528_v12 = vrot.slane %v1524_v32, 1  ;;  %v5190_v51 = vrot.slane %v3991_v42, 1  ;;  %v4016_v8 = vmul.f32 %v1574_v38, %v3858_v5 }
 0x18c   :  { %v1545_v22 = vrot.slane %v1541_v46, 1  ;;  %v5185_v47 = vrot.slane %v4006_v50, 1  ;;  %v1562_v39 = vrot.slane %v1558_v48, 1  ;;  %v1575_v37 = vmul.f32 %v1574_v38, %v3865_v62 }
 0x18d   :  { %1389 = vrot.lane.b32.xlu1 %v1385_v61, %s5309_s9  ;;  %1387 = vrot.lane.b32.xlu0 %v1386_v35, %s5309_s9  ;;  %v4027_v57 = vsel %vm104_vm0, %v1528_v12, %v1529_v24  ;;  %v5182_v23 = vrot.slane %v4016_v8, 2  ;;  %v4033_v61 = vmul.f32 %v1591_v36, %v3858_v5  ;;  %v1592_v32 = vmul.f32 %v1591_v36, %v3865_v62 }
 0x18e   :  { %v4041_v38 = vsel %vm104_vm0, %v1545_v22, %v5190_v51  ;;  %v4046_v35 = vsel %vm104_vm0, %v1562_v39, %v5185_v47  ;;  %v1579_v46 = vrot.slane %v1575_v37, 2  ;;  %v4051_v48 = vmul.f32 %v1608_v21, %v3858_v5  ;;  %v5316_v37 = vld [vmem:[#allocation19_spill] sm:$0xff] }
 0x18f   :  { %v945_v12 = vadd.f32 %v940_v6, %v906_v9  ;;  %v5184_v36 = vrot.slane %v4033_v61, 2  ;;  %v1596_v53 = vrot.slane %v1592_v32, 2  ;;  %v1609_v22 = vmul.f32 %v1608_v21, %v3865_v62 }
 0x190   :  { %v944_v39 = vadd.f32 %v3692_v17, %v905_v20  ;;  %v4066_v11 = vsel %vm144_vm1, %v1579_v46, %v5182_v23  ;;  %v5183_v6 = vrot.slane %v4051_v48, 2  ;;  %v5317_v20 = vld [vmem:[#allocation20_spill] sm:$0xff]  ;;  %v5318_v46 = vstv %s3696_s23  ;;  %s4459_s23 = sld [smem:[#allocation6 + $0x15]] }
 0x191   :  { %1406 = vrot.lane.b32.xlu1 %v1402_v29, %s5309_s9  ;;  %v987_v21 = vadd.f32 %v5316_v37, %v945_v12  ;;  %1404 = vrot.lane.b32.xlu0 %v1403_v63, %s5309_s9  ;;  %v4075_v17 = vsel %vm144_vm1, %v1596_v53, %v5184_v36  ;;  %v1613_v41 = vrot.slane %v1609_v22, 2  ;;  %v4086_v23 = vmul.f32 %v5318_v46, %v3966_v40  ;;  %v5322_v29 = vld [vmem:[#allocation23_spill] sm:$0xff] }
 0x192   :  { %v986_v32 = vadd.f32 %v5317_v20, %v944_v39  ;;  %v5319_v63 = vmov %v5318_v46  ;;  %v4094_v53 = vmul.f32 %v1780_v18, %v3966_v40  ;;  %v1781_v39 = vmul.f32 %v1780_v18, %v3968_v2 }
 0x193   :  { %v1764_v12 = vmul.f32 %v5319_v63, %v3968_v2  ;;  %v4099_v22 = vsel %vm144_vm1, %v1613_v41, %v5183_v6  ;;  %v4107_v37 = vmul.f32 %v1797_v34, %v3966_v40  ;;  %v1798_v20 = vmul.f32 %v1797_v34, %v3968_v2 }
 0x194   :  { %v5186_v46 = vrot.slane %v4086_v23, 1  ;;  %v5188_v63 = vrot.slane %v4094_v53, 1  ;;  %v4120_v18 = vmul.f32 %v1814_v52, %v3966_v40  ;;  %v1785_v6 = vrot.slane %v1781_v39, 1 }
 0x195   :  { %1423 = vrot.lane.b32.xlu1 %v1419_v7, %s5309_s9  ;;  %v1768_v41 = vrot.slane %v1764_v12, 1  ;;  %1421 = vrot.lane.b32.xlu0 %v3938_v55, %s5309_s9  ;;  %v5187_v34 = vrot.slane %v4107_v37, 1  ;;  %v1802_v36 = vrot.slane %v1798_v20, 1  ;;  %v1815_v56 = vmul.f32 %v1814_v52, %v3968_v2 }
 0x196   :  { %v5189_v12 = vrot.slane %v4120_v18, 2  ;;  %v4137_v47 = vmul.f32 %v1831_v59, %v3966_v40  ;;  %v1832_v55 = vmul.f32 %v1831_v59, %v3968_v2  ;;  %v4145_v52 = vsel %vm104_vm0, %v1785_v6, %v5188_v63 }
 0x197   :  { %v4131_v7 = vsel %vm104_vm0, %v1768_v41, %v5186_v46  ;;  %v4150_v39 = vsel %vm104_vm0, %v1802_v36, %v5187_v34  ;;  %v1819_v20 = vrot.slane %v1815_v56, 2  ;;  %v5320_v41 = vstv %s3724_s28  ;;  %s5330_s28 = sld [smem:[#allocation45_spill]] }
 0x198   :  { %v4155_v46 = vmul.f32 %v5320_v41, %v3966_v40  ;;  %v1038_v59 = vadd.f32 %v5322_v29, %v987_v21  ;;  %v5192_v36 = vrot.slane %v4137_v47, 2  ;;  %v1836_v6 = vrot.slane %v1832_v55, 2  ;;  %v5326_v29 = vld [vmem:[#allocation24_spill] sm:$0xff] }
 0x199   :  { %1440 = vrot.lane.b32.xlu1 %v1436_v31, %s5309_s9  ;;  %v5325_v56 = vmov %v5320_v41  ;;  %1438 = vrot.lane.b32.xlu0 %v3950_v54, %s5309_s9  ;;  %v4172_v41 = vsel %vm144_vm1, %v1819_v20, %v5189_v12  ;;  %v1037_v63 = vadd.f32 %v5326_v29, %v986_v32  ;;  %v4187_v20 = vmul.f32 %v1259_v25, %v3858_v5 }
 0x19a   :  { %v1849_v34 = vmul.f32 %v5325_v56, %v3968_v2  ;;  %v5191_v30 = vrot.slane %v4155_v46, 2  ;;  %v1089_v55 = vadd.f32 %v3607_v33, %v1038_v59  ;;  %v4182_v56 = vsel %vm144_vm1, %v1836_v6, %v5192_v36 }
 0x19b   :  { %v5328_v12 = vstv %s5323_s25  ;;  %v5329_v31 = vstv %s5324_s26  ;;  %v1260_v33 = vmul.f32 %v1259_v25, %v3865_v62  ;;  %v1088_v59 = vadd.f32 %v3618_v44, %v1037_v63  ;;  %v1229_v25 = vpop.permute.xlu1 %1228 }
 0x19c   :  { %v1853_v54 = vrot.slane %v1849_v34, 2  ;;  %v4192_v51 = vmul.f32 %v5328_v12, %v3858_v5  ;;  %v1242_v32 = vmul.f32 %v5329_v31, %v3865_v62  ;;  %v1131_v34 = vadd.f32 %v3746_v14, %v1089_v55 }
 0x19d   :  { %1457 = vrot.lane.b32.xlu1 %v1453_v1, %s5309_s9  ;;  %v5331_v6 = vstv %s5323_s25  ;;  %1455 = vrot.lane.b32.xlu0 %v3978_v16, %s5309_s9  ;;  %v5194_v44 = vrot.slane %v4187_v20, 1  ;;  %v1264_v1 = vrot.slane %v1260_v33, 1  ;;  %v1130_v29 = vadd.f32 %v3756_v10, %v1088_v59  ;;  %s4461_s25 = sld [smem:[#allocation6 + $0x18]] }
 0x19e   :  { %v4208_v12 = vsel %vm144_vm1, %v1853_v54, %v5191_v30  ;;  %v1299_v31 = vmul.f32 %v5331_v6, %v3865_v62  ;;  %v5193_v14 = vrot.slane %v4192_v51, 2  ;;  %v1244_v63 = vadd.f32 %v1242_v32, %v5332_v3 }
 0x19f   :  { %v1182_v55 = vadd.f32 %v3839_v27, %v1131_v34  ;;  %v5334_v6 = vstv %s3750_s6  ;;  %v1266_v16 = vsel %vm104_vm0, %v1264_v1, %v5194_v44  ;;  %v5335_v36 = vstv %s3752_s1  ;;  %s5345_s6 = smov 126  }
 0x1a0   :  { %v1303_v54 = vrot.slane %v1299_v31, 2  ;;  %v4224_v30 = vmul.f32 %v5334_v6, %v3858_v5  ;;  %v4232_v32 = vmul.f32 %v5335_v36, %v3858_v5  ;;  %v5336_v10 = vstv %s5330_s28 }
 0x1a1   :  { %v1248_v27 = vmul.f32 %v5336_v10, %v3865_v62  ;;  %v4239_v59 = vadd.f32 %v3845_v19, %v1130_v29  ;;  %v4241_v34 = vadd.f32 %v1229_v25, %v1182_v55  ;;  %1474 = vrot.lane.b32.xlu1 %v1470_v13, %s5309_s9  ;;  %v1269_v31 = vadd.f32 %v1266_v16, %v1244_v63 }
 0x1a2   :  { %v1305_v36 = vsel %vm144_vm1, %v1303_v54, %v5193_v14  ;;  %1472 = vrot.lane.b32.xlu0 %v3998_v4, %s5309_s9  ;;  %v5338_v19 = vstv %s5333_s8  ;;  %v5196_v25 = vrot.slane %v4224_v30, 1  ;;  %v5195_v1 = vrot.slane %v4232_v32, 2  ;;  %s2537_s8 = sld [smem:[#allocation6 + $0xb]] }
 0x1a3   :  { %v1483_v3 = vmul.f32 %v5338_v19, %v3858_v5  ;;  %v5339_v58 = vmov %v5334_v6  ;;  %v4259_v63 = vadd.f32 %v1305_v36, %v1269_v31  ;;  %v5341_v29 = vstv %s3761_s12 }
 0x1a4   :  { %v1273_v13 = vmul.f32 %v5339_v58, %v3865_v62  ;;  %v1250_v55 = vadd.f32 %v1248_v27, %v5341_v29  ;;  %v5342_v54 = vstv %s3752_s1  ;;  %v4269_v6 = vmul.f32 %v1907_v26, %v3966_v40  ;;  %s4321_s1 = sld [smem:[#allocation6 + $0x27]] }
 0x1a5   :  { %v1312_v4 = vmul.f32 %v5342_v54, %v3865_v62  ;;  %v5343_v16 = vmov %v5338_v19  ;;  %v1908_v58 = vmul.f32 %v1907_v26, %v3968_v2  ;;  %v5344_v31 = vstv %s3769_s14  ;;  %1488 = vrot.lane.b32.xlu1 %v1483_v3, %s5345_s6 }
 0x1a6   :  { %v1482_v10 = vmul.f32 %v5343_v16, %v3865_v62  ;;  %v1277_v19 = vrot.slane %v1273_v13, 1  ;;  %v4280_v36 = vmul.f32 %v5344_v31, %v3858_v5  ;;  %v5346_v27 = vstv %s5337_s4  ;;  %s2538_s4 = sld [smem:[#allocation6 + $0x26]] }
 0x1a7   :  { %v1497_v29 = vmul.f32 %v5346_v27, %v3858_v5  ;;  %v1316_v54 = vrot.slane %v1312_v4, 2  ;;  %v5197_v14 = vrot.slane %v4269_v6, 1  ;;  %v5347_v13 = vstv %s3771_s15 }
 0x1a8   :  { %v4290_v16 = vmul.f32 %v5347_v13, %v3858_v5  ;;  %1486 = vrot.lane.b32.xlu0 %v1482_v10, %s5345_s6  ;;  %v5348_v26 = vmov %v5346_v27  ;;  %v5349_v3 = vstv %s5340_s0  ;;  %v1279_v4 = vsel %vm104_vm0, %v1277_v19, %v5196_v25 }
 0x1a9   :  { %v1496_v31 = vmul.f32 %v5348_v26, %v3865_v62  ;;  %v1511_v44 = vmul.f32 %v5349_v3, %v3858_v5  ;;  %v1912_v27 = vrot.slane %v1908_v58, 1  ;;  %v1282_v33 = vadd.f32 %v1279_v4, %v1250_v55  ;;  %1502 = vrot.lane.b32.xlu1 %v1497_v29, %s5345_s6 }
 0x1aa   :  { %v1318_v13 = vsel %vm144_vm1, %v1316_v54, %v5195_v1  ;;  %v5202_v10 = vrot.slane %v4280_v36, 1  ;;  %v5350_v26 = vstv %s3763_s10  ;;  %v5198_v19 = vrot.slane %v4290_v16, 2 }
 0x1ab   :  { %v1254_v21 = vmul.f32 %v5350_v26, %v3865_v62  ;;  %v4312_v3 = vsel %vm104_vm0, %v1912_v27, %v5197_v14  ;;  %v5351_v55 = vstv %s3769_s14  ;;  %v5352_v4 = vstv %s3771_s15  ;;  %s4336_s14 = sld [smem:[#allocation6 + $0x2a]] }
 0x1ac   :  { %v1286_v58 = vmul.f32 %v5351_v55, %v3865_v62  ;;  %v1325_v54 = vmul.f32 %v5352_v4, %v3865_v62  ;;  %v4324_v26 = vadd.f32 %v1318_v13, %v1282_v33  ;;  %v5353_v1 = vstv %s3777_s17  ;;  %s4338_s15 = sld [smem:[#allocation6 + $0x42]]  ;;  %1500 = vrot.lane.b32.xlu0 %v1496_v31, %s5345_s6  ;;  %v1227_v31 = vpop.permute.xlu0 %1226 }
 0x1ad   :  { %v1256_v27 = vadd.f32 %v1254_v21, %v5353_v1  ;;  %v5354_v25 = vstv %s3790_s22  ;;  %v5356_v33 = vstv %s5340_s0  ;;  %v4347_v21 = vmul.f32 %v1941_v15, %v3966_v40  ;;  %s4351_s22 = sld [smem:[#allocation6 + $0x45]]  ;;  %1516 = vrot.lane.b32.xlu1 %v1511_v44, %s5345_s6  ;;  %s2539_s0 = sld [smem:[#allocation6 + $0x41]] }
 0x1ae   :  { %v4331_v14 = vmul.f32 %v5354_v25, %v3966_v40  ;;  %v5355_v9 = vmov %v5354_v25  ;;  %v1510_v29 = vmul.f32 %v5356_v33, %v3865_v62  ;;  %v1290_v13 = vrot.slane %v1286_v58, 1 }
 0x1af   :  { %v1925_v55 = vmul.f32 %v5355_v9, %v3968_v2  ;;  %v1329_v4 = vrot.slane %v1325_v54, 2  ;;  %v1942_v1 = vmul.f32 %v1941_v15, %v3968_v2  ;;  %v4360_v62 = vmul.f32 %v1958_v49, %v3966_v40 }
 0x1b0   :  { %v5204_v9 = vrot.slane %v4331_v14, 1  ;;  %v1292_v58 = vsel %vm104_vm0, %v1290_v13, %v5202_v10  ;;  %v1959_v15 = vmul.f32 %v1958_v49, %v3968_v2  ;;  %1514 = vrot.lane.b32.xlu0 %v1510_v29, %s5345_s6  ;;  %v1976_v49 = vmul.f32 %v1975_v28, %v3968_v2 }
 0x1b1   :  { %v1929_v25 = vrot.slane %v1925_v55, 1  ;;  %v1331_v54 = vsel %vm144_vm1, %v1329_v4, %v5198_v19  ;;  %v5201_v55 = vrot.slane %v4347_v21, 1  ;;  %v1295_v33 = vadd.f32 %v1292_v58, %v1256_v27  ;;  %1533 = vrot.lane.b32.xlu1 %v1529_v24, %s5345_s6 }
 0x1b2   :  { %v1946_v0 = vrot.slane %v1942_v1, 1  ;;  %v5200_v13 = vrot.slane %v4360_v62, 2  ;;  %v1963_v4 = vrot.slane %v1959_v15, 2  ;;  %v4383_v19 = vmul.f32 %v1975_v28, %v3966_v40 }
 0x1b3   :  { %v4376_v43 = vsel %vm104_vm0, %v1929_v25, %v5204_v9  ;;  %v4391_v44 = vmul.f32 %v1992_v60, %v3966_v40  ;;  %v4394_v27 = vadd.f32 %v1227_v31, %v4239_v59  ;;  %v4396_v25 = vadd.f32 %v1331_v54, %v1295_v33 }
 0x1b4   :  { %v4401_v29 = vsel %vm104_vm0, %v1946_v0, %v5201_v55  ;;  %v1993_v1 = vmul.f32 %v1992_v60, %v3968_v2  ;;  %v4411_v28 = vsel %vm144_vm1, %v1963_v4, %v5200_v13  ;;  %v5199_v59 = vrot.slane %v4383_v19, 2  ;;  %1531 = vrot.lane.b32.xlu0 %v4027_v57, %s5345_s6 }
 0x1b5   :  { %v1980_v31 = vrot.slane %v1976_v49, 2  ;;  %v5203_v58 = vrot.slane %v4391_v44, 2  ;;  %v5358_v45 = vstv %s3821_s5  ;;  %s4477_s5 = sld [smem:[#allocation6 + $0x30]] }
 0x1b6   :  { %v1997_v60 = vrot.slane %v1993_v1, 2  ;;  %v4435_v24 = vmul.f32 %v5358_v45, %v4241_v34  ;;  %v5360_v1 = vmov %v5358_v45 }
 0x1b7   :  { %v4430_v33 = vsel %vm144_vm1, %v1980_v31, %v5199_v59  ;;  %v2148_v31 = vmul.f32 %v5360_v1, %v4394_v27  ;;  %v5361_v59 = vstv %s3823_s19  ;;  %s4479_s19 = sld [smem:[#allocation6 + $0x33]] }
 0x1b8   :  { %5359 = vst [vmem:[#allocation13_spill] sm:$0xff] %v4435_v24  ;;  %v4446_v57 = vsel %vm144_vm1, %v1997_v60, %v5203_v58  ;;  %v4454_v13 = vmul.f32 %v5361_v59, %v4241_v34  ;;  %v5362_v45 = vmov %v5361_v59  ;;  %v5206_v10 = vrot.slane %v4435_v24, 1  ;;  %1548 = vrot.lane.b32.xlu0 %v4041_v38, %s5345_s6 }
 0x1b9   :  { %v2165_v55 = vmul.f32 %v5362_v45, %v4394_v27  ;;  %v5363_v60 = vstv %s5357_s21  ;;  %v5366_v59 = vstv %s3972_s11  ;;  %v5368_v45 = vrot.slane %v3991_v42, 1  ;;  %s5381_s11 = sld [smem:[#allocation38_spill]] }
 0x1ba   :  { %v4467_v58 = vmul.f32 %v5363_v60, %v4241_v34  ;;  %v5365_v1 = vmov %v5363_v60  ;;  %v4475_v49 = vmul.f32 %v5366_v59, %v4241_v34  ;;  %v2152_v15 = vrot.slane %v2148_v31, 1 }
 0x1bb   :  { %v2182_v9 = vmul.f32 %v5365_v1, %v4394_v27  ;;  %1550 = vrot.lane.b32.xlu1 %v5368_v45, %s5345_s6  ;;  %v5208_v60 = vrot.slane %v4454_v13, 1  ;;  %v2169_v4 = vrot.slane %v2165_v55, 1  ;;  %v5369_v1 = vmov %v5366_v59 }
 0x1bc   :  { %5364 = vst [vmem:[#allocation25_spill] sm:$0xff] %v4467_v58  ;;  %5367 = vst [vmem:[#allocation26_spill] sm:$0xff] %v4475_v49  ;;  %v2199_v54 = vmul.f32 %v5369_v1, %v4394_v27  ;;  %v5207_v59 = vrot.slane %v4467_v58, 1  ;;  %v5370_v45 = vstv %s3993_s27  ;;  %v4500_v55 = vsel %vm104_vm0, %v2152_v15, %v5206_v10  ;;  %1565 = vrot.lane.b32.xlu0 %v4046_v35, %s5345_s6  ;;  %s4657_s27 = sld [smem:[#allocation6 + $0x4b]] }
 0x1bd   :  { %v2186_v0 = vrot.slane %v2182_v9, 1  ;;  %v4495_v31 = vmul.f32 %v5370_v45, %v4241_v34  ;;  %v4505_v38 = vsel %vm104_vm0, %v2169_v4, %v5208_v60  ;;  %v5373_v1 = vmov %v5370_v45 }
 0x1be   :  { %5372 = vst [vmem:[#allocation15_spill] sm:$0xff] %v4505_v38  ;;  %v2203_v9 = vrot.slane %v2199_v54, 2  ;;  %v2216_v42 = vmul.f32 %v5373_v1, %v4394_v27  ;;  %v5375_v4 = vrot.slane %v4006_v50, 1  ;;  %v5376_v54 = vrot.slane %v4475_v49, 2 }
 0x1bf   :  { %5371 = vst [vmem:[#allocation12_spill] sm:$0xff] %v4495_v31  ;;  %v4513_v45 = vsel %vm104_vm0, %v2186_v0, %v5207_v59  ;;  %v5378_v59 = vstv %s4078_s16  ;;  %v2342_v50 = vstv %s4423_s29  ;;  %v5386_v24 = vrot.slane %v4016_v8, 2  ;;  %s4659_s16 = sld [smem:[#allocation6 + $0x4e]] }
 0x1c0   :  { %5374 = vst [vmem:[#allocation17_spill] sm:$0xff] %v4513_v45  ;;  %1567 = vrot.lane.b32.xlu1 %v5375_v4, %s5345_s6  ;;  %v4524_v1 = vsel %vm144_vm1, %v2203_v9, %v5376_v54  ;;  %v2220_v0 = vrot.slane %v2216_v42, 2  ;;  %v4529_v60 = vmul.f32 %v5378_v59, %v4241_v34  ;;  %v5380_v15 = vmov %v5378_v59  ;;  %1582 = vrot.lane.b32.xlu0 %v4066_v11, %s5345_s6 }
 0x1c1   :  { %5377 = vst [vmem:[#allocation18_spill] sm:$0xff] %v4524_v1  ;;  %v2233_v10 = vmul.f32 %v5380_v15, %v4394_v27  ;;  %v5382_v9 = vrot.slane %v4495_v31, 2  ;;  %v5384_v1 = vstv %s4080_s7  ;;  %v5392_v8 = vstv %s5381_s11 }
 0x1c2   :  { %5379 = vst [vmem:[#allocation14_spill] sm:$0xff] %v4529_v60  ;;  %v5210_v59 = vrot.slane %v4529_v60, 2  ;;  %v4549_v49 = vmul.f32 %v5384_v1, %v3966_v40  ;;  %v5395_v11 = vstv %s4336_s14  ;;  %s4988_s14 = sld [smem:[#allocation6 + $0x3f]] }
 0x1c3   :  { %v4542_v42 = vsel %vm144_vm1, %v2220_v0, %v5382_v9  ;;  %v2237_v54 = vrot.slane %v2233_v10, 2  ;;  %v5388_v10 = vstv %s4157_s24  ;;  %v5390_v9 = vstv %s4080_s7  ;;  %s5427_s7 = sld [smem:[#allocation39_spill]]  ;;  %s5432_s24 = sld [smem:[#allocation40_spill]] }
 0x1c4   :  { %5383 = vst [vmem:[#allocation16_spill] sm:$0xff] %v4542_v42  ;;  %5385 = vst [vmem:[#allocation21_spill] sm:$0xff] %v4549_v49  ;;  %1584 = vrot.lane.b32.xlu1 %v5386_v24, %s5345_s6  ;;  %v4565_v1 = vmul.f32 %v5388_v10, %v3966_v40  ;;  %v1644_v4 = vmul.f32 %v5390_v9, %v3968_v2  ;;  %v5391_v45 = vmov %v5388_v10  ;;  %v5394_v10 = vstv %s4321_s1  ;;  %s4983_s1 = sld [smem:[#allocation6 + $0x2f]] }
 0x1c5   :  { %v4560_v0 = vsel %vm144_vm1, %v2237_v54, %v5210_v59  ;;  %v1683_v35 = vmul.f32 %v5391_v45, %v3968_v2  ;;  %v1723_v24 = vmul.f32 %v5392_v8, %v3966_v40  ;;  %v5393_v54 = vmov %v5392_v8  ;;  %1599 = vrot.lane.b32.xlu0 %v4075_v17, %s5345_s6 }
 0x1c6   :  { %5387 = vst [vmem:[#allocation22_spill] sm:$0xff] %v4560_v0  ;;  %5389 = vst [vmem:[#allocation27_spill] sm:$0xff] %v4565_v1  ;;  %v1722_v59 = vmul.f32 %v5393_v54, %v3968_v2  ;;  %v4585_v0 = vmul.f32 %v5394_v10, %v3966_v40  ;;  %v1648_v60 = vrot.slane %v1644_v4, 1  ;;  %v4591_v42 = vmul.f32 %v5395_v11, %v3966_v40 }
 0x1c7   :  { %v1687_v45 = vrot.slane %v1683_v35, 2  ;;  %v5397_v54 = vmov %v5394_v10  ;;  %v5398_v31 = vmov %v5395_v11  ;;  %v5399_v9 = vstv %s4349_s18  ;;  %s2548_s18 = sld [smem:[#allocation6 + $0x48]] }
 0x1c8   :  { %5396 = vst [vmem:[#allocation28_spill] sm:$0xff] %v4591_v42  ;;  %v1657_v15 = vmul.f32 %v5397_v54, %v3968_v2  ;;  %v1696_v10 = vmul.f32 %v5398_v31, %v3968_v2  ;;  %v4603_v4 = vmul.f32 %v5399_v9, %v4241_v34  ;;  %v5401_v35 = vrot.slane %v4033_v61, 2 }
 0x1c9   :  { %v5402_v11 = vrot.slane %v4549_v49, 1  ;;  %v5403_v58 = vrot.slane %v4565_v1, 2  ;;  %v2292_v38 = vmul.f32 %v5399_v9, %v4394_v27  ;;  %v5414_v49 = vstv %s4406_s3  ;;  %1616 = vrot.lane.b32.xlu0 %v4099_v22, %s5345_s6 }
 0x1ca   :  { %5400 = vst [vmem:[#allocation19_spill] sm:$0xff] %v4603_v4  ;;  %1601 = vrot.lane.b32.xlu1 %v5401_v35, %s5345_s6  ;;  %v1661_v61 = vrot.slane %v1657_v15, 1  ;;  %v1700_v35 = vrot.slane %v1696_v10, 2  ;;  %v5411_v15 = vrot.slane %v4585_v0, 1 }
 0x1cb   :  { %v4611_v8 = vsel %vm104_vm0, %v1648_v60, %v5402_v11  ;;  %v4616_v54 = vsel %vm144_vm1, %v1687_v45, %v5403_v58  ;;  %v5405_v60 = vstv %s4338_s15  ;;  %v2296_v1 = vrot.slane %v2292_v38, 1  ;;  %s4992_s15 = sld [smem:[#allocation6 + $0x4a]] }
 0x1cc   :  { %5404 = vst [vmem:[#allocation20_spill] sm:$0xff] %v4616_v54  ;;  %v4628_v11 = vmul.f32 %v5405_v60, %v3966_v40  ;;  %v5407_v58 = vstv %s4351_s22  ;;  %v5409_v31 = vmov %v5405_v60  ;;  %v4644_v10 = vsel %vm104_vm0, %v1661_v61, %v5411_v15 }
 0x1cd   :  { %v4633_v45 = vmul.f32 %v5407_v58, %v3966_v40  ;;  %v1670_v9 = vmul.f32 %v5409_v31, %v3968_v2  ;;  %v5410_v54 = vmov %v5407_v58  ;;  %v5412_v38 = vrot.slane %v4591_v42, 2  ;;  %1726 = vrot.lane.b32.xlu0 %v1722_v59, %s5309_s9 }
 0x1ce   :  { %5406 = vst [vmem:[#allocation23_spill] sm:$0xff] %v4628_v11  ;;  %v1709_v17 = vmul.f32 %v5410_v54, %v3968_v2  ;;  %v4655_v31 = vmul.f32 %v5414_v49, %v4241_v34  ;;  %v5416_v54 = vrot.slane %v4051_v48, 2  ;;  %v5417_v61 = vrot.slane %v4603_v4, 1 }
 0x1cf   :  { %5408 = vst [vmem:[#allocation24_spill] sm:$0xff] %v4633_v45  ;;  %v4649_v60 = vsel %vm144_vm1, %v1700_v35, %v5412_v38  ;;  %v5218_v35 = vrot.slane %v4633_v45, 2  ;;  %v1674_v38 = vrot.slane %v1670_v9, 1  ;;  %v5423_v9 = vrot.slane %v4628_v11, 1 }
 0x1d0   :  { %5413 = vst [vmem:[#allocation47_spill] sm:$0xff] %v4649_v60  ;;  %5415 = vst [vmem:[#allocation48_spill] sm:$0xff] %v4655_v31  ;;  %1618 = vrot.lane.b32.xlu1 %v5416_v54, %s5345_s6  ;;  %v4667_v15 = vsel %vm104_vm0, %v2296_v1, %v5417_v61  ;;  %v1713_v58 = vrot.slane %v1709_v17, 2  ;;  %v5419_v60 = vmov %v5414_v49  ;;  %v5420_v54 = vstv %s4415_s20  ;;  %s5536_s20 = sld [smem:[#allocation62_spill]] }
 0x1d1   :  { %5418 = vst [vmem:[#allocation49_spill] sm:$0xff] %v4667_v15  ;;  %v2309_v48 = vmul.f32 %v5419_v60, %v4394_v27  ;;  %v4679_v4 = vmul.f32 %v5420_v54, %v4241_v34  ;;  %v5422_v1 = vmov %v5420_v54  ;;  %v4687_v17 = vsel %vm104_vm0, %v1674_v38, %v5423_v9 }
 0x1d2   :  { %v2326_v61 = vmul.f32 %v5422_v1, %v4394_v27  ;;  %5424 = vst [vmem:[#allocation51_spill] sm:$0xff] %v4687_v17  ;;  %v4692_v22 = vsel %vm144_vm1, %v1713_v58, %v5218_v35  ;;  %v4695_v60 = vmul.f32 %v2342_v50, %v4241_v34  ;;  %v2343_v54 = vmul.f32 %v2342_v50, %v4394_v27 }
 0x1d3   :  { %5421 = vst [vmem:[#allocation50_spill] sm:$0xff] %v4679_v4  ;;  %5425 = vst [vmem:[#allocation52_spill] sm:$0xff] %v4692_v22  ;;  %v2313_v49 = vrot.slane %v2309_v48, 1  ;;  %v5220_v1 = vrot.slane %v4679_v4, 1  ;;  %v5428_v11 = vstv %s4439_s30  ;;  %v5431_v50 = vstv %s4441_s13 }
 0x1d4   :  { %5426 = vst [vmem:[#allocation53_spill] sm:$0xff] %v4695_v60  ;;  %v2330_v15 = vrot.slane %v2326_v61, 1  ;;  %v4702_v38 = vmul.f32 %v5428_v11, %v4241_v34  ;;  %1728 = vrot.lane.b32.xlu1 %v1723_v24, %s5309_s9  ;;  %v2347_v9 = vrot.slane %v2343_v54, 2  ;;  %v5430_v35 = vmov %v5428_v11 }
 0x1d5   :  { %v2360_v22 = vmul.f32 %v5430_v35, %v4394_v27  ;;  %v4712_v48 = vmul.f32 %v5431_v50, %v4241_v34  ;;  %v5434_v11 = vrot.slane %v4655_v31, 1  ;;  %v5437_v54 = vmov %v5431_v50 }
 0x1d6   :  { %5429 = vst [vmem:[#allocation54_spill] sm:$0xff] %v4702_v38  ;;  %v4723_v61 = vsel %vm104_vm0, %v2330_v15, %v5220_v1  ;;  %v2377_v50 = vmul.f32 %v5437_v54, %v4394_v27  ;;  %v5438_v58 = vstv %s5427_s7  ;;  %v5439_v31 = vrot.slane %v4695_v60, 2 }
 0x1d7   :  { %5433 = vst [vmem:[#allocation55_spill] sm:$0xff] %v4712_v48  ;;  %v4718_v24 = vsel %vm104_vm0, %v2313_v49, %v5434_v11  ;;  %5436 = vst [vmem:[#allocation57_spill] sm:$0xff] %v4723_v61  ;;  %v1737_v59 = vmul.f32 %v5438_v58, %v3966_v40  ;;  %v2364_v11 = vrot.slane %v2360_v22, 2  ;;  %v5441_v1 = vmov %v5438_v58 }
 0x1d8   :  { %5435 = vst [vmem:[#allocation56_spill] sm:$0xff] %v4718_v24  ;;  %v4735_v49 = vsel %vm144_vm1, %v2347_v9, %v5439_v31  ;;  %v1736_v35 = vmul.f32 %v5441_v1, %v3968_v2  ;;  %v2381_v54 = vrot.slane %v2377_v50, 2  ;;  %v2053_v61 = vstv %s4657_s27 }
 0x1d9   :  { %5440 = vst [vmem:[#allocation58_spill] sm:$0xff] %v4735_v49  ;;  %v2092_v4 = vstv %s4659_s16  ;;  %1742 = vrot.lane.b32.xlu1 %v1737_v59, %s5309_s9  ;;  %v5442_v58 = vstv %s5432_s24  ;;  %v5444_v9 = vrot.slane %v4702_v38, 2  ;;  %v5446_v1 = vstv %s4459_s23 }
 0x1da   :  { %v1751_v60 = vmul.f32 %v5442_v58, %v3966_v40  ;;  %v5443_v31 = vmov %v5442_v58  ;;  %v4758_v50 = vmul.f32 %v5446_v1, %v4241_v34  ;;  %1740 = vrot.lane.b32.xlu0 %v1736_v35, %s5309_s9  ;;  %v5447_v59 = vrot.slane %v4712_v48, 2 }
 0x1db   :  { %v1750_v22 = vmul.f32 %v5443_v31, %v3968_v2  ;;  %v4753_v15 = vsel %vm144_vm1, %v2364_v11, %v5444_v9  ;;  %v5449_v58 = vstv %s4461_s25  ;;  %v5450_v31 = vmov %v5446_v1 }
 0x1dc   :  { %5445 = vst [vmem:[#allocation59_spill] sm:$0xff] %v4753_v15  ;;  %v4764_v49 = vsel %vm144_vm1, %v2381_v54, %v5447_v59  ;;  %v4769_v24 = vmul.f32 %v5449_v58, %v4241_v34  ;;  %v2028_v38 = vmul.f32 %v5450_v31, %v4394_v27  ;;  %v5451_v11 = vmov %v5449_v58 }
 0x1dd   :  { %5448 = vst [vmem:[#allocation60_spill] sm:$0xff] %v4764_v49  ;;  %v2067_v9 = vmul.f32 %v5451_v11, %v4394_v27  ;;  %v5452_v15 = vstv %s4477_s5  ;;  %v5454_v48 = vstv %s4479_s19  ;;  %1756 = vrot.lane.b32.xlu1 %v1751_v60, %s5309_s9 }
 0x1de   :  { %v4781_v35 = vmul.f32 %v5452_v15, %v4241_v34  ;;  %v4786_v54 = vmul.f32 %v5454_v48, %v4241_v34  ;;  %v5455_v59 = vmov %v5452_v15  ;;  %v5227_v49 = vrot.slane %v4769_v24, 2  ;;  %1754 = vrot.lane.b32.xlu0 %v1750_v22, %s5309_s9 }
 0x1df   :  { %v2041_v58 = vmul.f32 %v5455_v59, %v4394_v27  ;;  %v2032_v45 = vrot.slane %v2028_v38, 1  ;;  %v2071_v31 = vrot.slane %v2067_v9, 2  ;;  %v5456_v17 = vmov %v5454_v48 }
 0x1e0   :  { %5453 = vst [vmem:[#allocation61_spill] sm:$0xff] %v4781_v35  ;;  %v2080_v11 = vmul.f32 %v5456_v17, %v4394_v27  ;;  %v2046_v1 = vrot.slane %v4781_v35, 1  ;;  %v4799_v48 = vmul.f32 %v2053_v61, %v4241_v34  ;;  %v5457_v59 = vrot.slane %v4758_v50, 1 }
 0x1e1   :  { %v2045_v42 = vrot.slane %v2041_v58, 1  ;;  %v4810_v17 = vsel %vm144_vm1, %v2071_v31, %v5227_v49  ;;  %v4813_v9 = vmul.f32 %v2092_v4, %v4241_v34  ;;  %v2054_v15 = vmul.f32 %v2053_v61, %v4394_v27 }
 0x1e2   :  { %v4805_v38 = vsel %vm104_vm0, %v2032_v45, %v5457_v59  ;;  %v2084_v60 = vrot.slane %v2080_v11, 2  ;;  %v2059_v22 = vrot.slane %v4799_v48, 1  ;;  %v2093_v45 = vmul.f32 %v2092_v4, %v4394_v27  ;;  %1771 = vrot.lane.b32.xlu0 %v4131_v7, %s5309_s9 }
 0x1e3   :  { %v4818_v58 = vsel %vm104_vm0, %v2045_v42, %v2046_v1  ;;  %v5458_v59 = vrot.slane %v4786_v54, 2  ;;  %v2098_v11 = vrot.slane %v4813_v9, 2  ;;  %v5459_v49 = vrot.slane %v4086_v23, 1 }
 0x1e4   :  { %v2058_v35 = vrot.slane %v2054_v15, 1  ;;  %v2097_v42 = vrot.slane %v2093_v45, 2  ;;  %v5461_v23 = vrot.slane %v4107_v37, 1  ;;  %v5462_v7 = vrot.slane %v4120_v18, 2 }
 0x1e5   :  { %v4826_v31 = vsel %vm144_vm1, %v2084_v60, %v5458_v59  ;;  %1773 = vrot.lane.b32.xlu1 %v5459_v49, %s5309_s9  ;;  %v5460_v60 = vrot.slane %v4094_v53, 1  ;;  %v5463_v53 = vrot.slane %v4137_v47, 2  ;;  %v1865_v37 = vstv %s2537_s8 }
 0x1e6   :  { %v4837_v4 = vsel %vm104_vm0, %v2058_v35, %v2059_v22  ;;  %v4842_v61 = vsel %vm144_vm1, %v2097_v42, %v2098_v11  ;;  %1788 = vrot.lane.b32.xlu0 %v4145_v52, %s5309_s9  ;;  %v5464_v52 = vrot.slane %v4155_v46, 2  ;;  %v1867_v18 = vmul.f32 %v1865_v37, %v3966_v40 }
 0x1e7   :  { %v1893_v46 = vstv %s2539_s0  ;;  %v5465_v42 = vstv %s3763_s10  ;;  %s4917_s10 = sld [smem:[#allocation6 + $0x13]] }
 0x1e8   :  { %v1895_v49 = vmul.f32 %v1893_v46, %v3966_v40  ;;  %v1894_v15 = vmul.f32 %v1893_v46, %v3968_v2 }
 0x1e9   :  { %1790 = vrot.lane.b32.xlu1 %v5460_v60, %s5309_s9  ;;  %v1255_v60 = vmul.f32 %v5465_v42, %v3858_v5 }
 0x1ea   :  { %1805 = vrot.lane.b32.xlu0 %v4150_v39, %s5309_s9  ;;  %v1866_v39 = vmul.f32 %v1865_v37, %v3968_v2 }
 0x1ed   :  { %1807 = vrot.lane.b32.xlu1 %v5461_v23, %s5309_s9  ;;  %v5466_v23 = vrot.slane %v4269_v6, 1  ;;  %v5471_v6 = vstv %s5330_s28  ;;  %s4979_s28 = sld [smem:[#allocation6 + $0x24]] }
 0x1ee   :  { %1822 = vrot.lane.b32.xlu0 %v4172_v41, %s5309_s9  ;;  %v1879_v41 = vstv %s2538_s4  ;;  %v1249_v46 = vmul.f32 %v5471_v6, %v3858_v5 }
 0x1ef   :  { %v1881_v47 = vmul.f32 %v1879_v41, %v3966_v40 }
 0x1f1   :  { %1824 = vrot.lane.b32.xlu1 %v5462_v7, %s5309_s9  ;;  %v5467_v7 = vstv %s5324_s26  ;;  %s2519_s26 = sld [smem:[#allocation6 + $0x9]] }
 0x1f2   :  { %1839 = vrot.lane.b32.xlu0 %v4182_v56, %s5309_s9  ;;  %v1880_v56 = vmul.f32 %v1879_v41, %v3968_v2  ;;  %v5469_v41 = vrot.slane %v4331_v14, 1  ;;  %v5474_v14 = vrot.slane %v4187_v20, 1 }
 0x1f3   :  { %v1343_v35 = vpop.permute.xlu0 %1342 }
 0x1f5   :  { %1841 = vrot.lane.b32.xlu1 %v5463_v53, %s5309_s9  ;;  %v1243_v53 = vmul.f32 %v5467_v7, %v3858_v5  ;;  %v5475_v7 = vstv %s3761_s12  ;;  %s4929_s12 = sld [smem:[#allocation6 + $0x2e]] }
 0x1f6   :  { %1856 = vrot.lane.b32.xlu0 %v4208_v12, %s5309_s9  ;;  %v1345_v12 = vpop.permute.xlu1 %1344 }
 0x1f7   :  { %v1357_v59 = vpop.permute.xlu0 %1356 }
 0x1f9   :  { %1858 = vrot.lane.b32.xlu1 %v5464_v52, %s5309_s9  ;;  %v5468_v52 = vstv %s3777_s17  ;;  %s2557_s17 = sld [smem:[#allocation6 + $0x49]] }
 0x1fa   :  { %1870 = vrot.lane.b32.xlu0 %v1866_v39, %s5345_s6  ;;  %v1359_v45 = vpop.permute.xlu1 %1358 }
 0x1fb   :  { %v1371_v39 = vpop.permute.xlu0 %1370 }
 0x1fd   :  { %1872 = vrot.lane.b32.xlu1 %v1867_v18, %s5345_s6  ;;  %v1257_v18 = vadd.f32 %v1255_v60, %v5468_v52  ;;  %v5473_v60 = vrot.slane %v4347_v21, 1  ;;  %v5478_v21 = vrot.slane %v4192_v51, 2 }
 0x1fe   :  { %1884 = vrot.lane.b32.xlu0 %v1880_v56, %s5345_s6  ;;  %v1373_v37 = vpop.permute.xlu1 %1372 }
 0x1ff   :  { %v1388_v42 = vpop.permute.xlu0 %1387 }
 0x201   :  { %1886 = vrot.lane.b32.xlu1 %v1881_v47, %s5345_s6  ;;  %v5470_v47 = vstv %s5327_s2  ;;  %s4974_s2 = sld [smem:[#allocation6 + $0x14]] }
 0x202   :  { %1898 = vrot.lane.b32.xlu0 %v1894_v15, %s5345_s6  ;;  %v1245_v56 = vadd.f32 %v1243_v53, %v5470_v47  ;;  %v5472_v15 = vrot.slane %v4280_v36, 1  ;;  %v1251_v53 = vadd.f32 %v1249_v46, %v5475_v7  ;;  %v5477_v36 = vrot.slane %v4360_v62, 2 }
 0x203   :  { %v1348_v62 = vadd.f32 %v1343_v35, %v4259_v63  ;;  %v1362_v63 = vadd.f32 %v1357_v59, %v4324_v26 }
 0x205   :  { %1900 = vrot.lane.b32.xlu1 %v1895_v49, %s5345_s6  ;;  %v1390_v49 = vpop.permute.xlu1 %1389 }
 0x206   :  { %1915 = vrot.lane.b32.xlu0 %v4312_v3, %s5345_s6  ;;  %v1296_v3 = vadd.f32 %v5472_v15, %v1257_v18  ;;  %v5479_v18 = vrot.slane %v4224_v30, 1  ;;  %v5480_v30 = vrot.slane %v4383_v19, 2  ;;  %v5482_v19 = vrot.slane %v4391_v44, 2 }
 0x208   :  { %v1283_v47 = vadd.f32 %v5479_v18, %v1251_v53 }
 0x209   :  { %1917 = vrot.lane.b32.xlu1 %v5466_v23, %s5345_s6  ;;  %v1270_v23 = vadd.f32 %v5474_v14, %v1245_v56  ;;  %v1407_v5 = vpop.permute.xlu1 %1406 }
 0x20a   :  { %1932 = vrot.lane.b32.xlu0 %v4376_v43, %s5345_s6  ;;  %v5476_v43 = vrot.slane %v4290_v16, 2  ;;  %v1376_v16 = vadd.f32 %v1371_v39, %v4396_v25  ;;  %v1393_v25 = vadd.f32 %v1388_v42, %v1348_v62  ;;  %v5483_v62 = vld [vmem:[#allocation13_spill] sm:$0xff] }
 0x20b   :  { %v1309_v20 = vadd.f32 %v5478_v21, %v1270_v23  ;;  %v2105_v23 = vstv %s4917_s10 }
 0x20c   :  { %v1335_v52 = vadd.f32 %v5476_v43, %v1296_v3  ;;  %v2106_v53 = vmul.f32 %v2105_v23, %v4394_v27  ;;  %v2119_v43 = vstv %s4929_s12 }
 0x20d   :  { %1934 = vrot.lane.b32.xlu1 %v5469_v41, %s5345_s6  ;;  %v1405_v41 = vpop.permute.xlu0 %1404  ;;  %v1349_v6 = vadd.f32 %v1345_v12, %v1309_v20  ;;  %v2121_v44 = vmul.f32 %v2119_v43, %v4241_v34 }
 0x20e   :  { %1949 = vrot.lane.b32.xlu0 %v4401_v29, %s5345_s6  ;;  %v1377_v56 = vadd.f32 %v1373_v37, %v1335_v52  ;;  %v1424_v29 = vpop.permute.xlu1 %1423  ;;  %v5481_v37 = vrot.slane %v4232_v32, 2 }
 0x210   :  { %v1428_v46 = vadd.f32 %v1424_v29, %v1377_v56  ;;  %v1322_v3 = vadd.f32 %v5481_v37, %v1283_v47 }
 0x211   :  { %1951 = vrot.lane.b32.xlu1 %v5473_v60, %s5345_s6  ;;  %v1422_v15 = vpop.permute.xlu0 %1421 }
 0x212   :  { %1966 = vrot.lane.b32.xlu0 %v4411_v28, %s5345_s6  ;;  %v1427_v51 = vadd.f32 %v1422_v15, %v1376_v16  ;;  %v1394_v28 = vadd.f32 %v1390_v49, %v1349_v6  ;;  %v1441_v12 = vpop.permute.xlu1 %1440  ;;  %v1363_v39 = vadd.f32 %v1359_v45, %v1322_v3  ;;  %v2107_v45 = vmul.f32 %v2105_v23, %v4241_v34 }
 0x214   :  { %v1445_v60 = vadd.f32 %v1441_v12, %v1394_v28  ;;  %v1411_v32 = vadd.f32 %v1407_v5, %v1363_v39  ;;  %v5486_v12 = vld [vmem:[#allocation15_spill] sm:$0xff] }
 0x215   :  { %1968 = vrot.lane.b32.xlu1 %v5477_v36, %s5345_s6  ;;  %v1439_v14 = vpop.permute.xlu0 %1438 }
 0x216   :  { %1983 = vrot.lane.b32.xlu0 %v4430_v33, %s5345_s6  ;;  %v1444_v35 = vadd.f32 %v1439_v14, %v1393_v25  ;;  %v1410_v33 = vadd.f32 %v1405_v41, %v1362_v63  ;;  %v1458_v49 = vpop.permute.xlu1 %1457  ;;  %v2133_v41 = vstv %s2557_s17  ;;  %v5485_v25 = vrot.slane %v4454_v13, 1  ;;  %v5487_v63 = vld [vmem:[#allocation25_spill] sm:$0xff] }
 0x217   :  { %v1462_v42 = vadd.f32 %v1458_v49, %v1411_v32  ;;  %v2135_v20 = vmul.f32 %v2133_v41, %v4241_v34  ;;  %v2134_v56 = vmul.f32 %v2133_v41, %v4394_v27  ;;  %v5490_v49 = vld [vmem:[#allocation26_spill] sm:$0xff] }
 0x219   :  { %1985 = vrot.lane.b32.xlu1 %v5480_v30, %s5345_s6  ;;  %v1456_v7 = vpop.permute.xlu0 %1455 }
 0x21a   :  { %2000 = vrot.lane.b32.xlu0 %v4446_v57, %s5345_s6  ;;  %v1461_v52 = vadd.f32 %v1456_v7, %v1410_v33  ;;  %v1475_v26 = vpop.permute.xlu1 %1474  ;;  %v2120_v57 = vmul.f32 %v2119_v43, %v4394_v27 }
 0x21b   :  { %v1479_v59 = vadd.f32 %v1475_v26, %v1428_v46  ;;  %v5493_v26 = vld [vmem:[#allocation12_spill] sm:$0xff] }
 0x21d   :  { %2002 = vrot.lane.b32.xlu1 %v5482_v19, %s5345_s6  ;;  %v1473_v5 = vpop.permute.xlu0 %1472 }
 0x21e   :  { %2110 = vrot.lane.b32.xlu0 %v2106_v53, %s5309_s9  ;;  %v1478_v36 = vadd.f32 %v1473_v5, %v1427_v51  ;;  %v1489_v21 = vpop.permute.xlu1 %1488  ;;  %v5484_v51 = vrot.slane %v5483_v62, 1  ;;  %v5495_v5 = vld [vmem:[#allocation16_spill] sm:$0xff] }
 0x21f   :  { %v1493_v18 = vadd.f32 %v1489_v21, %v1445_v60 }
 0x221   :  { %2112 = vrot.lane.b32.xlu1 %v2107_v45, %s5309_s9  ;;  %v1487_v47 = vpop.permute.xlu0 %1486  ;;  %v5491_v45 = vrot.slane %v5490_v49, 2 }
 0x222   :  { %2124 = vrot.lane.b32.xlu0 %v2120_v57, %s5309_s9  ;;  %v1492_v16 = vadd.f32 %v1487_v47, %v1444_v35  ;;  %v1503_v29 = vpop.permute.xlu1 %1502  ;;  %v5488_v35 = vrot.slane %v5487_v63, 1  ;;  %v1637_v63 = vstv %s4988_s14 }
 0x223   :  { %v1507_v6 = vadd.f32 %v1503_v29, %v1462_v42  ;;  %v5492_v42 = vld [vmem:[#allocation18_spill] sm:$0xff]  ;;  %v1631_v29 = vstv %s4979_s28 }
 0x225   :  { %2126 = vrot.lane.b32.xlu1 %v2121_v44, %s5309_s9  ;;  %v1501_v46 = vpop.permute.xlu0 %1500  ;;  %v5494_v44 = vrot.slane %v5493_v26, 2  ;;  %v2277_v26 = vstv %s4992_s15 }
 0x226   :  { %2138 = vrot.lane.b32.xlu0 %v2134_v56, %s5309_s9  ;;  %v1506_v15 = vadd.f32 %v1501_v46, %v1461_v52  ;;  %v1517_v30 = vpop.permute.xlu1 %1516  ;;  %v5496_v56 = vld [vmem:[#allocation14_spill] sm:$0xff] }
 0x227   :  { %v1521_v37 = vadd.f32 %v1517_v30, %v1479_v59  ;;  %v1625_v59 = vstv %s2519_s26  ;;  %v5498_v46 = vld [vmem:[#allocation22_spill] sm:$0xff]  ;;  %v2263_v30 = vstv %s4983_s1 }
 0x228   :  { %v1627_v41 = vmul.f32 %v1625_v59, %v3966_v40 }
 0x229   :  { %2140 = vrot.lane.b32.xlu1 %v2135_v20, %s5309_s9  ;;  %v1515_v3 = vpop.permute.xlu0 %1514  ;;  %v2249_v20 = vstv %s4974_s2 }
 0x22a   :  { %2155 = vrot.lane.b32.xlu0 %v4500_v55, %s5309_s9  ;;  %v1520_v28 = vadd.f32 %v1515_v3, %v1478_v36  ;;  %v1534_v39 = vpop.permute.xlu1 %1533  ;;  %v5489_v55 = vld [vmem:[#allocation17_spill] sm:$0xff] }
 0x22b   :  { %v1538_v60 = vadd.f32 %v1534_v39, %v1493_v18  ;;  %v1626_v18 = vmul.f32 %v1625_v59, %v3968_v2 }
 0x22d   :  { %2157 = vrot.lane.b32.xlu1 %v5484_v51, %s5309_s9  ;;  %v1532_v14 = vpop.permute.xlu0 %1531  ;;  %v2251_v51 = vmul.f32 %v2249_v20, %v4241_v34 }
 0x22e   :  { %2172 = vrot.lane.b32.xlu0 %v5486_v12, %s5309_s9  ;;  %v1537_v23 = vadd.f32 %v1532_v14, %v1492_v16  ;;  %v1551_v19 = vpop.permute.xlu1 %1550  ;;  %v5497_v16 = vrot.slane %v5496_v56, 2  ;;  %v5499_v12 = vld [vmem:[#allocation21_spill] sm:$0xff]  ;;  %v1632_v14 = vmul.f32 %v1631_v29, %v3968_v2 }
 0x22f   :  { %v1555_v32 = vadd.f32 %v1551_v19, %v1507_v6  ;;  %v5500_v39 = vrot.slane %v5499_v12, 1  ;;  %v5501_v19 = vld [vmem:[#allocation27_spill] sm:$0xff]  ;;  %v5513_v12 = vld [vmem:[#allocation52_spill] sm:$0xff] }
 0x231   :  { %2174 = vrot.lane.b32.xlu1 %v5485_v25, %s5309_s9  ;;  %v1549_v33 = vpop.permute.xlu0 %1548  ;;  %v2250_v25 = vmul.f32 %v2249_v20, %v4394_v27 }
 0x232   :  { %2189 = vrot.lane.b32.xlu0 %v5489_v55, %s5309_s9  ;;  %v1554_v13 = vadd.f32 %v1549_v33, %v1506_v15  ;;  %v1568_v7 = vpop.permute.xlu1 %1567 }
 0x233   :  { %v1572_v53 = vadd.f32 %v1568_v7, %v1521_v37  ;;  %v1633_v37 = vmul.f32 %v1631_v29, %v3966_v40  ;;  %v5503_v7 = vld [vmem:[#allocation20_spill] sm:$0xff]  ;;  %v5507_v29 = vld [vmem:[#allocation47_spill] sm:$0xff] }
 0x235   :  { %2191 = vrot.lane.b32.xlu1 %v5488_v35, %s5309_s9  ;;  %v1566_v43 = vpop.permute.xlu0 %1565 }
 0x236   :  { %2206 = vrot.lane.b32.xlu0 %v5492_v42, %s5309_s9  ;;  %v1571_v52 = vadd.f32 %v1566_v43, %v1520_v28  ;;  %v1585_v57 = vpop.permute.xlu1 %1584  ;;  %v2265_v42 = vmul.f32 %v2263_v30, %v4241_v34 }
 0x237   :  { %v1589_v36 = vadd.f32 %v1585_v57, %v1538_v60 }
 0x239   :  { %2208 = vrot.lane.b32.xlu1 %v5491_v45, %s5309_s9  ;;  %v1583_v21 = vpop.permute.xlu0 %1582  ;;  %v1629_v6 = vadd.f32 %v1627_v41, %v1589_v36  ;;  %v1638_v41 = vmul.f32 %v1637_v63, %v3968_v2  ;;  %v2278_v2 = vmul.f32 %v2277_v26, %v4394_v27 }
 0x23a   :  { %2223 = vrot.lane.b32.xlu0 %v5495_v5, %s5309_s9  ;;  %v1588_v47 = vadd.f32 %v1583_v21, %v1537_v23  ;;  %v2264_v5 = vmul.f32 %v2263_v30, %v4394_v27 }
 0x23b   :  { %v1654_v60 = vadd.f32 %v5500_v39, %v1629_v6 }
 0x23c   :  { %v1628_v15 = vadd.f32 %v1626_v18, %v1588_v47  ;;  %v1602_v62 = vpop.permute.xlu1 %1601  ;;  %v5505_v18 = vld [vmem:[#allocation28_spill] sm:$0xff] }
 0x23d   :  { %2225 = vrot.lane.b32.xlu1 %v5494_v44, %s5309_s9  ;;  %v1606_v3 = vadd.f32 %v1602_v62, %v1555_v32  ;;  %v1600_v28 = vpop.permute.xlu0 %1599  ;;  %v5502_v32 = vrot.slane %v5501_v19, 2  ;;  %v5506_v47 = vrot.slane %v5505_v18, 2 }
 0x23e   :  { %2240 = vrot.lane.b32.xlu0 %v5498_v46, %s5309_s9  ;;  %v1605_v23 = vadd.f32 %v1600_v28, %v1554_v13  ;;  %v1653_v35 = vadd.f32 %v4611_v8, %v1628_v15  ;;  %v1639_v13 = vmul.f32 %v1637_v63, %v3966_v40  ;;  %v5504_v8 = vrot.slane %v4585_v0, 1  ;;  %v5514_v63 = vld [vmem:[#allocation19_spill] sm:$0xff] }
 0x23f   :  { %v1635_v55 = vadd.f32 %v1633_v37, %v1606_v3  ;;  %v1693_v33 = vadd.f32 %v5502_v32, %v1654_v60  ;;  %v5511_v37 = vld [vmem:[#allocation24_spill] sm:$0xff] }
 0x240   :  { %v1634_v49 = vadd.f32 %v1632_v14, %v1605_v23  ;;  %v1692_v43 = vadd.f32 %v5503_v7, %v1653_v35  ;;  %v5512_v3 = vrot.slane %v5511_v37, 2  ;;  %v5515_v35 = vrot.slane %v5514_v63, 1  ;;  %v5519_v7 = vld [vmem:[#allocation56_spill] sm:$0xff] }
 0x241   :  { %2242 = vrot.lane.b32.xlu1 %v5497_v16, %s5309_s9  ;;  %v1617_v59 = vpop.permute.xlu0 %1616  ;;  %v1667_v57 = vadd.f32 %v5504_v8, %v1635_v55  ;;  %v2279_v16 = vmul.f32 %v2277_v26, %v4241_v34  ;;  %v5516_v55 = vld [vmem:[#allocation49_spill] sm:$0xff]  ;;  %s2546_s9 = sld [smem:[#allocation6 + $0x12]] }
 0x242   :  { %2254 = vrot.lane.b32.xlu0 %v2250_v25, %s5345_s6  ;;  %v1619_v45 = vpop.permute.xlu1 %1618  ;;  %v1622_v36 = vadd.f32 %v1617_v59, %v1571_v52  ;;  %v1666_v21 = vadd.f32 %v4644_v10, %v1634_v49  ;;  %v5508_v52 = vld [vmem:[#allocation23_spill] sm:$0xff]  ;;  %v5520_v59 = vld [vmem:[#allocation50_spill] sm:$0xff] }
 0x243   :  { %v1623_v44 = vadd.f32 %v1619_v45, %v1572_v53  ;;  %v1706_v40 = vadd.f32 %v5506_v47, %v1667_v57  ;;  %v5509_v15 = vrot.slane %v5508_v52, 1  ;;  %v5517_v45 = vld [vmem:[#allocation48_spill] sm:$0xff]  ;;  %v5522_v8 = vld [vmem:[#allocation57_spill] sm:$0xff]  ;;  %v5525_v47 = vld [vmem:[#allocation58_spill] sm:$0xff] }
 0x244   :  { %v1640_v53 = vadd.f32 %v1638_v41, %v1622_v36  ;;  %v1705_v0 = vadd.f32 %v5507_v29, %v1666_v21  ;;  %v5526_v29 = vld [vmem:[#allocation54_spill] sm:$0xff] }
 0x245   :  { %2256 = vrot.lane.b32.xlu1 %v2251_v51, %s5345_s6  ;;  %v1641_v20 = vadd.f32 %v1639_v13, %v1623_v44  ;;  %v1727_v46 = vpop.permute.xlu0 %1726  ;;  %v5510_v51 = vld [vmem:[#allocation51_spill] sm:$0xff] }
 0x246   :  { %2268 = vrot.lane.b32.xlu0 %v2264_v5, %s5345_s6  ;;  %v1729_v56 = vpop.permute.xlu1 %1728  ;;  %v1732_v10 = vadd.f32 %v1727_v46, %v1692_v43  ;;  %v1679_v30 = vadd.f32 %v5510_v51, %v1640_v53  ;;  %v5521_v5 = vrot.slane %v5520_v59, 1  ;;  %v5531_v51 = vld [vmem:[#allocation60_spill] sm:$0xff] }
 0x247   :  { %v1733_v6 = vadd.f32 %v1729_v56, %v1693_v33  ;;  %v1680_v62 = vadd.f32 %v5509_v15, %v1641_v20  ;;  %v5523_v20 = vld [vmem:[#allocation53_spill] sm:$0xff] }
 0x248   :  { %v1718_v39 = vadd.f32 %v5513_v12, %v1679_v30  ;;  %v5524_v18 = vrot.slane %v5523_v20, 2 }
 0x249   :  { %2270 = vrot.lane.b32.xlu1 %v2265_v42, %s5345_s6  ;;  %v1719_v28 = vadd.f32 %v5512_v3, %v1680_v62  ;;  %v5518_v42 = vrot.slane %v5517_v45, 1  ;;  %v5529_v62 = vld [vmem:[#allocation55_spill] sm:$0xff] }
 0x24a   :  { %2282 = vrot.lane.b32.xlu0 %v2278_v2, %s5345_s6 }
 0x24b   :  { %v1743_v25 = vpop.permute.xlu1 %1742 }
 0x24c   :  { %v1747_v60 = vadd.f32 %v1743_v25, %v1706_v40  ;;  %v1741_v14 = vpop.permute.xlu0 %1740 }
 0x24d   :  { %2284 = vrot.lane.b32.xlu1 %v2279_v16, %s5345_s6  ;;  %v1746_v23 = vadd.f32 %v1741_v14, %v1705_v0  ;;  %v5527_v0 = vrot.slane %v5526_v29, 2 }
 0x24e   :  { %2299 = vrot.lane.b32.xlu0 %v5516_v55, %s5345_s6 }
 0x24f   :  { %v1757_v19 = vpop.permute.xlu1 %1756 }
 0x250   :  { %v1761_v32 = vadd.f32 %v1757_v19, %v1719_v28  ;;  %v1755_v33 = vpop.permute.xlu0 %1754 }
 0x251   :  { %2301 = vrot.lane.b32.xlu1 %v5515_v35, %s5345_s6  ;;  %v1760_v49 = vadd.f32 %v1755_v33, %v1718_v39 }
 0x252   :  { %2316 = vrot.lane.b32.xlu0 %v5519_v7, %s5345_s6 }
 0x254   :  { %v1772_v13 = vpop.permute.xlu0 %1771 }
 0x255   :  { %2318 = vrot.lane.b32.xlu1 %v5518_v42, %s5345_s6  ;;  %v1777_v44 = vadd.f32 %v1772_v13, %v1732_v10  ;;  %v5530_v10 = vrot.slane %v5529_v62, 2 }
 0x256   :  { %2333 = vrot.lane.b32.xlu0 %v5522_v8, %s5345_s6 }
 0x257   :  { %v1774_v43 = vpop.permute.xlu1 %1773 }
 0x258   :  { %v1778_v26 = vadd.f32 %v1774_v43, %v1733_v6  ;;  %v1789_v36 = vpop.permute.xlu0 %1788  ;;  %v5528_v6 = vld [vmem:[#allocation59_spill] sm:$0xff] }
 0x259   :  { %2335 = vrot.lane.b32.xlu1 %v5521_v5, %s5345_s6  ;;  %v1794_v21 = vadd.f32 %v1789_v36, %v1746_v23 }
 0x25a   :  { %2350 = vrot.lane.b32.xlu0 %v5525_v47, %s5345_s6 }
 0x25b   :  { %v1791_v57 = vpop.permute.xlu1 %1790 }
 0x25c   :  { %v1795_v41 = vadd.f32 %v1791_v57, %v1747_v60  ;;  %v1806_v56 = vpop.permute.xlu0 %1805 }
 0x25d   :  { %2352 = vrot.lane.b32.xlu1 %v5524_v18, %s5345_s6  ;;  %v1811_v16 = vadd.f32 %v1806_v56, %v1760_v49  ;;  %v2009_v18 = vstv %s2546_s9 }
 0x25e   :  { %2367 = vrot.lane.b32.xlu0 %v5528_v6, %s5345_s6 }
 0x25f   :  { %v1808_v40 = vpop.permute.xlu1 %1807 }
 0x260   :  { %v1812_v53 = vadd.f32 %v1808_v40, %v1761_v32  ;;  %v1823_v52 = vpop.permute.xlu0 %1822  ;;  %v2011_v40 = vmul.f32 %v2009_v18, %v4241_v34 }
 0x261   :  { %2369 = vrot.lane.b32.xlu1 %v5527_v0, %s5345_s6  ;;  %v1828_v15 = vadd.f32 %v1823_v52, %v1777_v44 }
 0x262   :  { %2384 = vrot.lane.b32.xlu0 %v5531_v51, %s5345_s6 }
 0x263   :  { %v1825_v46 = vpop.permute.xlu1 %1824 }
 0x264   :  { %v1829_v2 = vadd.f32 %v1825_v46, %v1778_v26  ;;  %v1840_v3 = vpop.permute.xlu0 %1839 }
 0x265   :  { %2386 = vrot.lane.b32.xlu1 %v5530_v10, %s5345_s6  ;;  %v1845_v28 = vadd.f32 %v1840_v3, %v1794_v21  ;;  %s2547_s6 = sld [smem:[#allocation6 + $0x2d]]  ;;  %v5532_v10 = vrot.slane %v4758_v50, 1  ;;  %v2021_v3 = vstv %s2548_s18 }
 0x267   :  { %v1842_v30 = vpop.permute.xlu1 %1841 }
 0x268   :  { %v1846_v37 = vadd.f32 %v1842_v30, %v1795_v41  ;;  %v1857_v39 = vpop.permute.xlu0 %1856 }
 0x269   :  { %v1862_v60 = vadd.f32 %v1857_v39, %v1811_v16  ;;  %v2010_v16 = vmul.f32 %v2009_v18, %v4394_v27 }
 0x26b   :  { %v1859_v25 = vpop.permute.xlu1 %1858  ;;  %v2015_v0 = vstv %s2547_s6 }
 0x26c   :  { %v1863_v12 = vadd.f32 %v1859_v25, %v1812_v53  ;;  %v1871_v63 = vpop.permute.xlu0 %1870  ;;  %v2017_v52 = vmul.f32 %v2015_v0, %v4241_v34  ;;  %v2016_v30 = vmul.f32 %v2015_v0, %v4394_v27 }
 0x26d   :  { %v1876_v35 = vadd.f32 %v1871_v63, %v1828_v15  ;;  %v2023_v63 = vmul.f32 %v2021_v3, %v4241_v34 }
 0x26f   :  { %v1873_v14 = vpop.permute.xlu1 %1872 }
 0x270   :  { %v1877_v23 = vadd.f32 %v1873_v14, %v1829_v2  ;;  %v1885_v32 = vpop.permute.xlu0 %1884 }
 0x271   :  { %v1890_v33 = vadd.f32 %v1885_v32, %v1845_v28  ;;  %v2022_v32 = vmul.f32 %v2021_v3, %v4394_v27 }
 0x273   :  { %v1887_v55 = vpop.permute.xlu1 %1886 }
 0x274   :  { %v1891_v19 = vadd.f32 %v1887_v55, %v1846_v37  ;;  %v1899_v42 = vpop.permute.xlu0 %1898 }
 0x275   :  { %v1904_v7 = vadd.f32 %v1899_v42, %v1862_v60 }
 0x277   :  { %v1901_v49 = vpop.permute.xlu1 %1900 }
 0x278   :  { %v1905_v45 = vadd.f32 %v1901_v49, %v1863_v12  ;;  %v1916_v13 = vpop.permute.xlu0 %1915  ;;  %v5533_v12 = vrot.slane %v4769_v24, 2  ;;  %v5535_v24 = vrot.slane %v4786_v54, 2 }
 0x279   :  { %v1921_v44 = vadd.f32 %v1916_v13, %v1876_v35 }
 0x27b   :  { %v1918_v43 = vpop.permute.xlu1 %1917 }
 0x27c   :  { %v1922_v26 = vadd.f32 %v1918_v43, %v1877_v23  ;;  %v1933_v8 = vpop.permute.xlu0 %1932 }
 0x27d   :  { %v1938_v57 = vadd.f32 %v1933_v8, %v1890_v33 }
 0x27f   :  { %v1935_v59 = vpop.permute.xlu1 %1934 }
 0x280   :  { %v1939_v5 = vadd.f32 %v1935_v59, %v1891_v19  ;;  %v1950_v21 = vpop.permute.xlu0 %1949 }
 0x281   :  { %v1955_v20 = vadd.f32 %v1950_v21, %v1904_v7 }
 0x283   :  { %v1952_v41 = vpop.permute.xlu1 %1951 }
 0x284   :  { %v1956_v36 = vadd.f32 %v1952_v41, %v1905_v45  ;;  %v1967_v56 = vpop.permute.xlu0 %1966 }
 0x285   :  { %v1972_v29 = vadd.f32 %v1967_v56, %v1921_v44 }
 0x287   :  { %v1969_v47 = vpop.permute.xlu1 %1968  ;;  %v2012_v46 = vadd.f32 %v2010_v16, %v1972_v29 }
 0x288   :  { %v1973_v53 = vadd.f32 %v1969_v47, %v1922_v26  ;;  %v1984_v62 = vpop.permute.xlu0 %1983 }
 0x289   :  { %v1989_v37 = vadd.f32 %v1984_v62, %v1938_v57  ;;  %v2037_v28 = vadd.f32 %v4805_v38, %v2012_v46 }
 0x28a   :  { %v2013_v6 = vadd.f32 %v2011_v40, %v1973_v53 }
 0x28b   :  { %v1986_v2 = vpop.permute.xlu1 %1985  ;;  %v2018_v60 = vadd.f32 %v2016_v30, %v1989_v37  ;;  %v2076_v23 = vadd.f32 %v4810_v17, %v2037_v28 }
 0x28c   :  { %v1990_v15 = vadd.f32 %v1986_v2, %v1939_v5  ;;  %v2038_v51 = vadd.f32 %v5532_v10, %v2013_v6  ;;  %v2001_v55 = vpop.permute.xlu0 %2000 }
 0x28d   :  { %v2006_v33 = vadd.f32 %v2001_v55, %v1955_v20  ;;  %v2050_v38 = vadd.f32 %v4818_v58, %v2018_v60 }
 0x28e   :  { %v2019_v25 = vadd.f32 %v2017_v52, %v1990_v15  ;;  %v2077_v39 = vadd.f32 %v5533_v12, %v2038_v51 }
 0x28f   :  { %v2003_v14 = vpop.permute.xlu1 %2002  ;;  %v2024_v42 = vadd.f32 %v2022_v32, %v2006_v33  ;;  %v2089_v17 = vadd.f32 %v4826_v31, %v2050_v38 }
 0x290   :  { %v2007_v35 = vadd.f32 %v2003_v14, %v1956_v36  ;;  %v2051_v19 = vadd.f32 %v2046_v1, %v2019_v25  ;;  %v2111_v43 = vpop.permute.xlu0 %2110 }
 0x291   :  { %v2063_v26 = vadd.f32 %v4837_v4, %v2024_v42  ;;  %v2116_v29 = vadd.f32 %v2111_v43, %v2076_v23 }
 0x292   :  { %v2025_v49 = vadd.f32 %v2023_v63, %v2007_v35  ;;  %v2090_v45 = vadd.f32 %v5535_v24, %v2051_v19 }
 0x293   :  { %v2113_v7 = vpop.permute.xlu1 %2112  ;;  %v2102_v58 = vadd.f32 %v4842_v61, %v2063_v26 }
 0x294   :  { %v2064_v34 = vadd.f32 %v2059_v22, %v2025_v49  ;;  %v2125_v13 = vpop.permute.xlu0 %2124  ;;  %v2117_v16 = vadd.f32 %v2113_v7, %v2077_v39 }
 0x295   :  { %v2130_v62 = vadd.f32 %v2125_v13, %v2089_v17 }
 0x296   :  { %v2103_v27 = vadd.f32 %v2098_v11, %v2064_v34 }
 0x297   :  { %v2127_v1 = vpop.permute.xlu1 %2126 }
 0x298   :  { %v2139_v54 = vpop.permute.xlu0 %2138  ;;  %v2131_v52 = vadd.f32 %v2127_v1, %v2090_v45 }
 0x299   :  { %v2144_v63 = vadd.f32 %v2139_v54, %v2102_v58 }
 0x29b   :  { %v2141_v44 = vpop.permute.xlu1 %2140 }
 0x29c   :  { %v2156_v5 = vpop.permute.xlu0 %2155  ;;  %v2145_v12 = vadd.f32 %v2141_v44, %v2103_v27 }
 0x29d   :  { %v2161_v2 = vadd.f32 %v2156_v5, %v2116_v29 }
 0x29f   :  { %v2158_v59 = vpop.permute.xlu1 %2157 }
 0x2a0   :  { %v2173_v57 = vpop.permute.xlu0 %2172  ;;  %v2162_v6 = vadd.f32 %v2158_v59, %v2117_v16 }
 0x2a1   :  { %v2178_v28 = vadd.f32 %v2173_v57, %v2130_v62 }
 0x2a3   :  { %v2175_v8 = vpop.permute.xlu1 %2174 }
 0x2a4   :  { %v2190_v41 = vpop.permute.xlu0 %2189  ;;  %v2179_v30 = vadd.f32 %v2175_v8, %v2131_v52 }
 0x2a5   :  { %v2195_v33 = vadd.f32 %v2190_v41, %v2144_v63 }
 0x2a7   :  { %v2192_v31 = vpop.permute.xlu1 %2191 }
 0x2a8   :  { %v2207_v48 = vpop.permute.xlu0 %2206  ;;  %v2196_v55 = vadd.f32 %v2192_v31, %v2145_v12 }
 0x2a9   :  { %v2212_v10 = vadd.f32 %v2207_v48, %v2161_v2 }
 0x2ab   :  { %v2209_v36 = vpop.permute.xlu1 %2208 }
 0x2ac   :  { %v2224_v21 = vpop.permute.xlu0 %2223  ;;  %v2213_v15 = vadd.f32 %v2209_v36, %v2162_v6 }
 0x2ad   :  { %v2229_v39 = vadd.f32 %v2224_v21, %v2178_v28 }
 0x2af   :  { %v2226_v22 = vpop.permute.xlu1 %2225 }
 0x2b0   :  { %v2241_v20 = vpop.permute.xlu0 %2240  ;;  %v2230_v60 = vadd.f32 %v2226_v22, %v2179_v30 }
 0x2b1   :  { %v2246_v42 = vadd.f32 %v2241_v20, %v2195_v33 }
 0x2b3   :  { %v2243_v4 = vpop.permute.xlu1 %2242 }
 0x2b4   :  { %v2255_v11 = vpop.permute.xlu0 %2254  ;;  %v2247_v24 = vadd.f32 %v2243_v4, %v2196_v55 }
 0x2b5   :  { %v2260_v25 = vadd.f32 %v2255_v11, %v2212_v10 }
 0x2b7   :  { %v2257_v9 = vpop.permute.xlu1 %2256 }
 0x2b8   :  { %v2269_v47 = vpop.permute.xlu0 %2268  ;;  %v2261_v37 = vadd.f32 %v2257_v9, %v2213_v15 }
 0x2b9   :  { %v2274_v38 = vadd.f32 %v2269_v47, %v2229_v39 }
 0x2bb   :  { %v2271_v18 = vpop.permute.xlu1 %2270 }
 0x2bc   :  { %v2283_v40 = vpop.permute.xlu0 %2282  ;;  %v2275_v50 = vadd.f32 %v2271_v18, %v2230_v60 }
 0x2bd   :  { %v2288_v27 = vadd.f32 %v2283_v40, %v2246_v42 }
 0x2bf   :  { %v2285_v61 = vpop.permute.xlu1 %2284 }
 0x2c0   :  { %v2300_v56 = vpop.permute.xlu0 %2299  ;;  %v2289_v43 = vadd.f32 %v2285_v61, %v2247_v24 }
 0x2c1   :  { %v2305_v23 = vadd.f32 %v2300_v56, %v2260_v25 }
 0x2c3   :  { %v2302_v53 = vpop.permute.xlu1 %2301 }
 0x2c4   :  { %v2317_v46 = vpop.permute.xlu0 %2316  ;;  %v2306_v14 = vadd.f32 %v2302_v53, %v2261_v37 }
 0x2c5   :  { %v2322_v7 = vadd.f32 %v2317_v46, %v2274_v38 }
 0x2c7   :  { %v2319_v0 = vpop.permute.xlu1 %2318 }
 0x2c8   :  { %v2334_v3 = vpop.permute.xlu0 %2333  ;;  %v2323_v45 = vadd.f32 %v2319_v0, %v2275_v50 }
 0x2c9   :  { %v2339_v13 = vadd.f32 %v2334_v3, %v2288_v27 }
 0x2cb   :  { %v2336_v51 = vpop.permute.xlu1 %2335 }
 0x2cc   :  { %v2351_v32 = vpop.permute.xlu0 %2350  ;;  %v2340_v58 = vadd.f32 %v2336_v51, %v2289_v43 }
 0x2cd   :  { %v2356_v49 = vadd.f32 %v2351_v32, %v2305_v23 }
 0x2cf   :  { %v2353_v35 = vpop.permute.xlu1 %2352  ;;  %2393 = vst.msk [vmem:[%s5536_s20] sm:$0xff] %vm2392_vm3, %v2356_v49 }
 0x2d0   :  { %v2357_v19 = vadd.f32 %v2353_v35, %v2306_v14  ;;  %v2368_v26 = vpop.permute.xlu0 %2367 }
 0x2d1   :  { %v2373_v1 = vadd.f32 %v2368_v26, %v2322_v7 }
 0x2d2   :  { %2395 = vst.msk [vmem:[%s5536_s20 + $0x8] sm:$0xf] %vm2394_vm2, %v2357_v19 }
 0x2d3   :  { %v2370_v17 = vpop.permute.xlu1 %2369  ;;  %2573 = vst.msk [vmem:[%s5536_s20 + $0x10] sm:$0xff] %vm2392_vm3, %v2373_v1 }
 0x2d4   :  { %v2374_v34 = vadd.f32 %v2370_v17, %v2323_v45  ;;  %v2385_v59 = vpop.permute.xlu0 %2384 }
 0x2d5   :  { %v2390_v5 = vadd.f32 %v2385_v59, %v2339_v13 }
 0x2d6   :  { %2574 = vst.msk [vmem:[%s5536_s20 + $0x18] sm:$0xf] %vm2394_vm2, %v2374_v34 }
 0x2d7   :  { %v2387_v44 = vpop.permute.xlu1 %2386  ;;  %2575 = vst.msk [vmem:[%s5536_s20 + $0x20] sm:$0xff] %vm2392_vm3, %v2390_v5 }
 0x2d8   :  { %v2391_v54 = vadd.f32 %v2387_v44, %v2340_v58 }
 0x2da   :  { %2576 = vst.msk [vmem:[%s5536_s20 + $0x28] sm:$0xf] %vm2394_vm2, %v2391_v54 }
 0x2db   :  { %2406 = vsyncpa [#allocation3], 1 }
 0x2dc   :  { %2407 = vsyncpa [#allocation5], 1 }
 0x2dd   :  { %2408 = vsyncpa [#allocation8], 1 }

</bundles_post_ra>
